<compile_context>
chip_gen: v7x
topology: tpu7x:2x2x1
jax: 0.10.0
libtpu: 0.0.40
codegen_flags: <defaults>
</compile_context>

<pallas_src>
import jax
import jax.numpy as jnp
from jax.experimental import pallas as pl
from jax.experimental.pallas import tpu as pltpu


def _round_up(a, b):
    return (a + b - 1) // b * b


def model_forward(x, w_t, negative_slope, *, block_n=8):
    """x: (N, C, H, W) f32;  w_t: (C, 1, 3, 3) ConvTranspose2d weight (PyTorch layout)."""
    N, C, H, W = x.shape
    KH = KW = 3
    HW = H * W

    NB = max(1, min(block_n, N))          # images per grid step
    G = pl.cdiv(N, NB)                    # grid steps (>= 2 for N >= 2*NB -> megacore-splittable)
    N_pad = G * NB

    C_PAD = _round_up(C, 16)              # contraction dim padded for bf16 sublane packing
    W_ROWS = 16                           # 9 taps zero-padded to 16 LHS rows
    SEG = _round_up(HW + W + 1, 128)      # per-image lane segment: data [0, HW) + >= W+1 zero slack
    LPAD = 128                            # zero lead-in (>= W+1): image 0's top-row taps read zeros
    RPAD = 128                            # zero tail: last image's shifted reads stay in range
    OUTW = NB * SEG                       # output window (all images lane-concatenated)
    TOT = LPAD + OUTW + RPAD              # activation panel / tap-map width

    # --- weights: convT -> forward conv (spatial flip), taps-major, bf16, one-time tiny ---------
    wf = w_t[:, 0, ::-1, ::-1]                                    # (C, 3, 3)
    w_taps = jnp.transpose(wf.reshape(C, KH * KW), (1, 0))        # (9, C), row t = kh*3 + kw
    w_taps = jnp.pad(w_taps, ((0, W_ROWS - KH * KW), (0, C_PAD - C))).astype(jnp.bfloat16)

    # --- column-border masks (left column for kw=0 taps, right column for kw=2 taps) ------------
    q = jnp.arange(SEG)
    wcol = q % W
    valid = q < HW
    m_left = ((wcol != 0) & valid).astype(jnp.float32)
    m_right = ((wcol != (W - 1)) & valid).astype(jnp.float32)
    masks = jnp.tile(jnp.stack([m_left, m_right], axis=0), (1, NB))     # (2, OUTW)

    # --- activations: NO pad / NO cast HBM pass; just a free (metadata) reshape -----------------
    x_r = x.reshape(N, C, HW)
    ns = jnp.reshape(negative_slope, (1,)).astype(jnp.float32)

    def kernel(w_ref, m_ref, x_ref, ns_ref, o_ref, xscr_ref, f_ref):
        # w_ref   : (16, C_PAD) bf16     m_ref : (2, OUTW) f32     ns_ref: (1,) f32 SMEM
        # x_ref   : (NB, C, HW) f32      o_ref : (NB, SEG) f32
        # xscr_ref: (C_PAD, TOT) bf16    f_ref : (16, TOT) f32
        neg = ns_ref[0]

        # (1) fused pad + cast: zero the panel, then drop each image at a 128-aligned offset.
        #     Re-zeroed every step so correctness holds when the "parallel" grid axis is split
        #     across TensorCores (each core owns a private scratch); cheap and hidden under DMA.
        xscr_ref[...] = jnp.zeros(xscr_ref.shape, xscr_ref.dtype)
        for b in range(NB):
            off = LPAD + b * SEG
            xscr_ref[0:C, off:off + HW] = x_ref[b].astype(jnp.bfloat16)

        # (2) ONE batched MXU matmul: all 9 taps x all NB images (bf16 operands, f32 accumulate).
        f_ref[...] = jnp.dot(w_ref[...], xscr_ref[...],
                             preferred_element_type=jnp.float32)

        # (3) 9-tap shift-add, vectorized over every image in the block; tree-summed.
        #     out[q] = sum_{kh,kw} mask_kw[q] * F[kh*3+kw, q + (kh-1)*W + (kw-1)]
        #     Row borders resolve to zeros via the zero lead-in / inter-image slack / tail.
        m_left_v = m_ref[0:1, :]
        m_right_v = m_ref[1:2, :]
        taps = []
        for kh in range(KH):
            for kw in range(KW):
                t = kh * KW + kw
                s = (kh - 1) * W + (kw - 1)
                v = f_ref[t:t + 1, LPAD + s:LPAD + s + OUTW]      # static lane-offset slice
                if kw == 0:
                    v = v * m_left_v
                elif kw == KW - 1:
                    v = v * m_right_v
                taps.append(v)
        while len(taps) > 1:                                      # pairwise/tree add (depth 4)
            nxt = [taps[i] + taps[i + 1] for i in range(0, len(taps) - 1, 2)]
            if len(taps) % 2:
                nxt.append(taps[-1])
            taps = nxt
        acc = taps[0]                                             # (1, OUTW) f32

        # (4) fused leaky-relu tail + lane-aligned per-image stores (SEG is a multiple of 128).
        res = jnp.where(acc > 0.0, acc, acc * neg)
        for b in range(NB):
            o_ref[b:b + 1, :] = res[:, b * SEG:(b + 1) * SEG]

    out = pl.pallas_call(
        kernel,
        out_shape=jax.ShapeDtypeStruct((N_pad, SEG), jnp.float32),
        grid_spec=pltpu.PrefetchScalarGridSpec(
            num_scalar_prefetch=0,
            grid=(G,),
            in_specs=[
                pl.BlockSpec((W_ROWS, C_PAD), lambda i: (0, 0)),        # taps (resident)
                pl.BlockSpec((2, OUTW), lambda i: (0, 0)),              # column masks (resident)
                pl.BlockSpec((NB, C, HW), lambda i: (i, 0, 0)),         # raw f32 image block
                pl.BlockSpec((1,), lambda i: (0,),
                             memory_space=pltpu.MemorySpace.SMEM),      # negative_slope scalar
            ],
            out_specs=pl.BlockSpec((NB, SEG), lambda i: (i, 0)),
            scratch_shapes=[
                pltpu.VMEM((C_PAD, TOT), jnp.bfloat16),                 # padded activation panel
                pltpu.VMEM((W_ROWS, TOT), jnp.float32),                 # tap maps
            ],
        ),
        compiler_params=pltpu.CompilerParams(dimension_semantics=("parallel",)),
    )(w_taps, masks, x_r, ns)

    # tiny epilogue: drop pad images / slack columns, back to NCHW (N, 1, H, W)
    return out[:N, :HW].reshape(N, 1, H, W)


def reference_forward(x, w_t, negative_slope, compute_dtype=jnp.float32):
    # independent reference: forward conv with flipped kernel via lax
    wf = jnp.transpose(w_t, (1, 0, 2, 3))[:, :, ::-1, ::-1]      # (1, C, 3, 3) OIHW
    f1 = jax.lax.conv_general_dilated(
        x.astype(compute_dtype), wf.astype(compute_dtype),
        window_strides=(1, 1), padding=((1, 1), (1, 1)),
        dimension_numbers=("NCHW", "OIHW", "NCHW"),
        preferred_element_type=jnp.float32)
    return jnp.where(f1 > 0, f1, f1 * negative_slope)


if __name__ == "__main__":
    key = jax.random.PRNGKey(0)
    k1, k2, k3 = jax.random.split(key, 3)

    # small shapes consistent with the module (in_channels fixed at 195 by the ConvTranspose2d);
    # N=16 -> NB=8 per step, G=2 grid steps.
    N, C, H, W = 16, 195, 17, 20
    x = jax.random.normal(k1, (N, C, H, W), dtype=jnp.float32)
    w_t = jax.random.normal(k2, (C, 1, 3, 3), dtype=jnp.float32) * 0.05
    negative_slope = jax.random.normal(k3, ())

    out = jax.jit(model_forward)(x, w_t, negative_slope)
    out = jax.block_until_ready(out)
    assert out.shape == (N, 1, H, W), out.shape

    # tight check vs a reference using the same bf16 operand rounding (f32 accumulation)
    ref16 = reference_forward(x, w_t, negative_slope, compute_dtype=jnp.bfloat16)
    assert jnp.allclose(out, ref16, rtol=2e-3, atol=2e-3), float(jnp.max(jnp.abs(out - ref16)))

    # loose sanity check vs the full-f32 reference (kernel uses bf16 MXU operands on purpose)
    ref32 = reference_forward(x, w_t, negative_slope, compute_dtype=jnp.float32)
    assert jnp.allclose(out, ref32, rtol=1e-1, atol=1e-1), float(jnp.max(jnp.abs(out - ref32)))

    print("KERNEL_OK")
</pallas_src>

<mosaic_0001>
module attributes {stable_mosaic.version = 11 : i64} {
  func.func @kernel(%arg0: i32, %arg1: memref<16x208xbf16, #tpu.memory_space<vmem>>, %arg2: memref<2x3072xf32, #tpu.memory_space<vmem>>, %arg3: memref<8x195x340xf32, #tpu.memory_space<vmem>>, %arg4: memref<1xf32, #tpu.memory_space<smem>>, %arg5: memref<8x384xf32, #tpu.memory_space<vmem>>, %arg6: memref<208x3328xbf16, #tpu.memory_space<vmem>>, %arg7: memref<16x3328xf32, #tpu.memory_space<vmem>>) attributes {dimension_semantics = [#tpu.dimension_semantics<parallel>], iteration_bounds = array<i64: 2>, scalar_prefetch = 0 : i64, scratch_operands = 2 : i64, tpu.core_type = #tpu.core_type<tc>, window_params = [{pipeline_mode = #tpu.pipeline_mode<synchronous>, transform_indices = @transform_0, window_bounds = array<i64: 16, 208>}, {pipeline_mode = #tpu.pipeline_mode<synchronous>, transform_indices = @transform_1, window_bounds = array<i64: 2, 3072>}, {transform_indices = @transform_2, window_bounds = array<i64: 8, 195, 340>}, {transform_indices = @transform_3, window_bounds = array<i64: 1>}, {transform_indices = @transform_4, window_bounds = array<i64: 8, 384>}]} {
    %c0 = arith.constant 0 : index
    %0 = memref.load %arg4[%c0] : memref<1xf32, #tpu.memory_space<smem>>
    %cst = arith.constant 0.000000e+00 : bf16
    %1 = vector.broadcast %cst : bf16 to vector<208x3328xbf16>
    %c0_0 = arith.constant 0 : index
    %c0_1 = arith.constant 0 : index
    %2 = vector.load %arg6[%c0_0, %c0_1] : memref<208x3328xbf16, #tpu.memory_space<vmem>>, vector<208x3328xbf16>
    tpu.vector_store %arg6[%c0_0, %c0_1], %1 {strides = array<i32>} : memref<208x3328xbf16, #tpu.memory_space<vmem>>, vector<208x3328xbf16>,
    %c0_2 = arith.constant 0 : index
    %c0_3 = arith.constant 0 : index
    %c0_4 = arith.constant 0 : index
    %3 = vector.load %arg3[%c0_2, %c0_3, %c0_4] : memref<8x195x340xf32, #tpu.memory_space<vmem>>, vector<1x195x340xf32>
    %4 = vector.shape_cast %3 : vector<1x195x340xf32> to vector<195x340xf32>
    %5 = arith.truncf %4 : vector<195x340xf32> to vector<195x340xbf16>
    %c0_5 = arith.constant 0 : index
    %c128 = arith.constant 128 : index
    %6 = vector.load %arg6[%c0_5, %c128] : memref<208x3328xbf16, #tpu.memory_space<vmem>>, vector<195x340xbf16>
    tpu.vector_store %arg6[%c0_5, %c128], %5 {strides = array<i32>} : memref<208x3328xbf16, #tpu.memory_space<vmem>>, vector<195x340xbf16>,
    %c1 = arith.constant 1 : index
    %c0_6 = arith.constant 0 : index
    %c0_7 = arith.constant 0 : index
    %7 = vector.load %arg3[%c1, %c0_6, %c0_7] : memref<8x195x340xf32, #tpu.memory_space<vmem>>, vector<1x195x340xf32>
    %8 = vector.shape_cast %7 : vector<1x195x340xf32> to vector<195x340xf32>
    %9 = arith.truncf %8 : vector<195x340xf32> to vector<195x340xbf16>
    %c0_8 = arith.constant 0 : index
    %c512 = arith.constant 512 : index
    %10 = vector.load %arg6[%c0_8, %c512] : memref<208x3328xbf16, #tpu.memory_space<vmem>>, vector<195x340xbf16>
    tpu.vector_store %arg6[%c0_8, %c512], %9 {strides = array<i32>} : memref<208x3328xbf16, #tpu.memory_space<vmem>>, vector<195x340xbf16>,
    %c2 = arith.constant 2 : index
    %c0_9 = arith.constant 0 : index
    %c0_10 = arith.constant 0 : index
    %11 = vector.load %arg3[%c2, %c0_9, %c0_10] : memref<8x195x340xf32, #tpu.memory_space<vmem>>, vector<1x195x340xf32>
    %12 = vector.shape_cast %11 : vector<1x195x340xf32> to vector<195x340xf32>
    %13 = arith.truncf %12 : vector<195x340xf32> to vector<195x340xbf16>
    %c0_11 = arith.constant 0 : index
    %c896 = arith.constant 896 : index
    %14 = vector.load %arg6[%c0_11, %c896] : memref<208x3328xbf16, #tpu.memory_space<vmem>>, vector<195x340xbf16>
    tpu.vector_store %arg6[%c0_11, %c896], %13 {strides = array<i32>} : memref<208x3328xbf16, #tpu.memory_space<vmem>>, vector<195x340xbf16>,
    %c3 = arith.constant 3 : index
    %c0_12 = arith.constant 0 : index
    %c0_13 = arith.constant 0 : index
    %15 = vector.load %arg3[%c3, %c0_12, %c0_13] : memref<8x195x340xf32, #tpu.memory_space<vmem>>, vector<1x195x340xf32>
    %16 = vector.shape_cast %15 : vector<1x195x340xf32> to vector<195x340xf32>
    %17 = arith.truncf %16 : vector<195x340xf32> to vector<195x340xbf16>
    %c0_14 = arith.constant 0 : index
    %c1280 = arith.constant 1280 : index
    %18 = vector.load %arg6[%c0_14, %c1280] : memref<208x3328xbf16, #tpu.memory_space<vmem>>, vector<195x340xbf16>
    tpu.vector_store %arg6[%c0_14, %c1280], %17 {strides = array<i32>} : memref<208x3328xbf16, #tpu.memory_space<vmem>>, vector<195x340xbf16>,
    %c4 = arith.constant 4 : index
    %c0_15 = arith.constant 0 : index
    %c0_16 = arith.constant 0 : index
    %19 = vector.load %arg3[%c4, %c0_15, %c0_16] : memref<8x195x340xf32, #tpu.memory_space<vmem>>, vector<1x195x340xf32>
    %20 = vector.shape_cast %19 : vector<1x195x340xf32> to vector<195x340xf32>
    %21 = arith.truncf %20 : vector<195x340xf32> to vector<195x340xbf16>
    %c0_17 = arith.constant 0 : index
    %c1664 = arith.constant 1664 : index
    %22 = vector.load %arg6[%c0_17, %c1664] : memref<208x3328xbf16, #tpu.memory_space<vmem>>, vector<195x340xbf16>
    tpu.vector_store %arg6[%c0_17, %c1664], %21 {strides = array<i32>} : memref<208x3328xbf16, #tpu.memory_space<vmem>>, vector<195x340xbf16>,
    %c5 = arith.constant 5 : index
    %c0_18 = arith.constant 0 : index
    %c0_19 = arith.constant 0 : index
    %23 = vector.load %arg3[%c5, %c0_18, %c0_19] : memref<8x195x340xf32, #tpu.memory_space<vmem>>, vector<1x195x340xf32>
    %24 = vector.shape_cast %23 : vector<1x195x340xf32> to vector<195x340xf32>
    %25 = arith.truncf %24 : vector<195x340xf32> to vector<195x340xbf16>
    %c0_20 = arith.constant 0 : index
    %c2048 = arith.constant 2048 : index
    %26 = vector.load %arg6[%c0_20, %c2048] : memref<208x3328xbf16, #tpu.memory_space<vmem>>, vector<195x340xbf16>
    tpu.vector_store %arg6[%c0_20, %c2048], %25 {strides = array<i32>} : memref<208x3328xbf16, #tpu.memory_space<vmem>>, vector<195x340xbf16>,
    %c6 = arith.constant 6 : index
    %c0_21 = arith.constant 0 : index
    %c0_22 = arith.constant 0 : index
    %27 = vector.load %arg3[%c6, %c0_21, %c0_22] : memref<8x195x340xf32, #tpu.memory_space<vmem>>, vector<1x195x340xf32>
    %28 = vector.shape_cast %27 : vector<1x195x340xf32> to vector<195x340xf32>
    %29 = arith.truncf %28 : vector<195x340xf32> to vector<195x340xbf16>
    %c0_23 = arith.constant 0 : index
    %c2432 = arith.constant 2432 : index
    %30 = vector.load %arg6[%c0_23, %c2432] : memref<208x3328xbf16, #tpu.memory_space<vmem>>, vector<195x340xbf16>
    tpu.vector_store %arg6[%c0_23, %c2432], %29 {strides = array<i32>} : memref<208x3328xbf16, #tpu.memory_space<vmem>>, vector<195x340xbf16>,
    %c7 = arith.constant 7 : index
    %c0_24 = arith.constant 0 : index
    %c0_25 = arith.constant 0 : index
    %31 = vector.load %arg3[%c7, %c0_24, %c0_25] : memref<8x195x340xf32, #tpu.memory_space<vmem>>, vector<1x195x340xf32>
    %32 = vector.shape_cast %31 : vector<1x195x340xf32> to vector<195x340xf32>
    %33 = arith.truncf %32 : vector<195x340xf32> to vector<195x340xbf16>
    %c0_26 = arith.constant 0 : index
    %c2816 = arith.constant 2816 : index
    %34 = vector.load %arg6[%c0_26, %c2816] : memref<208x3328xbf16, #tpu.memory_space<vmem>>, vector<195x340xbf16>
    tpu.vector_store %arg6[%c0_26, %c2816], %33 {strides = array<i32>} : memref<208x3328xbf16, #tpu.memory_space<vmem>>, vector<195x340xbf16>,
    %c0_27 = arith.constant 0 : index
    %c0_28 = arith.constant 0 : index
    %35 = vector.load %arg1[%c0_27, %c0_28] : memref<16x208xbf16, #tpu.memory_space<vmem>>, vector<16x208xbf16>
    %c0_29 = arith.constant 0 : index
    %c0_30 = arith.constant 0 : index
    %36 = vector.load %arg6[%c0_29, %c0_30] : memref<208x3328xbf16, #tpu.memory_space<vmem>>, vector<208x3328xbf16>
    %cst_31 = arith.constant dense<0.000000e+00> : vector<16x3328xf32>
    %37 = tpu.matmul %35, %36, %cst_31 {dimension_numbers = #tpu.dot_dimension_numbers<[1], [0], [0], [1], [0, 0, 1, 1], [], []>} : vector<16x208xbf16>, vector<208x3328xbf16>, vector<16x3328xf32> -> vector<16x3328xf32>
    %c0_32 = arith.constant 0 : index
    %c0_33 = arith.constant 0 : index
    %38 = vector.load %arg7[%c0_32, %c0_33] : memref<16x3328xf32, #tpu.memory_space<vmem>>, vector<16x3328xf32>
    tpu.vector_store %arg7[%c0_32, %c0_33], %37 {strides = array<i32>} : memref<16x3328xf32, #tpu.memory_space<vmem>>, vector<16x3328xf32>,
    %c0_34 = arith.constant 0 : index
    %c0_35 = arith.constant 0 : index
    %39 = vector.load %arg2[%c0_34, %c0_35] : memref<2x3072xf32, #tpu.memory_space<vmem>>, vector<1x3072xf32>
    %c1_36 = arith.constant 1 : index
    %c0_37 = arith.constant 0 : index
    %40 = vector.load %arg2[%c1_36, %c0_37] : memref<2x3072xf32, #tpu.memory_space<vmem>>, vector<1x3072xf32>
    %c0_38 = arith.constant 0 : index
    %c107 = arith.constant 107 : index
    %41 = vector.load %arg7[%c0_38, %c107] : memref<16x3328xf32, #tpu.memory_space<vmem>>, vector<1x3072xf32>
    %42 = arith.mulf %41, %39 : vector<1x3072xf32>
    %c1_39 = arith.constant 1 : index
    %c108 = arith.constant 108 : index
    %43 = vector.load %arg7[%c1_39, %c108] : memref<16x3328xf32, #tpu.memory_space<vmem>>, vector<1x3072xf32>
    %c2_40 = arith.constant 2 : index
    %c109 = arith.constant 109 : index
    %44 = vector.load %arg7[%c2_40, %c109] : memref<16x3328xf32, #tpu.memory_space<vmem>>, vector<1x3072xf32>
    %45 = arith.mulf %44, %40 : vector<1x3072xf32>
    %c3_41 = arith.constant 3 : index
    %c127 = arith.constant 127 : index
    %46 = vector.load %arg7[%c3_41, %c127] : memref<16x3328xf32, #tpu.memory_space<vmem>>, vector<1x3072xf32>
    %47 = arith.mulf %46, %39 : vector<1x3072xf32>
    %c4_42 = arith.constant 4 : index
    %c128_43 = arith.constant 128 : index
    %48 = vector.load %arg7[%c4_42, %c128_43] : memref<16x3328xf32, #tpu.memory_space<vmem>>, vector<1x3072xf32>
    %c5_44 = arith.constant 5 : index
    %c129 = arith.constant 129 : index
    %49 = vector.load %arg7[%c5_44, %c129] : memref<16x3328xf32, #tpu.memory_space<vmem>>, vector<1x3072xf32>
    %50 = arith.mulf %49, %40 : vector<1x3072xf32>
    %c6_45 = arith.constant 6 : index
    %c147 = arith.constant 147 : index
    %51 = vector.load %arg7[%c6_45, %c147] : memref<16x3328xf32, #tpu.memory_space<vmem>>, vector<1x3072xf32>
    %52 = arith.mulf %51, %39 : vector<1x3072xf32>
    %c7_46 = arith.constant 7 : index
    %c148 = arith.constant 148 : index
    %53 = vector.load %arg7[%c7_46, %c148] : memref<16x3328xf32, #tpu.memory_space<vmem>>, vector<1x3072xf32>
    %c8 = arith.constant 8 : index
    %c149 = arith.constant 149 : index
    %54 = vector.load %arg7[%c8, %c149] : memref<16x3328xf32, #tpu.memory_space<vmem>>, vector<1x3072xf32>
    %55 = arith.mulf %54, %40 : vector<1x3072xf32>
    %56 = arith.addf %42, %43 : vector<1x3072xf32>
    %57 = arith.addf %45, %47 : vector<1x3072xf32>
    %58 = arith.addf %48, %50 : vector<1x3072xf32>
    %59 = arith.addf %52, %53 : vector<1x3072xf32>
    %60 = arith.addf %56, %57 : vector<1x3072xf32>
    %61 = arith.addf %58, %59 : vector<1x3072xf32>
    %62 = arith.addf %60, %61 : vector<1x3072xf32>
    %63 = arith.addf %62, %55 : vector<1x3072xf32>
    %cst_47 = arith.constant 0.000000e+00 : f32
    %64 = vector.broadcast %cst_47 : f32 to vector<1x3072xf32>
    %65 = arith.cmpf ogt, %63, %64 : vector<1x3072xf32>
    %66 = vector.broadcast %0 : f32 to vector<1x3072xf32>
    %67 = arith.mulf %63, %66 : vector<1x3072xf32>
    %68 = arith.select %65, %63, %67 : vector<1x3072xi1>, vector<1x3072xf32>
    %69 = vector.extract_strided_slice %68 {offsets = [0, 0], sizes = [1, 384], strides = [1, 1]} : vector<1x3072xf32> to vector<1x384xf32>
    %c0_48 = arith.constant 0 : index
    %c0_49 = arith.constant 0 : index
    %70 = vector.load %arg5[%c0_48, %c0_49] : memref<8x384xf32, #tpu.memory_space<vmem>>, vector<1x384xf32>
    tpu.vector_store %arg5[%c0_48, %c0_49], %69 {strides = array<i32>} : memref<8x384xf32, #tpu.memory_space<vmem>>, vector<1x384xf32>,
    %71 = vector.extract_strided_slice %68 {offsets = [0, 384], sizes = [1, 384], strides = [1, 1]} : vector<1x3072xf32> to vector<1x384xf32>
    %c1_50 = arith.constant 1 : index
    %c0_51 = arith.constant 0 : index
    %72 = vector.load %arg5[%c1_50, %c0_51] : memref<8x384xf32, #tpu.memory_space<vmem>>, vector<1x384xf32>
    tpu.vector_store %arg5[%c1_50, %c0_51], %71 {strides = array<i32>} : memref<8x384xf32, #tpu.memory_space<vmem>>, vector<1x384xf32>,
    %73 = vector.extract_strided_slice %68 {offsets = [0, 768], sizes = [1, 384], strides = [1, 1]} : vector<1x3072xf32> to vector<1x384xf32>
    %c2_52 = arith.constant 2 : index
    %c0_53 = arith.constant 0 : index
    %74 = vector.load %arg5[%c2_52, %c0_53] : memref<8x384xf32, #tpu.memory_space<vmem>>, vector<1x384xf32>
    tpu.vector_store %arg5[%c2_52, %c0_53], %73 {strides = array<i32>} : memref<8x384xf32, #tpu.memory_space<vmem>>, vector<1x384xf32>,
    %75 = vector.extract_strided_slice %68 {offsets = [0, 1152], sizes = [1, 384], strides = [1, 1]} : vector<1x3072xf32> to vector<1x384xf32>
    %c3_54 = arith.constant 3 : index
    %c0_55 = arith.constant 0 : index
    %76 = vector.load %arg5[%c3_54, %c0_55] : memref<8x384xf32, #tpu.memory_space<vmem>>, vector<1x384xf32>
    tpu.vector_store %arg5[%c3_54, %c0_55], %75 {strides = array<i32>} : memref<8x384xf32, #tpu.memory_space<vmem>>, vector<1x384xf32>,
    %77 = vector.extract_strided_slice %68 {offsets = [0, 1536], sizes = [1, 384], strides = [1, 1]} : vector<1x3072xf32> to vector<1x384xf32>
    %c4_56 = arith.constant 4 : index
    %c0_57 = arith.constant 0 : index
    %78 = vector.load %arg5[%c4_56, %c0_57] : memref<8x384xf32, #tpu.memory_space<vmem>>, vector<1x384xf32>
    tpu.vector_store %arg5[%c4_56, %c0_57], %77 {strides = array<i32>} : memref<8x384xf32, #tpu.memory_space<vmem>>, vector<1x384xf32>,
    %79 = vector.extract_strided_slice %68 {offsets = [0, 1920], sizes = [1, 384], strides = [1, 1]} : vector<1x3072xf32> to vector<1x384xf32>
    %c5_58 = arith.constant 5 : index
    %c0_59 = arith.constant 0 : index
    %80 = vector.load %arg5[%c5_58, %c0_59] : memref<8x384xf32, #tpu.memory_space<vmem>>, vector<1x384xf32>
    tpu.vector_store %arg5[%c5_58, %c0_59], %79 {strides = array<i32>} : memref<8x384xf32, #tpu.memory_space<vmem>>, vector<1x384xf32>,
    %81 = vector.extract_strided_slice %68 {offsets = [0, 2304], sizes = [1, 384], strides = [1, 1]} : vector<1x3072xf32> to vector<1x384xf32>
    %c6_60 = arith.constant 6 : index
    %c0_61 = arith.constant 0 : index
    %82 = vector.load %arg5[%c6_60, %c0_61] : memref<8x384xf32, #tpu.memory_space<vmem>>, vector<1x384xf32>
    tpu.vector_store %arg5[%c6_60, %c0_61], %81 {strides = array<i32>} : memref<8x384xf32, #tpu.memory_space<vmem>>, vector<1x384xf32>,
    %83 = vector.extract_strided_slice %68 {offsets = [0, 2688], sizes = [1, 384], strides = [1, 1]} : vector<1x3072xf32> to vector<1x384xf32>
    %c7_62 = arith.constant 7 : index
    %c0_63 = arith.constant 0 : index
    %84 = vector.load %arg5[%c7_62, %c0_63] : memref<8x384xf32, #tpu.memory_space<vmem>>, vector<1x384xf32>
    tpu.vector_store %arg5[%c7_62, %c0_63], %83 {strides = array<i32>} : memref<8x384xf32, #tpu.memory_space<vmem>>, vector<1x384xf32>,
    return
  }
  func.func @transform_0(%arg0: i32) -> (i32, i32) {
    %c0_i32 = arith.constant 0 : i32
    %c0_i32_0 = arith.constant 0 : i32
    %c0_i32_1 = arith.constant 0 : i32
    return %c0_i32, %c0_i32_0 : i32, i32
  }
  func.func @transform_1(%arg0: i32) -> (i32, i32) {
    %c0_i32 = arith.constant 0 : i32
    %c0_i32_0 = arith.constant 0 : i32
    %c0_i32_1 = arith.constant 0 : i32
    return %c0_i32, %c0_i32_0 : i32, i32
  }
  func.func @transform_2(%arg0: i32) -> (i32, i32, i32) {
    %c0_i32 = arith.constant 0 : i32
    %c0_i32_0 = arith.constant 0 : i32
    %c0_i32_1 = arith.constant 0 : i32
    return %arg0, %c0_i32, %c0_i32_0 : i32, i32, i32
  }
  func.func @transform_3(%arg0: i32) -> i32 {
    %c0_i32 = arith.constant 0 : i32
    %c0_i32_0 = arith.constant 0 : i32
    return %c0_i32 : i32
  }
  func.func @transform_4(%arg0: i32) -> (i32, i32) {
    %c0_i32 = arith.constant 0 : i32
    %c0_i32_0 = arith.constant 0 : i32
    return %arg0, %c0_i32 : i32, i32
  }
}

</mosaic_0001>

<bundles_post_ra>
// kernel: squeeze.0
= control target key start
LH: loop header
LB: loop body
LE: loop exit
PB: predicated region body
PF: predicated region fallthrough
CT: control target
= control target key end

     0   :  { %vm99_vm0 = vcmask 547840   ;;  %s201_s0 = inlined_call_operand.vmem [shape: bf16[195,3,3], index: 0, kind: input, shape index: {}]   ;;  %s202_s1 = inlined_call_operand.vmem [shape: bf16[195,9], index: 1, kind: output, shape index: {}]  }
   0x1   :  { %v160_v0 = vld [vmem:[%s201_s0 + $0x4] sm:$0xff]   ;;  %v164_v1 = vld [vmem:[%s201_s0] sm:$0xf]  }
   0x2   :  { %v17_v2 = vunpack.c.h.bf16 %v160_v0  ;;  %v49_v3 = vunpack.c.l.bf16 %v160_v0  ;;  %v80_v4 = vunpack.c.l.bf16 %v164_v1 }
   0x4   :  { %20 = vst [vmem:[#allocation1 + $0x20] ss:$8 sps:$4 sm:$0xff] %v17_v2   ;;  %52 = vst [vmem:[#allocation1 + $0x10] ss:$8 sps:$4 sm:$0xff] %v49_v3  }
   0x5   :  { %83 = vst [vmem:[#allocation1] ss:$8 sps:$4 sm:$0xff] %v80_v4  }
   0xb   :  { %v103_v5 = vld [vmem:[#allocation1 + $0x18] sm:$0x7]   ;;  %v108_v6 = vld [vmem:[#allocation1 + $0x28] sm:$0x7]   ;;  %v117_v7 = vld [vmem:[#allocation1 + $0x10] sm:$0x7]  }
   0xc   :  { %v98_v8 = vld [vmem:[#allocation1 + $0x8] sm:$0x7]   ;;  %106 = vst.msk [vmem:[#allocation0 + $0xb] sm:$0x7] %vm99_vm0, %v103_v5   ;;  %111 = vst.msk [vmem:[#allocation0 + $0xe] sm:$0x3] %vm99_vm0, %v108_v6  }
   0xd   :  { %113 = vst.msk [vmem:[#allocation0 + $0x16] sm:$0x4] %vm99_vm0, %v108_v6   ;;  %v114_v9 = vld [vmem:[#allocation1] sm:$0x7]   ;;  %119 = vst [vmem:[#allocation0 + $0x3] sm:$0x7] %v117_v7  }
   0xe   :  { %v121_v10 = vld [vmem:[#allocation1 + $0x20] sm:$0x7]   ;;  %101 = vst.msk [vmem:[#allocation0 + $0x8] sm:$0x7] %vm99_vm0, %v98_v8   ;;  %115 = vst [vmem:[#allocation0] sm:$0x7] %v114_v9  }
   0xf   :  { %123 = vst [vmem:[#allocation0 + $0x6] sm:$0x3] %v121_v10   ;;  %125 = vst [vmem:[#allocation0 + $0xe] sm:$0x4] %v121_v10  }
  0x14   :  { %v148_v11 = vld [vmem:[#allocation0 + $0x18] sm:$0xff] }
  0x15   :  { %v135_v13 = vld [vmem:[#allocation0 + $0x8] sm:$0xff] }
  0x16   :  { %v130_v12 = vld [vmem:[#allocation0] sm:$0xff]  ;;  %v141_v14 = vld [vmem:[#allocation0 + $0x10] sm:$0xff] }
  0x17   :  { %v171_v15 = vpack.c.bf16 %v135_v13, %v130_v12  ;;  %v176_v16 = vpack.c.bf16 %v148_v11, %v141_v14 }
  0x19   :  { %172 = vst [vmem:[%s202_s1] sm:$0xff] %v171_v15   ;;  %178 = vst [vmem:[%s202_s1 + $0x8] sm:$0xff] %v176_v16  }

// kernel: model_forward.1
= control target key start
LH: loop header
LB: loop body
LE: loop exit
PB: predicated region body
PF: predicated region fallthrough
CT: control target
= control target key end

     0   :  { %s4092_s17 = smov 0   ;;  %s7040_s0 = inlined_call_operand.vmem [shape: bf16[16,208], index: 0, kind: input, shape index: {}]   ;;  %s7041_s1 = inlined_call_operand.vmem [shape: f32[2,3072], index: 1, kind: input, shape index: {}]   ;;  %s7042_s2 = inlined_call_operand.vmem [shape: f32[16,195,340], index: 2, kind: input, shape index: {}]   ;;  %s7043_s3 = inlined_call_operand.<no memory space> [shape: f32[1], index: 3, kind: input, shape index: {}]   ;;  %s7044_s4 = inlined_call_operand.vmem [shape: f32[16,384], index: 4, kind: output, shape index: {}]  }
   0x1   :  { %9 = sst [smem:[#allocation4]] %s7043_s3 }
   0x2 LB: > { %s4098_s18 = sadd.s32 4294967295, %s4052_s17   ;;  %p3455_p0 = scmp.ge.s32.totalorder %s4052_s17, 1  ;;  %s4052_s17 = sphi %s4092_s17, %s15_s17  }
   0x3   : > { %p165_p1 = scmp.lt.s32.totalorder %s4052_s17, 3 }
   0x5   : > { %p166_p2 = pnand %p3455_p0, %p165_p1 }
   0x7   : > { %169 = sbr.rel (%p166_p2) target bundleno = 1195 (0x4ab), region = 36 }
   0xe   : > { %s3456_s19 = sshll.u32 %s4098_s18, 3  ;;  %v4054_v0 = vmov 0   ;;  %vm2178_vm0 = vcmask 654336   ;;  %v4233_v1 = vld [vmem:[%s7040_s0 + $0x4] ss:$8 sps:$4 sm:$0xff]   ;;  %vm660_vm1 = vcmask 687104  }
   0xf   : > { %p4105_p3 = scmp.lt.s32.totalorder %s3456_s19, 15  ;;  %206 = vst [vmem:[#allocation2] sm:$0xff] %v4054_v0  ;;  %209 = vst [vmem:[#allocation2 + $0x18] sm:$0xff] %v4054_v0  ;;  %3986 = vmatprep.mubr.msk.bf16.mxu0 %vm2178_vm0, %v4233_v1  ;;  %3987 = vmatprep.mubr.msk.bf16.mxu1 %vm2178_vm0, %v4233_v1  ;;  %vm695_vm2 = vcmask 1041408   ;;  %vm696_vm3 = vsmask.f32 1280 }
  0x10   : > { %212 = vst [vmem:[#allocation2 + $0x30] sm:$0xff] %v4054_v0  ;;  %215 = vst [vmem:[#allocation2 + $0x48] sm:$0xff] %v4054_v0  ;;  %vm704_vm5 = vcmask 680960   ;;  %s4055_s6 = smov 127   ;;  %s4056_s15 = smov 1   ;;  %vm2921_vm7 = vcmask 1039360  }
  0x11   : > { %218 = vst [vmem:[#allocation2 + $0x60] sm:$0xff] %v4054_v0  ;;  %221 = vst [vmem:[#allocation2 + $0x78] sm:$0xff] %v4054_v0  ;;  %s7612_s19 = smov (!%p4105_p3, %s3456_s19), 15  ;;  %s4057_s3 = smov 19   ;;  %vm2831_vm8 = vcmask 1040384   ;;  %vm2970_vm9 = vcmask 7168  }
  0x12   : > { %224 = vst [vmem:[#allocation2 + $0x90] sm:$0xff] %v4054_v0  ;;  %227 = vst [vmem:[#allocation2 + $0xa8] sm:$0xff] %v4054_v0  ;;  %s4013_s22 = smul.u32 600, %s7612_s19  ;;  %s4058_s28 = smov 109   ;;  %vm3088_vm10 = vcmask 1046528   ;;  %vm3007_vm11 = vcmask 154624  }
  0x13   : > { %230 = vst [vmem:[#allocation2 + $0xc0] sm:$0xff] %v4054_v0  ;;  %235 = vst [vmem:[#allocation2 + $0xe8] sm:$0xff] %v4054_v0  ;;  %s4059_s5 = smov 110   ;;  %s4060_s7 = smov 21   ;;  %vm2884_vm12 = vcmask 891904   ;;  %vm3120_vm13 = vcmask 900096  }
  0x14   : > { %238 = vst [vmem:[#allocation2 + $0x100] sm:$0xff] %v4054_v0  ;;  %241 = vst [vmem:[#allocation2 + $0x118] sm:$0xff] %v4054_v0  ;;  %s4246_s25 = scalar_lea.vmem %s7042_s2, %s4013_s22  ;;  %s4061_s10 = smov 107   ;;  %vm3058_vm14 = vcmask 171008   ;;  %vm2829_vm15 = vcmask 875520  }
  0x15   : > { %244 = vst [vmem:[#allocation2 + $0x130] sm:$0xff] %v4054_v0  ;;  %247 = vst [vmem:[#allocation2 + $0x148] sm:$0xff] %v4054_v0  ;;  %v544_v2 = vld [vmem:[%s4246_s25] sm:$0xff]  ;;  %v547_v3 = vld [vmem:[%s4246_s25 + $0x18] sm:$0xff]  ;;  %s4063_s16 = smov 86   ;;  %p199_p4 = scmp.lt.s32.totalorder %s4098_s18, 1 }
  0x16   : > { %250 = vst [vmem:[#allocation2 + $0x160] sm:$0xff] %v4054_v0  ;;  %253 = vst [vmem:[#allocation2 + $0x178] sm:$0xff] %v4054_v0  ;;  %v546_v4 = vld [vmem:[%s4246_s25 + $0x10] sm:$0xff]  ;;  %v619_v5 = vpack.c.bf16 %v547_v3, %v544_v2  ;;  %v549_v6 = vld [vmem:[%s4246_s25 + $0x28] sm:$0xff] }
  0x17   : > { %256 = vst [vmem:[#allocation2 + $0x190] sm:$0xff] %v4054_v0  ;;  %261 = vst [vmem:[#allocation2 + $0x1b8] sm:$0xff] %v4054_v0  ;;  %v4253_v7 = vld [vmem:[%s4246_s25 + $0x8] sm:$0xff]  ;;  %v548_v8 = vld [vmem:[%s4246_s25 + $0x20] sm:$0xff]  ;;  %v621_v9 = vpack.c.bf16 %v549_v6, %v546_v4  ;;  %s7614_s18 = smov (!%p199_p4, %s4098_s18), 1 }
  0x18   : > { %264 = vst [vmem:[#allocation2 + $0x1d0] sm:$0xff] %v4054_v0  ;;  %267 = vst [vmem:[#allocation2 + $0x1e8] sm:$0xff] %v4054_v0  ;;  %v620_v10 = vpack.c.bf16 %v548_v8, %v4253_v7  ;;  %v550_v11 = vld [vmem:[%s4246_s25 + $0x30] sm:$0xff]  ;;  %v553_v12 = vld [vmem:[%s4246_s25 + $0x48] sm:$0xff]  ;;  %2182 = vmatprep.subr.bf16.mxu0 %v619_v5  ;;  %s4014_s19 = smul.u32 24, %s7614_s18 }
  0x19   : > { %270 = vst [vmem:[#allocation2 + $0x200] sm:$0xff] %v4054_v0  ;;  %273 = vst [vmem:[#allocation2 + $0x218] sm:$0xff] %v4054_v0  ;;  %v552_v13 = vld [vmem:[%s4246_s25 + $0x40] sm:$0xff]  ;;  %v622_v14 = vpack.c.bf16 %v553_v12, %v550_v11  ;;  %v555_v15 = vld [vmem:[%s4246_s25 + $0x58] sm:$0xff]  ;;  %2183 = vmatpush1.bf16.msra.mxu0 %v4054_v0 }
  0x1a   : > { %276 = vst [vmem:[#allocation2 + $0x230] sm:$0xff] %v4054_v0  ;;  %279 = vst [vmem:[#allocation2 + $0x248] sm:$0xff] %v4054_v0  ;;  %v4262_v16 = vld [vmem:[%s4246_s25 + $0x38] sm:$0xff]  ;;  %v4265_v17 = vld [vmem:[%s4246_s25 + $0x50] sm:$0xff]  ;;  %v624_v18 = vpack.c.bf16 %v555_v15, %v552_v13  ;;  %s6995_s21 = scalar_lea.vmem %s7044_s4, %s4014_s19 }
  0x1b   : > { %282 = vst [vmem:[#allocation2 + $0x260] sm:$0xff] %v4054_v0  ;;  %287 = vst [vmem:[#allocation2 + $0x288] sm:$0xff] %v4054_v0  ;;  %v623_v19 = vpack.c.bf16 %v4265_v17, %v4262_v16  ;;  %v556_v20 = vld [vmem:[%s4246_s25 + $0x60] sm:$0xff]  ;;  %v559_v21 = vld [vmem:[%s4246_s25 + $0x78] sm:$0xff]  ;;  %2184 = vmatprep.subr.bf16.mxu0 %v622_v14 }
  0x1c   : > { %290 = vst [vmem:[#allocation2 + $0x2a0] sm:$0xff] %v4054_v0  ;;  %293 = vst [vmem:[#allocation2 + $0x2b8] sm:$0xff] %v4054_v0  ;;  %v558_v22 = vld [vmem:[%s4246_s25 + $0x70] sm:$0xff]  ;;  %v625_v23 = vpack.c.bf16 %v559_v21, %v556_v20  ;;  %v561_v24 = vld [vmem:[%s4246_s25 + $0x88] sm:$0xff] }
  0x1d   : > { %296 = vst [vmem:[#allocation2 + $0x2d0] sm:$0xff] %v4054_v0  ;;  %299 = vst [vmem:[#allocation2 + $0x2e8] sm:$0xff] %v4054_v0  ;;  %v4276_v25 = vld [vmem:[%s4246_s25 + $0x68] sm:$0xff]  ;;  %v4279_v26 = vld [vmem:[%s4246_s25 + $0x80] sm:$0xff]  ;;  %v627_v27 = vpack.c.bf16 %v561_v24, %v558_v22  ;;  %2185 = vmatpush1.bf16.msra.mxu0 %v4054_v0 }
  0x1e   : > { %302 = vst [vmem:[#allocation2 + $0x300] sm:$0xff] %v4054_v0  ;;  %305 = vst [vmem:[#allocation2 + $0x318] sm:$0xff] %v4054_v0  ;;  %v626_v28 = vpack.c.bf16 %v4279_v26, %v4276_v25  ;;  %v562_v29 = vld [vmem:[%s4246_s25 + $0x90] sm:$0xff]  ;;  %v565_v30 = vld [vmem:[%s4246_s25 + $0xa8] sm:$0xff]  ;;  %2186 = vmatprep.subr.bf16.mxu0 %v625_v23 }
  0x1f   : > { %308 = vst [vmem:[#allocation2 + $0x330] sm:$0xff] %v4054_v0  ;;  %313 = vst [vmem:[#allocation2 + $0x358] sm:$0xff] %v4054_v0  ;;  %v564_v31 = vld [vmem:[%s4246_s25 + $0xa0] sm:$0xff]  ;;  %v628_v32 = vpack.c.bf16 %v565_v30, %v562_v29  ;;  %v567_v33 = vld [vmem:[%s4246_s25 + $0xb8] sm:$0xff] }
  0x20   : > { %316 = vst [vmem:[#allocation2 + $0x370] sm:$0xff] %v4054_v0  ;;  %319 = vst [vmem:[#allocation2 + $0x388] sm:$0xff] %v4054_v0  ;;  %v4289_v34 = vld [vmem:[%s4246_s25 + $0x98] sm:$0xff]  ;;  %v4292_v35 = vld [vmem:[%s4246_s25 + $0xb0] sm:$0xff]  ;;  %v630_v36 = vpack.c.bf16 %v567_v33, %v564_v31 }
  0x21   : > { %322 = vst [vmem:[#allocation2 + $0x3a0] sm:$0xff] %v4054_v0  ;;  %325 = vst [vmem:[#allocation2 + $0x3b8] sm:$0xff] %v4054_v0  ;;  %v629_v37 = vpack.c.bf16 %v4292_v35, %v4289_v34  ;;  %v568_v38 = vld [vmem:[%s4246_s25 + $0xc0] sm:$0xff]  ;;  %v571_v39 = vld [vmem:[%s4246_s25 + $0xd8] sm:$0xff]  ;;  %2187 = vmatpush1.bf16.msra.mxu0 %v4054_v0 }
  0x22   : > { %328 = vst [vmem:[#allocation2 + $0x3d0] sm:$0xff] %v4054_v0  ;;  %331 = vst [vmem:[#allocation2 + $0x3e8] sm:$0xff] %v4054_v0  ;;  %v570_v40 = vld [vmem:[%s4246_s25 + $0xd0] sm:$0xff]  ;;  %v631_v41 = vpack.c.bf16 %v571_v39, %v568_v38  ;;  %v573_v42 = vld [vmem:[%s4246_s25 + $0xe8] sm:$0xff]  ;;  %2188 = vmatprep.subr.bf16.mxu0 %v628_v32 }
  0x23   : > { %334 = vst [vmem:[#allocation2 + $0x400] sm:$0xff] %v4054_v0  ;;  %339 = vst [vmem:[#allocation2 + $0x428] sm:$0xff] %v4054_v0  ;;  %v4303_v43 = vld [vmem:[%s4246_s25 + $0xc8] sm:$0xff]  ;;  %v4306_v44 = vld [vmem:[%s4246_s25 + $0xe0] sm:$0xff]  ;;  %v633_v45 = vpack.c.bf16 %v573_v42, %v570_v40 }
  0x24   : > { %342 = vst [vmem:[#allocation2 + $0x440] sm:$0xff] %v4054_v0  ;;  %345 = vst [vmem:[#allocation2 + $0x458] sm:$0xff] %v4054_v0  ;;  %v632_v46 = vpack.c.bf16 %v4306_v44, %v4303_v43  ;;  %v4312_v47 = vld [vmem:[%s4246_s25 + $0xf0] sm:$0xff]  ;;  %v577_v48 = vld [vmem:[%s4246_s25 + $0x108] sm:$0xff] }
  0x25   : > { %348 = vst [vmem:[#allocation2 + $0x470] sm:$0xff] %v4054_v0  ;;  %351 = vst [vmem:[#allocation2 + $0x488] sm:$0xff] %v4054_v0  ;;  %v576_v49 = vld [vmem:[%s4246_s25 + $0x100] sm:$0xff]  ;;  %v634_v51 = vpack.c.bf16 %v577_v48, %v4312_v47  ;;  %v579_v52 = vld [vmem:[%s4246_s25 + $0x118] sm:$0xff]  ;;  %2189 = vmatpush1.bf16.msra.mxu0 %v4054_v0 }
  0x26   : > { %354 = vst [vmem:[#allocation2 + $0x4a0] sm:$0xff] %v4054_v0  ;;  %357 = vst [vmem:[#allocation2 + $0x4b8] sm:$0xff] %v4054_v0  ;;  %v4319_v53 = vld [vmem:[%s4246_s25 + $0xf8] sm:$0xff]  ;;  %v636_v54 = vpack.c.bf16 %v579_v52, %v576_v49  ;;  %v4324_v55 = vld [vmem:[%s4246_s25 + $0x110] sm:$0xff]  ;;  %2190 = vmatprep.subr.bf16.mxu0 %v631_v41 }
  0x27   : > { %360 = vst [vmem:[#allocation2 + $0x4d0] sm:$0xff] %v4054_v0  ;;  %365 = vst [vmem:[#allocation2 + $0x4f8] sm:$0xff] %v4054_v0  ;;  %v4327_v56 = vld [vmem:[%s4246_s25 + $0x120] sm:$0xff]  ;;  %v4330_v57 = vld [vmem:[%s4246_s25 + $0x138] sm:$0xff]  ;;  %v635_v59 = vpack.c.bf16 %v4324_v55, %v4319_v53 }
  0x28   : > { %368 = vst [vmem:[#allocation2 + $0x510] sm:$0xff] %v4054_v0  ;;  %371 = vst [vmem:[#allocation2 + $0x528] sm:$0xff] %v4054_v0  ;;  %v637_v60 = vpack.c.bf16 %v4330_v57, %v4327_v56  ;;  %v582_v61 = vld [vmem:[%s4246_s25 + $0x130] sm:$0xff]  ;;  %v585_v62 = vld [vmem:[%s4246_s25 + $0x148] sm:$0xff] }
  0x29   : > { %374 = vst [vmem:[#allocation2 + $0x540] sm:$0xff] %v4054_v0  ;;  %377 = vst [vmem:[#allocation2 + $0x558] sm:$0xff] %v4054_v0  ;;  %v639_v63 = vpack.c.bf16 %v585_v62, %v582_v61  ;;  %v4340_v2 = vld [vmem:[%s4246_s25 + $0x128] sm:$0xff]  ;;  %v4343_v3 = vld [vmem:[%s4246_s25 + $0x140] sm:$0xff]  ;;  %2191 = vmatpush1.bf16.msra.mxu0 %v4054_v0 }
  0x2a   : > { %380 = vst [vmem:[#allocation2 + $0x570] sm:$0xff] %v4054_v0  ;;  %383 = vst [vmem:[#allocation2 + $0x588] sm:$0xff] %v4054_v0  ;;  %v4346_v4 = vld [vmem:[%s4246_s25 + $0x150] sm:$0xff]  ;;  %v638_v6 = vpack.c.bf16 %v4343_v3, %v4340_v2  ;;  %v4351_v7 = vld [vmem:[%s4246_s25 + $0x168] sm:$0xff]  ;;  %2192 = vmatprep.subr.bf16.mxu0 %v634_v51 }
  0x2b   : > { %386 = vst [vmem:[#allocation2 + $0x5a0] sm:$0xff] %v4054_v0  ;;  %391 = vst [vmem:[#allocation2 + $0x5c8] sm:$0xff] %v4054_v0  ;;  %v588_v8 = vld [vmem:[%s4246_s25 + $0x160] sm:$0xff]  ;;  %v4360_v11 = vld [vmem:[%s4246_s25 + $0x158] sm:$0xff] }
  0x2c   : > { %394 = vst [vmem:[#allocation2 + $0x5e0] sm:$0xff] %v4054_v0  ;;  %397 = vst [vmem:[#allocation2 + $0x5f8] sm:$0xff] %v4054_v0  ;;  %v4363_v12 = vld [vmem:[%s4246_s25 + $0x170] sm:$0xff]  ;;  %v4371_v15 = vld [vmem:[%s4246_s25 + $0x180] sm:$0xff] }
  0x2d   : > { %400 = vst [vmem:[#allocation2 + $0x610] sm:$0xff] %v4054_v0  ;;  %403 = vst [vmem:[#allocation2 + $0x628] sm:$0xff] %v4054_v0  ;;  %v641_v14 = vpack.c.bf16 %v4363_v12, %v4360_v11  ;;  %v594_v16 = vld [vmem:[%s4246_s25 + $0x190] sm:$0xff]  ;;  %v597_v17 = vld [vmem:[%s4246_s25 + $0x1a8] sm:$0xff]  ;;  %2193 = vmatpush1.bf16.msra.mxu0 %v4054_v0 }
  0x2e   : > { %406 = vst [vmem:[#allocation2 + $0x640] sm:$0xff] %v4054_v0  ;;  %409 = vst [vmem:[#allocation2 + $0x658] sm:$0xff] %v4054_v0  ;;  %v645_v23 = vpack.c.bf16 %v597_v17, %v594_v16  ;;  %v4391_v24 = vld [vmem:[%s4246_s25 + $0x1a0] sm:$0xff]  ;;  %v4400_v30 = vld [vmem:[%s4246_s25 + $0x1c8] sm:$0xff]  ;;  %2194 = vmatprep.subr.bf16.mxu0 %v637_v60 }
  0x2f   : > { %412 = vst [vmem:[#allocation2 + $0x670] sm:$0xff] %v4054_v0  ;;  %417 = vst [vmem:[#allocation2 + $0x698] sm:$0xff] %v4054_v0  ;;  %v600_v31 = vld [vmem:[%s4246_s25 + $0x1c0] sm:$0xff]  ;;  %v603_v32 = vld [vmem:[%s4246_s25 + $0x1d8] sm:$0xff] }
  0x30   : > { %420 = vst [vmem:[#allocation2 + $0x6b0] sm:$0xff] %v4054_v0  ;;  %423 = vst [vmem:[#allocation2 + $0x6c8] sm:$0xff] %v4054_v0  ;;  %v4411_v38 = vld [vmem:[%s4246_s25 + $0x1b8] sm:$0xff]  ;;  %v4414_v39 = vld [vmem:[%s4246_s25 + $0x1d0] sm:$0xff] }
  0x31   : > { %426 = vst [vmem:[#allocation2 + $0x6e0] sm:$0xff] %v4054_v0  ;;  %429 = vst [vmem:[#allocation2 + $0x6f8] sm:$0xff] %v4054_v0  ;;  %v647_v26 = vpack.c.bf16 %v4414_v39, %v4411_v38  ;;  %v4428_v40 = vld [vmem:[%s4246_s25 + $0x1f8] sm:$0xff]  ;;  %v606_v41 = vld [vmem:[%s4246_s25 + $0x1f0] sm:$0xff]  ;;  %2195 = vmatpush1.bf16.msra.mxu0 %v4054_v0 }
  0x32   : > { %432 = vst [vmem:[#allocation2 + $0x710] sm:$0xff] %v4054_v0  ;;  %435 = vst [vmem:[#allocation2 + $0x728] sm:$0xff] %v4054_v0  ;;  %v609_v47 = vld [vmem:[%s4246_s25 + $0x208] sm:$0xff]  ;;  %v4443_v51 = vld [vmem:[%s4246_s25 + $0x210] sm:$0xff] }
  0x33   : > { %438 = vst [vmem:[#allocation2 + $0x740] sm:$0xff] %v4054_v0  ;;  %443 = vst [vmem:[#allocation2 + $0x768] sm:$0xff] %v4054_v0  ;;  %v4436_v48 = vld [vmem:[%s4246_s25 + $0x1e8] sm:$0xff]  ;;  %v651_v49 = vpack.c.bf16 %v609_v47, %v606_v41  ;;  %v612_v61 = vld [vmem:[%s4246_s25 + $0x220] sm:$0xff] }
  0x34   : > { %446 = vst [vmem:[#allocation2 + $0x780] sm:$0xff] %v4054_v0  ;;  %449 = vst [vmem:[#allocation2 + $0x798] sm:$0xff] %v4054_v0  ;;  %v4446_v52 = vld [vmem:[%s4246_s25 + $0x228] sm:$0xff]  ;;  %v615_v62 = vld [vmem:[%s4246_s25 + $0x238] sm:$0xff] }
  0x35   : > { %452 = vst [vmem:[#allocation2 + $0x7b0] sm:$0xff] %v4054_v0  ;;  %455 = vst [vmem:[#allocation2 + $0x7c8] sm:$0xff] %v4054_v0  ;;  %v654_v34 = vpack.c.bf16 %v615_v62, %v612_v61  ;;  %v4465_v35 = vld [vmem:[%s4246_s25 + $0x230] sm:$0xff]  ;;  %v617_v16 = vld [vmem:[%s4246_s25 + $0x248] sm:$0x7] }
  0x36   : > { %458 = vst [vmem:[#allocation2 + $0x7e0] sm:$0xff] %v4054_v0  ;;  %461 = vst [vmem:[#allocation2 + $0x7f8] sm:$0xff] %v4054_v0  ;;  %v3461_v47 = vld [vmem:[%s4246_s25 + $0x268] sm:$0xff]  ;;  %v4540_v55 = vld [vmem:[%s4246_s25 + $0x2a0] sm:$0xff] }
  0x37   : > { %464 = vst [vmem:[#allocation2 + $0x810] sm:$0xff] %v4054_v0  ;;  %469 = vst [vmem:[#allocation2 + $0x838] sm:$0xff] %v4054_v0  ;;  %v3476_v3 = vld [vmem:[%s4246_s25 + $0x2e0] sm:$0xff]  ;;  %v3482_v53 = vld [vmem:[%s4246_s25 + $0x310] sm:$0xff] }
  0x38   : > { %472 = vst [vmem:[#allocation2 + $0x850] sm:$0xff] %v4054_v0  ;;  %475 = vst [vmem:[#allocation2 + $0x868] sm:$0xff] %v4054_v0  ;;  %v4615_v12 = vld [vmem:[%s4246_s25 + $0x320] sm:$0xff]  ;;  %v4649_v2 = vld [vmem:[%s4246_s25 + $0x350] sm:$0xff] }
  0x39   : > { %478 = vst [vmem:[#allocation2 + $0x880] sm:$0xff] %v4054_v0  ;;  %481 = vst [vmem:[#allocation2 + $0x898] sm:$0xff] %v4054_v0  ;;  %v4680_v41 = vld [vmem:[%s4246_s25 + $0x398] sm:$0xff]  ;;  %v4715_v56 = vld [vmem:[%s4246_s25 + $0x3c8] sm:$0xff] }
  0x3a   : > { %484 = vst [vmem:[#allocation2 + $0x8b0] sm:$0xff] %v4054_v0  ;;  %487 = vst [vmem:[#allocation2 + $0x8c8] sm:$0xff] %v4054_v0  ;;  %v4724_v38 = vld [vmem:[%s4246_s25 + $0x618] sm:$0xff]  ;;  %v4727_v39 = vld [vmem:[%s4246_s25 + $0x3a8] sm:$0xff] }
  0x3b   : > { %490 = vst [vmem:[#allocation2 + $0x8e0] sm:$0xff] %v4054_v0  ;;  %495 = vst [vmem:[#allocation2 + $0x908] sm:$0xff] %v4054_v0  ;;  %v4730_v61 = vld [vmem:[%s4246_s25 + $0x3c0] sm:$0xff] }
  0x3c   : > { %498 = vst [vmem:[#allocation2 + $0x920] sm:$0xff] %v4054_v0  ;;  %501 = vst [vmem:[#allocation2 + $0x938] sm:$0xff] %v4054_v0 }
  0x3d   : > { %504 = vst [vmem:[#allocation2 + $0x950] sm:$0xff] %v4054_v0  ;;  %507 = vst [vmem:[#allocation2 + $0x968] sm:$0xff] %v4054_v0 }
  0x3e   : > { %510 = vst [vmem:[#allocation2 + $0x980] sm:$0xff] %v4054_v0  ;;  %513 = vst [vmem:[#allocation2 + $0x998] sm:$0xff] %v4054_v0 }
  0x3f   : > { %516 = vst [vmem:[#allocation2 + $0x9b0] sm:$0xff] %v4054_v0  ;;  %519 = vst [vmem:[#allocation2 + $0x9c8] sm:$0xff] %v4054_v0 }
  0x40   : > { %520 = vst [vmem:[#allocation2 + $0x9d0] sm:$0xff] %v4054_v0  ;;  %521 = vst [vmem:[#allocation2 + $0x9d8] sm:$0xff] %v4054_v0 }
  0x41   : > { %522 = vst [vmem:[#allocation2 + $0x9e0] sm:$0xff] %v4054_v0  ;;  %523 = vst [vmem:[#allocation2 + $0x9e8] sm:$0xff] %v4054_v0 }
  0x42   : > { %524 = vst [vmem:[#allocation2 + $0x9f0] sm:$0xff] %v4054_v0  ;;  %525 = vst [vmem:[#allocation2 + $0x9f8] sm:$0xff] %v4054_v0 }
  0x43   : > { %526 = vst [vmem:[#allocation2 + $0xa00] sm:$0xff] %v4054_v0  ;;  %527 = vst [vmem:[#allocation2 + $0xa08] sm:$0xff] %v4054_v0 }
  0x44   : > { %528 = vst [vmem:[#allocation2 + $0xa10] sm:$0xff] %v4054_v0  ;;  %529 = vst [vmem:[#allocation2 + $0xa18] sm:$0xff] %v4054_v0 }
  0x45   : > { %530 = vst [vmem:[#allocation2 + $0xa20] sm:$0xff] %v4054_v0  ;;  %531 = vst [vmem:[#allocation2 + $0xa28] sm:$0xff] %v4054_v0 }
  0x46   : > { %532 = vst [vmem:[#allocation2 + $0xa30] sm:$0xff] %v4054_v0  ;;  %533 = vst [vmem:[#allocation2 + $0xa38] sm:$0xff] %v4054_v0  ;;  %v698_v60 = vld [vmem:[#allocation2 + $0x9c8] sm:$0x3] }
  0x47   : > { %534 = vst [vmem:[#allocation2 + $0xa40] sm:$0xff] %v4054_v0  ;;  %535 = vst [vmem:[#allocation2 + $0xa48] sm:$0xff] %v4054_v0  ;;  %v701_v17 = vld [vmem:[#allocation2 + $0x9d0] sm:$0x3] }
  0x48   : > { %536 = vst [vmem:[#allocation2 + $0xa50] sm:$0xff] %v4054_v0  ;;  %537 = vst [vmem:[#allocation2 + $0xa58] sm:$0xff] %v4054_v0 }
  0x49   : > { %538 = vst [vmem:[#allocation2 + $0xa60] sm:$0xff] %v4054_v0  ;;  %539 = vst [vmem:[#allocation2 + $0xa68] sm:$0xff] %v4054_v0 }
  0x4a   : > { %540 = vst [vmem:[#allocation2 + $0xa70] sm:$0xff] %v4054_v0  ;;  %541 = vst [vmem:[#allocation2 + $0xa78] sm:$0xff] %v4054_v0 }
  0x4b   : > { %542 = vst [vmem:[#allocation2 + $0xa80] sm:$0xff] %v4054_v0  ;;  %661 = vst.msk [vmem:[#allocation2 + $0x18] sm:$0xff] %vm660_vm1, %v621_v9  ;;  %v640_v9 = vpack.c.bf16 %v4351_v7, %v4346_v4  ;;  %v4496_v4 = vld [vmem:[%s4246_s25 + $0x4c8] sm:$0xff]  ;;  %v4499_v7 = vld [vmem:[%s4246_s25 + $0x258] sm:$0xff] }
  0x4c   : > { %664 = vst.msk [vmem:[#allocation2 + $0xe8] sm:$0xff] %vm660_vm1, %v624_v18  ;;  %667 = vst.msk [vmem:[#allocation2 + $0x1b8] sm:$0xff] %vm660_vm1, %v627_v27  ;;  %v4374_v18 = vld [vmem:[%s4246_s25 + $0x198] sm:$0xff]  ;;  %v4394_v27 = vld [vmem:[%s4246_s25 + $0x1b0] sm:$0xff] }
  0x4d   : > { %670 = vst.msk [vmem:[#allocation2 + $0x288] sm:$0xff] %vm660_vm1, %v630_v36  ;;  %673 = vst.msk [vmem:[#allocation2 + $0x358] sm:$0xff] %vm660_vm1, %v633_v45  ;;  %v643_v20 = vpack.c.bf16 %v4374_v18, %v4371_v15  ;;  %v646_v33 = vpack.c.bf16 %v4400_v30, %v4394_v27  ;;  %v648_v36 = vpack.c.bf16 %v603_v32, %v600_v31  ;;  %2196 = vmatprep.subr.bf16.mxu0 %v640_v9  ;;  %v4483_v31 = vld [vmem:[%s4246_s25 + $0x260] sm:$0xff]  ;;  %v4486_v32 = vld [vmem:[%s4246_s25 + $0x278] sm:$0xff] }
  0x4e   : > { %676 = vst.msk [vmem:[#allocation2 + $0x428] sm:$0xff] %vm660_vm1, %v636_v54  ;;  %679 = vst.msk [vmem:[#allocation2 + $0x4f8] sm:$0xff] %vm660_vm1, %v639_v63  ;;  %v4461_v63 = vld [vmem:[%s4246_s25 + $0x218] sm:$0xff]  ;;  %2197 = vmatpush1.bf16.msra.mxu0 %v4054_v0  ;;  %v3470_v15 = vld [vmem:[%s4246_s25 + $0x2b0] sm:$0xff] }
  0x4f   : > { %vm4385_vm4 = vmand %vm695_vm2, %vm696_vm3  ;;  %685 = vst.msk [vmem:[#allocation2 + $0x698] sm:$0xff] %vm660_vm1, %v645_v23  ;;  %v656_v23 = vpack.c.bf16 %v617_v16, %v617_v16  ;;  %2198 = vmatprep.subr.bf16.mxu0 %v643_v20  ;;  %v4550_v16 = vld [vmem:[%s4246_s25 + $0x2d8] sm:$0xff] }
  0x50   : > { %vm4418_vm6 = vmand %vm704_vm5, %vm696_vm3  ;;  %688 = vst.msk [vmem:[#allocation2 + $0x768] sm:$0xff] %vm660_vm1, %v648_v36  ;;  %v4489_v36 = vld [vmem:[%s4246_s25 + $0x4b0] sm:$0xff] }
  0x51   : > { %691 = vst.msk [vmem:[#allocation2 + $0x838] sm:$0xff] %vm660_vm1, %v651_v49  ;;  %694 = vst.msk [vmem:[#allocation2 + $0x908] sm:$0xff] %vm660_vm1, %v654_v34  ;;  %v702_v9 = vsel %vm4385_vm4, %v656_v23, %v701_v17  ;;  %v3464_v49 = vld [vmem:[%s4246_s25 + $0x280] sm:$0xff]  ;;  %v4517_v34 = vld [vmem:[%s4246_s25 + $0x2a8] sm:$0xff] }
  0x52   : > { %v1834_v50 = vld [vmem:[#allocation2 + $0x18] sm:$0xff]  ;;  %703 = vst [vmem:[#allocation2 + $0x9d0] sm:$0x3] %v702_v9  ;;  %v787_v62 = vpack.c.bf16 %v3464_v49, %v3461_v47  ;;  %2199 = vmatpush1.bf16.msra.mxu0 %v4054_v0  ;;  %v4559_v23 = vld [vmem:[%s4246_s25 + $0x528] sm:$0xff]  ;;  %v4574_v9 = vld [vmem:[%s4246_s25 + $0x2d0] sm:$0xff] }
  0x53   : > { %2225 = vmatprep.subr.bf16.mxu1 %v1834_v50  ;;  %v1860_v58 = vld [vmem:[#allocation2 + $0xe8] sm:$0xff]  ;;  %v1886_v5 = vld [vmem:[#allocation2 + $0x1b8] sm:$0xff]  ;;  %v4440_v50 = vld [vmem:[%s4246_s25 + $0x200] sm:$0xff]  ;;  %2200 = vmatprep.subr.bf16.mxu0 %v646_v33  ;;  %7183 = vst [vmem:[#allocation7_spill] sm:$0xff] %v4724_v38 }
  0x54   : > { %2226 = vmatpush1.bf16.msra.mxu1 %v620_v10  ;;  %v591_v10 = vld [vmem:[%s4246_s25 + $0x178] sm:$0xff]  ;;  %v1912_v22 = vld [vmem:[#allocation2 + $0x288] sm:$0xff]  ;;  %v650_v54 = vpack.c.bf16 %v4440_v50, %v4436_v48  ;;  %826 = vst.msk [vmem:[#allocation2 + $0x30] sm:$0xff] %vm660_vm1, %v787_v62  ;;  %v4587_v49 = vld [vmem:[%s4246_s25 + $0x540] sm:$0xff] }
  0x55   : > { %2227 = vmatprep.subr.bf16.mxu1 %v1860_v58  ;;  %v642_v13 = vpack.c.bf16 %v591_v10, %v588_v8  ;;  %v1938_v42 = vld [vmem:[#allocation2 + $0x358] sm:$0xff]  ;;  %v652_v58 = vpack.c.bf16 %v4446_v52, %v4443_v51  ;;  %v618_v8 = vld [vmem:[%s4246_s25 + $0x250] sm:$0x7]  ;;  %v3473_v47 = vld [vmem:[%s4246_s25 + $0x2c8] sm:$0xff] }
  0x56   : > { %v706_v10 = vld [vmem:[#allocation2 + $0x9d8] sm:$0x3]  ;;  %v793_v30 = vpack.c.bf16 %v3476_v3, %v3473_v47  ;;  %v4584_v33 = vld [vmem:[%s4246_s25 + $0x308] sm:$0xff]  ;;  %2201 = vmatpush1.bf16.msra.mxu0 %v4054_v0  ;;  %v4632_v47 = vld [vmem:[%s4246_s25 + $0x330] sm:$0xff] }
  0x57   : > { %682 = vst.msk [vmem:[#allocation2 + $0x5c8] sm:$0xff] %vm660_vm1, %v642_v13  ;;  %v657_v13 = vpack.c.bf16 %v618_v8, %v618_v8  ;;  %v1990_v43 = vld [vmem:[#allocation2 + $0x4f8] sm:$0xff]  ;;  %v4534_v8 = vld [vmem:[%s4246_s25 + $0x288] sm:$0xff]  ;;  %v3488_v3 = vld [vmem:[%s4246_s25 + $0x340] sm:$0xff] }
  0x58   : > { %2228 = vmatpush1.bf16.msra.mxu1 %v623_v19  ;;  %v4381_v19 = vld [vmem:[%s4246_s25 + $0x188] sm:$0xff]  ;;  %v2042_v27 = vld [vmem:[#allocation2 + $0x698] sm:$0xff]  ;;  %832 = vst.msk [vmem:[#allocation2 + $0x1d0] sm:$0xff] %vm660_vm1, %v793_v30  ;;  %v4666_v51 = vld [vmem:[%s4246_s25 + $0x360] sm:$0xff] }
  0x59   : > { %2229 = vmatprep.subr.bf16.mxu1 %v1886_v5  ;;  %v644_v29 = vpack.c.bf16 %v4391_v24, %v4381_v19  ;;  %v1964_v5 = vld [vmem:[#allocation2 + $0x428] sm:$0xff]  ;;  %v707_v44 = vsel %vm4418_vm6, %v657_v13, %v706_v10  ;;  %v4547_v13 = vld [vmem:[%s4246_s25 + $0x2c0] sm:$0xff]  ;;  %v4629_v30 = vld [vmem:[%s4246_s25 + $0x318] sm:$0xff] }
  0x5a   : > { %708 = vst [vmem:[#allocation2 + $0x9d8] sm:$0x3] %v707_v44  ;;  %v3479_v44 = vld [vmem:[%s4246_s25 + $0x2f8] sm:$0xff]  ;;  %v4691_v52 = vld [vmem:[%s7040_s0] ss:$8 sps:$4 sm:$0xff]   ;;  %v4702_v17 = vld [vmem:[%s4246_s25 + $0x390] sm:$0xff] }
  0x5b   : > { %v796_v11 = vpack.c.bf16 %v3482_v53, %v3479_v44  ;;  %v2094_v62 = vld [vmem:[#allocation2 + $0x838] sm:$0xff]  ;;  %v4652_v44 = vld [vmem:[%s4246_s25 + $0x368] sm:$0xff]  ;;  %7181 = vst [vmem:[#allocation5_spill] sm:$0xff] %v4691_v52  ;;  %v4746_v48 = vld [vmem:[%s4246_s25 + $0x3e0] sm:$0xff] }
  0x5c   : > { %2230 = vmatpush1.bf16.msra.mxu1 %v626_v28  ;;  %v4425_v28 = vld [vmem:[%s4246_s25 + $0x1e0] sm:$0xff]  ;;  %v4660_v24 = vld [vmem:[%s4246_s25 + $0x5b8] sm:$0xff]  ;;  %v2120_v20 = vld [vmem:[#allocation2 + $0x908] sm:$0xff] }
  0x5d   : > { %2231 = vmatprep.subr.bf16.mxu1 %v1912_v22  ;;  %v649_v45 = vpack.c.bf16 %v4428_v40, %v4425_v28  ;;  %v4621_v28 = vld [vmem:[%s4246_s25 + $0x570] sm:$0xff]  ;;  %835 = vst.msk [vmem:[#allocation2 + $0x2a0] sm:$0xff] %vm660_vm1, %v796_v11  ;;  %v3485_v40 = vld [vmem:[%s4246_s25 + $0x328] sm:$0xff] }
  0x5e   : > { %v2016_v18 = vld [vmem:[#allocation2 + $0x5c8] sm:$0xff]  ;;  %v799_v11 = vpack.c.bf16 %v3488_v3, %v3485_v40  ;;  %v3494_v3 = vld [vmem:[%s4246_s25 + $0x370] sm:$0xff]  ;;  %v4676_v40 = vld [vmem:[%s4246_s25 + $0x380] sm:$0xff] }
  0x5f   : > { %2202 = vmatprep.subr.bf16.mxu0 %v649_v45  ;;  %v4626_v45 = vld [vmem:[%s4246_s25 + $0x588] sm:$0xff]  ;;  %v4777_v38 = vld [vmem:[%s4246_s25 + $0x410] sm:$0xff] }
  0x60   : > { %2232 = vmatpush1.bf16.msra.mxu1 %v629_v37  ;;  %v616_v37 = vld [vmem:[%s4246_s25 + $0x240] sm:$0x7]  ;;  %2203 = vmatpush1.bf16.msra.mxu0 %v4054_v0  ;;  %838 = vst.msk [vmem:[#allocation2 + $0x370] sm:$0xff] %vm660_vm1, %v799_v11  ;;  %v4683_v11 = vld [vmem:[%s4246_s25 + $0x5d0] sm:$0xff] }
  0x61   : > { %2233 = vmatprep.subr.bf16.mxu1 %v1938_v42  ;;  %v655_v57 = vpack.c.bf16 %v616_v37, %v616_v37  ;;  %v4506_v42 = vld [vmem:[%s4246_s25 + $0x270] sm:$0xff]  ;;  %v4520_v37 = vld [vmem:[%s4246_s25 + $0x4e0] sm:$0xff]  ;;  %2204 = vmatprep.subr.bf16.mxu0 %v652_v58  ;;  %v4699_v58 = vld [vmem:[%s4246_s25 + $0x378] sm:$0xff] }
  0x62   : > { %v2146_v50 = vld [vmem:[#allocation2 + $0x9d8] sm:$0xff] }
  0x63   : > { %v699_v22 = vsel %vm4385_vm4, %v655_v57, %v698_v60  ;;  %v4531_v60 = vld [vmem:[%s4246_s25 + $0x4f8] sm:$0xff] }
  0x64   : > { %2234 = vmatpush1.bf16.msra.mxu1 %v632_v46  ;;  %700 = vst [vmem:[#allocation2 + $0x9c8] sm:$0x3] %v699_v22  ;;  %v786_v46 = vpack.c.bf16 %v4486_v32, %v4483_v31  ;;  %v4556_v22 = vld [vmem:[%s4246_s25 + $0x510] sm:$0xff]  ;;  %2205 = vmatpush1.bf16.msra.mxu0 %v4054_v0  ;;  %v4749_v31 = vld [vmem:[%s4246_s25 + $0x3f8] sm:$0xff] }
  0x65   : > { %2235 = vmatprep.subr.bf16.mxu1 %v1964_v5  ;;  %v4514_v5 = vld [vmem:[%s4246_s25 + $0x290] sm:$0xff] }
  0x66   : > { %v4752_v32 = vld [vmem:[%s4246_s25 + $0x630] sm:$0xff] }
  0x67   : > { %7184 = vst [vmem:[#allocation8_spill] sm:$0xff] %v4752_v32  ;;  %v7191_v32 = vpack.c.bf16 %v4540_v55, %v4534_v8  ;;  %v4832_v8 = vld [vmem:[%s4246_s25 + $0x438] sm:$0xff]  ;;  %v4835_v55 = vld [vmem:[%s4246_s25 + $0x450] sm:$0xff] }
  0x68   : > { %2236 = vmatpush1.bf16.msra.mxu1 %v635_v59  ;;  %v3467_v59 = vld [vmem:[%s4246_s25 + $0x298] sm:$0xff] }
  0x69   : > { %2237 = vmatprep.subr.bf16.mxu1 %v1990_v43  ;;  %v790_v10 = vpack.c.bf16 %v3470_v15, %v3467_v59  ;;  %v4562_v43 = vld [vmem:[%s4246_s25 + $0x2b8] sm:$0xff]  ;;  %v4596_v15 = vld [vmem:[%s4246_s25 + $0x2e8] sm:$0xff] }
  0x6a   : > { %v4593_v59 = vld [vmem:[%s4246_s25 + $0x558] sm:$0xff] }
  0x6b   : > { %829 = vst.msk [vmem:[#allocation2 + $0x100] sm:$0xff] %vm660_vm1, %v790_v10  ;;  %v2068_v10 = vld [vmem:[#allocation2 + $0x768] sm:$0xff] }
  0x6c   : > { %2238 = vmatpush1.bf16.msra.mxu1 %v638_v6  ;;  %v4581_v6 = vld [vmem:[%s4246_s25 + $0x2f0] sm:$0xff]  ;;  %v2144_v53 = vld [vmem:[#allocation2 + $0x9c8] sm:$0xff] }
  0x6d   : > { %2239 = vmatprep.subr.bf16.mxu1 %v2016_v18  ;;  %v4599_v18 = vld [vmem:[%s4246_s25 + $0x300] sm:$0xff]  ;;  %2206 = vmatprep.subr.bf16.mxu0 %v2144_v53 }
  0x6e   : > { %v3500_v53 = vld [vmem:[%s4246_s25 + $0x3a0] sm:$0xff]  ;;  %2207 = vmatpush1.bf16.msra.mxu0 %v4054_v0  ;;  %v4761_v0 = vld [vmem:[%s4246_s25 + $0x3d8] sm:$0xff] }
  0x6f   : > { %2268 = vmatprep.subr.bf16.mxu0 %v786_v46  ;;  %v3509_v46 = vld [vmem:[%s4246_s25 + $0x3e8] sm:$0xff] }
  0x70   : > { %2240 = vmatpush1.bf16.msra.mxu1 %v641_v14  ;;  %v4618_v14 = vld [vmem:[%s4246_s25 + $0x338] sm:$0xff] }
  0x71   : > { %2241 = vmatprep.subr.bf16.mxu1 %v2042_v27  ;;  %v4655_v27 = vld [vmem:[%s4246_s25 + $0x5a0] sm:$0xff]  ;;  %2215 = vmatmul.mubr.bf16.vlgmr.msra.gmra.mrb[0].mxu0 %v4691_v52 }
  0x72   : > { %3988 = vmatprep.mubr.msk.bf16.mxu0 %vm2178_vm0, %v4233_v1 }
  0x74   : > { %2242 = vmatpush1.bf16.msra.mxu1 %v644_v29  ;;  %v4663_v29 = vld [vmem:[%s4246_s25 + $0x348] sm:$0xff] }
  0x75   : > { %2243 = vmatprep.subr.bf16.mxu1 %v2068_v10  ;;  %v3491_v10 = vld [vmem:[%s4246_s25 + $0x358] sm:$0xff] }
  0x76   : > { %v802_v19 = vpack.c.bf16 %v3494_v3, %v3491_v10  ;;  %v4696_v3 = vld [vmem:[%s4246_s25 + $0x5e8] sm:$0xff]  ;;  %v4712_v10 = vld [vmem:[%s4246_s25 + $0x3b0] sm:$0xff] }
  0x78   : > { %2244 = vmatpush1.bf16.msra.mxu1 %v647_v26  ;;  %841 = vst.msk [vmem:[#allocation2 + $0x440] sm:$0xff] %vm660_vm1, %v802_v19  ;;  %v3497_v26 = vld [vmem:[%s4246_s25 + $0x388] sm:$0xff]  ;;  %v3506_v19 = vld [vmem:[%s4246_s25 + $0x3d0] sm:$0xff] }
  0x79   : > { %2245 = vmatprep.subr.bf16.mxu1 %v2094_v62  ;;  %v805_v57 = vpack.c.bf16 %v3500_v53, %v3497_v26  ;;  %v4718_v62 = vld [vmem:[%s4246_s25 + $0x600] sm:$0xff]  ;;  %v3503_v53 = vld [vmem:[%s4246_s25 + $0x3b8] sm:$0xff]  ;;  %v4764_v26 = vld [vmem:[%s4246_s25 + $0x3f0] sm:$0xff] }
  0x7a   : > { %7182 = vst [vmem:[#allocation6_spill] sm:$0xff] %v4718_v62  ;;  %v3512_v62 = vld [vmem:[%s4246_s25 + $0x400] sm:$0xff] }
  0x7b   : > { %844 = vst.msk [vmem:[#allocation2 + $0x510] sm:$0xff] %vm660_vm1, %v805_v57  ;;  %v4758_v57 = vld [vmem:[%s4246_s25 + $0x648] sm:$0xff] }
  0x7c   : > { %2246 = vmatpush1.bf16.msra.mxu1 %v650_v54  ;;  %v808_v54 = vpack.c.bf16 %v3506_v19, %v3503_v53  ;;  %7185 = vst [vmem:[#allocation9_spill] sm:$0xff] %v4758_v57  ;;  %v4788_v19 = vld [vmem:[%s4246_s25 + $0x428] sm:$0xff]  ;;  %v4791_v53 = vld [vmem:[%s4246_s25 + $0x660] sm:$0xff]  ;;  %v4818_v57 = vld [vmem:[%s4246_s25 + $0x458] sm:$0xff] }
  0x7d   : > { %2247 = vmatprep.subr.bf16.mxu1 %v2120_v20  ;;  %v7186_v20 = vpack.c.bf16 %v4506_v42, %v4499_v7  ;;  %v7187_v7 = vpack.c.bf16 %v4465_v35, %v4461_v63  ;;  %v2145_v42 = vld [vmem:[#allocation2 + $0x9d0] sm:$0xff]  ;;  %7189 = vst [vmem:[#allocation10_spill] sm:$0xff] %v4791_v53  ;;  %v4796_v63 = vld [vmem:[%s4246_s25 + $0x678] sm:$0xff]  ;;  %v4799_v35 = vld [vmem:[%s4246_s25 + $0x408] sm:$0xff] }
  0x7e   : > { %847 = vst.msk [vmem:[#allocation2 + $0x5e0] sm:$0xff] %vm660_vm1, %v808_v54  ;;  %v7188_v54 = vpack.c.bf16 %v4517_v34, %v4514_v5  ;;  %7190 = vst [vmem:[#allocation11_spill] sm:$0xff] %v4796_v63  ;;  %v4821_v5 = vld [vmem:[%s4246_s25 + $0x690] sm:$0xff]  ;;  %v7192_v34 = vpack.c.bf16 %v4550_v16, %v4547_v13  ;;  %v4829_v63 = vld [vmem:[%s4246_s25 + $0x6a8] sm:$0xff] }
  0x7f   : > { %2269 = vmatpush1.bf16.msra.mxu0 %v7186_v20  ;;  %v811_v20 = vpack.c.bf16 %v3512_v62, %v3509_v46  ;;  %v3515_v62 = vld [vmem:[%s4246_s25 + $0x418] sm:$0xff]  ;;  %v4812_v46 = vld [vmem:[%s4246_s25 + $0x440] sm:$0xff]  ;;  %v4851_v53 = vld [vmem:[%s4246_s25 + $0x488] sm:$0xff] }
  0x80   : > { %2248 = vmatpush1.bf16.msra.mxu1 %v7187_v7  ;;  %2270 = vmatprep.subr.bf16.mxu0 %v7188_v54  ;;  %v4802_v7 = vld [vmem:[%s4246_s25 + $0x420] sm:$0xff]  ;;  %v1837_v54 = vld [vmem:[#allocation2 + $0x30] sm:$0xff]  ;;  %v4866_v13 = vld [vmem:[%s4246_s25 + $0x468] sm:$0xff] }
  0x81   : > { %2249 = vmatprep.subr.bf16.mxu1 %v2146_v50  ;;  %850 = vst.msk [vmem:[#allocation2 + $0x6b0] sm:$0xff] %vm660_vm1, %v811_v20  ;;  %v3518_v50 = vld [vmem:[%s4246_s25 + $0x430] sm:$0xff]  ;;  %v3532_v16 = vld [vmem:[%s4246_s25 + $0x4a0] sm:$0x7] }
  0x82   : > { %v814_v20 = vpack.c.bf16 %v3518_v50, %v3515_v62  ;;  %v4848_v62 = vld [vmem:[%s4246_s25 + $0x470] sm:$0xff] }
  0x83   : > { %2271 = vmatpush1.bf16.msra.mxu0 %v7191_v32  ;;  %v7193_v32 = vpack.c.bf16 %v4496_v4, %v4489_v36  ;;  %v4854_v36 = vld [vmem:[%s4246_s25 + $0x6c0] sm:$0xff]  ;;  %v7195_v4 = vpack.c.bf16 %v4574_v9, %v4562_v43  ;;  %v3531_v9 = vld [vmem:[%s4246_s25 + $0x498] sm:$0x7] }
  0x84   : > { %2250 = vmatpush1.bf16.msra.mxu1 %v2145_v42  ;;  %2272 = vmatprep.subr.bf16.mxu0 %v7192_v34  ;;  %853 = vst.msk [vmem:[#allocation2 + $0x780] sm:$0xff] %vm660_vm1, %v814_v20  ;;  %v3521_v42 = vld [vmem:[%s4246_s25 + $0x448] sm:$0xff]  ;;  %v3524_v34 = vld [vmem:[%s4246_s25 + $0x460] sm:$0xff]  ;;  %7194 = vst [vmem:[#allocation12_spill] sm:$0xff] %v4854_v36 }
  0x85   : > { %2311 = vmatprep.subr.bf16.mxu1 %v7193_v32  ;;  %v817_v50 = vpack.c.bf16 %v3524_v34, %v3521_v42  ;;  %v4863_v32 = vld [vmem:[%s4246_s25 + $0x6d8] sm:$0xff]  ;;  %v4869_v42 = vld [vmem:[%s4246_s25 + $0x480] sm:$0xff]  ;;  %v7197_v34 = vpack.c.bf16 %v4584_v33, %v4581_v6  ;;  %v3530_v20 = vld [vmem:[%s4246_s25 + $0x490] sm:$0xff]  ;;  %v822_v33 = vpack.c.bf16 %v3532_v16, %v3532_v16 }
  0x86   : > { %7196 = vst [vmem:[#allocation13_spill] sm:$0xff] %v4863_v32  ;;  %v1020_v36 = vld [vmem:[#allocation2 + $0x9f8] sm:$0x3]  ;;  %v860_v32 = vld [vmem:[#allocation2 + $0x9e0] sm:$0x3] }
  0x87   : > { %2258 = vmatmul.mubr.bf16.vlgmr.msra.gmra.mrb[0].mxu1 %v4691_v52  ;;  %2273 = vmatpush1.bf16.msra.mxu0 %v7195_v4  ;;  %856 = vst.msk [vmem:[#allocation2 + $0x850] sm:$0xff] %vm660_vm1, %v817_v50  ;;  %v3527_v4 = vld [vmem:[%s4246_s25 + $0x478] sm:$0xff]  ;;  %v7198_v52 = vpack.c.bf16 %v4531_v60, %v4520_v37  ;;  %v3606_v50 = vld [vmem:[%s4246_s25 + $0x6f0] sm:$0x7]  ;;  %v7199_v37 = vpack.c.bf16 %v4599_v18, %v4596_v15  ;;  %v3533_v16 = vld [vmem:[%s4246_s25 + $0x4a8] sm:$0x7] }
  0x88   : > { %2312 = vmatpush1.bf16.msra.mxu1 %v1837_v54  ;;  %2274 = vmatprep.subr.bf16.mxu0 %v7197_v34  ;;  %v1863_v54 = vld [vmem:[#allocation2 + $0x100] sm:$0xff]  ;;  %v820_v6 = vpack.c.bf16 %v3530_v20, %v3527_v4  ;;  %v863_v34 = vld [vmem:[#allocation2 + $0x9e8] sm:$0x3]  ;;  %v981_v43 = vpack.c.bf16 %v3606_v50, %v3606_v50  ;;  %v1889_v4 = vld [vmem:[#allocation2 + $0x1d0] sm:$0xff]  ;;  %v7200_v50 = vpack.c.bf16 %v4618_v14, %v4615_v12 }
  0x89   : > { %2313 = vmatprep.subr.bf16.mxu1 %v7198_v52  ;;  %3989 = vmatprep.mubr.msk.bf16.mxu1 %vm2178_vm0, %v4233_v1  ;;  %v864_v60 = vsel %vm4385_vm4, %v822_v33, %v863_v34  ;;  %v821_v52 = vpack.c.bf16 %v3531_v9, %v3531_v9  ;;  %v866_v1 = vld [vmem:[#allocation2 + $0x9f0] sm:$0x3]  ;;  %v3536_v20 = vld [vmem:[%s4246_s25 + $0x4c0] sm:$0xff]  ;;  %v823_v18 = vpack.c.bf16 %v3533_v16, %v3533_v16  ;;  %v3539_v9 = vld [vmem:[%s4246_s25 + $0x4d8] sm:$0xff] }
  0x8a   : > { %859 = vst.msk [vmem:[#allocation2 + $0x920] sm:$0xff] %vm660_vm1, %v820_v6  ;;  %865 = vst [vmem:[#allocation2 + $0x9e8] sm:$0x3] %v864_v60  ;;  %v1021_v15 = vsel %vm4385_vm4, %v981_v43, %v1020_v36  ;;  %v4904_v6 = vld [vmem:[%s4246_s25 + $0x710] sm:$0xff]  ;;  %v7201_v33 = vpack.c.bf16 %v4559_v23, %v4556_v22  ;;  %v947_v14 = vpack.c.bf16 %v3539_v9, %v3536_v20  ;;  %v4915_v36 = vld [vmem:[%s4246_s25 + $0x4b8] sm:$0xff] }
  0x8b   : > { %2275 = vmatpush1.bf16.msra.mxu0 %v7199_v37  ;;  %1022 = vst [vmem:[#allocation2 + $0x9f8] sm:$0x3] %v1021_v15  ;;  %v861_v12 = vsel %vm4385_vm4, %v821_v52, %v860_v32  ;;  %v4918_v43 = vld [vmem:[%s4246_s25 + $0x4d0] sm:$0xff]  ;;  %v867_v34 = vsel %vm4418_vm6, %v823_v18, %v866_v1  ;;  %v4927_v32 = vld [vmem:[%s4246_s25 + $0x708] sm:$0xff]  ;;  %v4930_v37 = vld [vmem:[%s4246_s25 + $0x720] sm:$0xff]  ;;  %v7202_v16 = vpack.c.bf16 %v4632_v47, %v4629_v30 }
  0x8c   : > { %2314 = vmatpush1.bf16.msra.mxu1 %v1863_v54  ;;  %2276 = vmatprep.subr.bf16.mxu0 %v7200_v50  ;;  %v4912_v54 = vld [vmem:[%s4246_s25 + $0x728] sm:$0xff]  ;;  %862 = vst [vmem:[#allocation2 + $0x9e0] sm:$0x3] %v861_v12  ;;  %v3542_v60 = vld [vmem:[%s4246_s25 + $0x4f0] sm:$0xff]  ;;  %v1915_v52 = vld [vmem:[#allocation2 + $0x2a0] sm:$0xff]  ;;  %v7203_v15 = vpack.c.bf16 %v4652_v44, %v4649_v2 }
  0x8d   : > { %2315 = vmatprep.subr.bf16.mxu1 %v7201_v33  ;;  %868 = vst [vmem:[#allocation2 + $0x9f0] sm:$0x3] %v867_v34  ;;  %986 = vst.msk [vmem:[#allocation2 + $0x48] sm:$0xff] %vm660_vm1, %v947_v14  ;;  %v3545_v20 = vld [vmem:[%s4246_s25 + $0x508] sm:$0xff]  ;;  %v4941_v50 = vld [vmem:[%s4246_s25 + $0x740] sm:$0xff]  ;;  %v7204_v33 = vpack.c.bf16 %v4593_v59, %v4587_v49 }
  0x8e   : > { %v950_v47 = vpack.c.bf16 %v3545_v20, %v3542_v60  ;;  %v4947_v30 = vld [vmem:[%s4246_s25 + $0x758] sm:$0xff]  ;;  %v4950_v18 = vld [vmem:[%s4246_s25 + $0x4e8] sm:$0xff]  ;;  %v4953_v9 = vld [vmem:[%s4246_s25 + $0x500] sm:$0xff]  ;;  %v7205_v60 = vpack.c.bf16 %v4666_v51, %v4663_v29  ;;  %v7207_v51 = vpack.c.bf16 %v4626_v45, %v4621_v28  ;;  %v7208_v28 = vpack.c.bf16 %v4702_v17, %v4699_v58 }
  0x8f   : > { %2277 = vmatpush1.bf16.msra.mxu0 %v7202_v16  ;;  %v4963_v44 = vld [vmem:[%s4246_s25 + $0x738] sm:$0xff]  ;;  %v4966_v12 = vld [vmem:[%s4246_s25 + $0x750] sm:$0xff]  ;;  %v3548_v14 = vld [vmem:[%s4246_s25 + $0x520] sm:$0xff] }
  0x90   : > { %2316 = vmatpush1.bf16.msra.mxu1 %v1889_v4  ;;  %2278 = vmatprep.subr.bf16.mxu0 %v7203_v15  ;;  %989 = vst.msk [vmem:[#allocation2 + $0x118] sm:$0xff] %vm660_vm1, %v950_v47  ;;  %v3551_v49 = vld [vmem:[%s4246_s25 + $0x538] sm:$0xff]  ;;  %v4974_v59 = vld [vmem:[%s4246_s25 + $0x770] sm:$0xff]  ;;  %v4980_v20 = vld [vmem:[%s4246_s25 + $0x788] sm:$0xff]  ;;  %v7206_v47 = vpack.c.bf16 %v4680_v41, %v4676_v40 }
  0x91   : > { %2317 = vmatprep.subr.bf16.mxu1 %v7204_v33  ;;  %v953_v16 = vpack.c.bf16 %v3551_v49, %v3548_v14  ;;  %v4983_v15 = vld [vmem:[%s4246_s25 + $0x518] sm:$0xff]  ;;  %v4991_v34 = vld [vmem:[%s4246_s25 + $0x530] sm:$0xff]  ;;  %v4994_v29 = vld [vmem:[%s4246_s25 + $0x768] sm:$0xff]  ;;  %v7209_v49 = vpack.c.bf16 %v4715_v56, %v4712_v10 }
  0x92   : > { %v1941_v14 = vld [vmem:[#allocation2 + $0x370] sm:$0xff]  ;;  %v5003_v40 = vld [vmem:[%s4246_s25 + $0x780] sm:$0xff]  ;;  %v3563_v17 = vld [vmem:[%s4246_s25 + $0x598] sm:$0xff] }
  0x93   : > { %2279 = vmatpush1.bf16.msra.mxu0 %v7205_v60  ;;  %992 = vst.msk [vmem:[#allocation2 + $0x1e8] sm:$0xff] %vm660_vm1, %v953_v16  ;;  %v3557_v60 = vld [vmem:[%s4246_s25 + $0x568] sm:$0xff]  ;;  %v5016_v16 = vld [vmem:[%s4246_s25 + $0x7b8] sm:$0xff]  ;;  %v5027_v58 = vld [vmem:[%s4246_s25 + $0x560] sm:$0xff] }
  0x94   : > { %2318 = vmatpush1.bf16.msra.mxu1 %v1915_v52  ;;  %2280 = vmatprep.subr.bf16.mxu0 %v7206_v47  ;;  %v3554_v52 = vld [vmem:[%s4246_s25 + $0x550] sm:$0xff]  ;;  %v5013_v47 = vld [vmem:[%s4246_s25 + $0x7a0] sm:$0xff]  ;;  %v5049_v1 = vld [vmem:[%s4246_s25 + $0x7e8] sm:$0xff] }
  0x95   : > { %2319 = vmatprep.subr.bf16.mxu1 %v7207_v51  ;;  %v956_v45 = vpack.c.bf16 %v3557_v60, %v3554_v52  ;;  %v5019_v51 = vld [vmem:[%s4246_s25 + $0x548] sm:$0xff]  ;;  %v5030_v52 = vld [vmem:[%s4246_s25 + $0x798] sm:$0xff]  ;;  %v5033_v60 = vld [vmem:[%s4246_s25 + $0x7b0] sm:$0xff] }
  0x96   : > { %v5046_v4 = vld [vmem:[%s4246_s25 + $0x7d0] sm:$0xff]  ;;  %v3569_v56 = vld [vmem:[%s4246_s25 + $0x5c8] sm:$0xff]  ;;  %v7219_v2 = vld [vmem:[#allocation6_spill] sm:$0xff] }
  0x97   : > { %2281 = vmatpush1.bf16.msra.mxu0 %v7208_v28  ;;  %v7210_v28 = vpack.c.bf16 %v4660_v24, %v4655_v27  ;;  %995 = vst.msk [vmem:[#allocation2 + $0x2b8] sm:$0xff] %vm660_vm1, %v956_v45  ;;  %v5052_v27 = vld [vmem:[%s4246_s25 + $0x578] sm:$0xff]  ;;  %v7211_v24 = vpack.c.bf16 %v4730_v61, %v4727_v39  ;;  %v1993_v10 = vld [vmem:[#allocation2 + $0x510] sm:$0xff]  ;;  %v7212_v61 = vpack.c.bf16 %v4749_v31, %v4746_v48  ;;  %v5082_v48 = vld [vmem:[%s4246_s25 + $0x800] sm:$0xff] }
  0x98   : > { %2320 = vmatpush1.bf16.msra.mxu1 %v1941_v14  ;;  %2282 = vmatprep.subr.bf16.mxu0 %v7209_v49  ;;  %v1967_v14 = vld [vmem:[#allocation2 + $0x440] sm:$0xff]  ;;  %v3566_v45 = vld [vmem:[%s4246_s25 + $0x5b0] sm:$0xff]  ;;  %v5085_v31 = vld [vmem:[%s4246_s25 + $0x818] sm:$0xff] }
  0x99   : > { %2321 = vmatprep.subr.bf16.mxu1 %v7210_v28  ;;  %v3560_v49 = vld [vmem:[%s4246_s25 + $0x580] sm:$0xff]  ;;  %v5060_v28 = vld [vmem:[%s4246_s25 + $0x590] sm:$0xff]  ;;  %v962_v41 = vpack.c.bf16 %v3569_v56, %v3566_v45  ;;  %v5096_v39 = vld [vmem:[%s4246_s25 + $0x7f8] sm:$0xff] }
  0x9a   : > { %v959_v33 = vpack.c.bf16 %v3563_v17, %v3560_v49  ;;  %v5063_v17 = vld [vmem:[%s4246_s25 + $0x7c8] sm:$0xff]  ;;  %v5066_v49 = vld [vmem:[%s4246_s25 + $0x7e0] sm:$0xff]  ;;  %7214 = vst [vmem:[#allocation14_spill] sm:$0xff] %v5096_v39  ;;  %v5099_v22 = vld [vmem:[%s4246_s25 + $0x810] sm:$0xff] }
  0x9b   : > { %2283 = vmatpush1.bf16.msra.mxu0 %v7211_v24  ;;  %v5093_v24 = vld [vmem:[%s4246_s25 + $0x5c0] sm:$0xff]  ;;  %7215 = vst [vmem:[#allocation15_spill] sm:$0xff] %v5099_v22  ;;  %1001 = vst.msk [vmem:[#allocation2 + $0x458] sm:$0xff] %vm660_vm1, %v962_v41  ;;  %v5129_v39 = vld [vmem:[%s4246_s25 + $0x5f0] sm:$0xff] }
  0x9c   : > { %2322 = vmatpush1.bf16.msra.mxu1 %v1967_v14  ;;  %2284 = vmatprep.subr.bf16.mxu0 %v7212_v61  ;;  %998 = vst.msk [vmem:[#allocation2 + $0x388] sm:$0xff] %vm660_vm1, %v959_v33  ;;  %v7213_v14 = vpack.c.bf16 %v4696_v3, %v4683_v11  ;;  %v5088_v33 = vld [vmem:[%s4246_s25 + $0x5a8] sm:$0xff]  ;;  %v7216_v11 = vpack.c.bf16 %v4764_v26, %v4761_v0  ;;  %v3572_v45 = vld [vmem:[%s4246_s25 + $0x5e0] sm:$0xff]  ;;  %v5112_v61 = vld [vmem:[%s4246_s25 + $0x830] sm:$0xff] }
  0x9d   : > { %v2019_v0 = vld [vmem:[#allocation2 + $0x5e0] sm:$0xff]  ;;  %v7217_v26 = vpack.c.bf16 %v4788_v19, %v4777_v38  ;;  %v5121_v3 = vld [vmem:[%s4246_s25 + $0x5d8] sm:$0xff]  ;;  %v5132_v22 = vld [vmem:[%s4246_s25 + $0x828] sm:$0xff] }
  0x9e   : > { %2323 = vmatprep.subr.bf16.mxu1 %v7213_v14  ;;  %v3575_v14 = vld [vmem:[%s4246_s25 + $0x5f8] sm:$0xff]  ;;  %v7218_v56 = vld [vmem:[#allocation7_spill] sm:$0xff]  ;;  %v5154_v19 = vld [vmem:[%s4246_s25 + $0x608] sm:$0xff] }
  0x9f   : > { %2285 = vmatpush1.bf16.msra.mxu0 %v7216_v11  ;;  %v965_v41 = vpack.c.bf16 %v3575_v14, %v3572_v45  ;;  %v5118_v11 = vld [vmem:[%s4246_s25 + $0x848] sm:$0xff]  ;;  %v7220_v23 = vpack.c.bf16 %v7218_v56, %v7219_v2  ;;  %7221 = vst [vmem:[#allocation7_spill] sm:$0xff] %v5132_v22  ;;  %v5135_v38 = vld [vmem:[%s4246_s25 + $0x840] sm:$0xff]  ;;  %v3578_v2 = vld [vmem:[%s4246_s25 + $0x610] sm:$0xff] }
  0xa0   : > { %2324 = vmatpush1.bf16.msra.mxu1 %v1993_v10  ;;  %2286 = vmatprep.subr.bf16.mxu0 %v7217_v26  ;;  %7222 = vst [vmem:[#allocation6_spill] sm:$0xff] %v5135_v38  ;;  %v3581_v56 = vld [vmem:[%s4246_s25 + $0x628] sm:$0xff]  ;;  %v5145_v45 = vld [vmem:[%s4246_s25 + $0x860] sm:$0xff]  ;;  %v2045_v14 = vld [vmem:[#allocation2 + $0x6b0] sm:$0xff]  ;;  %v7224_v26 = vpack.c.bf16 %v4802_v7, %v4799_v35 }
  0xa1   : > { %2325 = vmatprep.subr.bf16.mxu1 %v7220_v23  ;;  %1004 = vst.msk [vmem:[#allocation2 + $0x528] sm:$0xff] %vm660_vm1, %v965_v41  ;;  %7223 = vst [vmem:[#allocation16_spill] sm:$0xff] %v5145_v45  ;;  %v968_v41 = vpack.c.bf16 %v3581_v56, %v3578_v2  ;;  %v5151_v10 = vld [vmem:[%s4246_s25 + $0x878] sm:$0xff]  ;;  %v7226_v23 = vpack.c.bf16 %v4818_v57, %v4812_v46  ;;  %v5162_v38 = vld [vmem:[%s4246_s25 + $0x620] sm:$0xff] }
  0xa2   : > { %7225 = vst [vmem:[#allocation17_spill] sm:$0xff] %v5151_v10  ;;  %v5165_v35 = vld [vmem:[%s4246_s25 + $0x858] sm:$0xff]  ;;  %v5168_v7 = vld [vmem:[%s4246_s25 + $0x870] sm:$0xff]  ;;  %v7230_v56 = vld [vmem:[#allocation8_spill] sm:$0xff] }
  0xa3   : > { %2287 = vmatpush1.bf16.msra.mxu0 %v7224_v26  ;;  %7227 = vst [vmem:[#allocation18_spill] sm:$0xff] %v5165_v35  ;;  %7228 = vst [vmem:[#allocation19_spill] sm:$0xff] %v5168_v7  ;;  %v7229_v2 = vld [vmem:[#allocation9_spill] sm:$0xff]  ;;  %v5184_v10 = vld [vmem:[%s4246_s25 + $0x8a8] sm:$0xff] }
  0xa4   : > { %2326 = vmatpush1.bf16.msra.mxu1 %v2019_v0  ;;  %2288 = vmatprep.subr.bf16.mxu0 %v7226_v23  ;;  %v7231_v26 = vpack.c.bf16 %v7229_v2, %v7230_v56  ;;  %1007 = vst.msk [vmem:[#allocation2 + $0x5f8] sm:$0xff] %vm660_vm1, %v968_v41  ;;  %v3584_v0 = vld [vmem:[%s4246_s25 + $0x640] sm:$0xff]  ;;  %v3587_v23 = vld [vmem:[%s4246_s25 + $0x658] sm:$0xff]  ;;  %v5181_v22 = vld [vmem:[%s4246_s25 + $0x890] sm:$0xff]  ;;  %v7234_v41 = vpack.c.bf16 %v4835_v55, %v4832_v8 }
  0xa5   : > { %7232 = vst [vmem:[#allocation9_spill] sm:$0xff] %v5181_v22  ;;  %v971_v45 = vpack.c.bf16 %v3587_v23, %v3584_v0  ;;  %7233 = vst [vmem:[#allocation8_spill] sm:$0xff] %v5184_v10  ;;  %v5187_v2 = vld [vmem:[%s4246_s25 + $0x638] sm:$0xff]  ;;  %v2071_v56 = vld [vmem:[#allocation2 + $0x780] sm:$0xff]  ;;  %v7237_v23 = vpack.c.bf16 %v4851_v53, %v4848_v62 }
  0xa6   : > { %2327 = vmatprep.subr.bf16.mxu1 %v7231_v26  ;;  %v5195_v46 = vld [vmem:[%s4246_s25 + $0x650] sm:$0xff]  ;;  %v5198_v57 = vld [vmem:[%s4246_s25 + $0x888] sm:$0xff]  ;;  %v5201_v0 = vld [vmem:[%s4246_s25 + $0x8a0] sm:$0xff] }
  0xa7   : > { %2289 = vmatpush1.bf16.msra.mxu0 %v7234_v41  ;;  %7235 = vst [vmem:[#allocation20_spill] sm:$0xff] %v5198_v57  ;;  %7236 = vst [vmem:[#allocation21_spill] sm:$0xff] %v5201_v0  ;;  %v3590_v41 = vld [vmem:[%s4246_s25 + $0x670] sm:$0xff]  ;;  %v3593_v26 = vld [vmem:[%s4246_s25 + $0x688] sm:$0xff] }
  0xa8   : > { %2328 = vmatpush1.bf16.msra.mxu1 %v2045_v14  ;;  %2290 = vmatprep.subr.bf16.mxu0 %v7237_v23  ;;  %1010 = vst.msk [vmem:[#allocation2 + $0x6c8] sm:$0xff] %vm660_vm1, %v971_v45  ;;  %v5214_v22 = vld [vmem:[%s4246_s25 + $0x8c0] sm:$0xff]  ;;  %v7240_v14 = vld [vmem:[#allocation10_spill] sm:$0xff]  ;;  %v2148_v53 = vld [vmem:[#allocation2 + $0x9e8] sm:$0xff]  ;;  %v974_v62 = vpack.c.bf16 %v3593_v26, %v3590_v41  ;;  %v7246_v26 = vpack.c.bf16 %v4869_v42, %v4866_v13 }
  0xa9   : > { %7238 = vst [vmem:[#allocation22_spill] sm:$0xff] %v5214_v22  ;;  %v7239_v10 = vld [vmem:[#allocation11_spill] sm:$0xff]  ;;  %v5220_v45 = vld [vmem:[%s4246_s25 + $0x8d8] sm:$0xff]  ;;  %v5223_v23 = vld [vmem:[%s4246_s25 + $0x668] sm:$0xff]  ;;  %v7250_v41 = vpack.c.bf16 %v4829_v63, %v4821_v5 }
  0xaa   : > { %v7241_v35 = vpack.c.bf16 %v7239_v10, %v7240_v14  ;;  %7242 = vst [vmem:[#allocation11_spill] sm:$0xff] %v5220_v45  ;;  %7243 = vst [vmem:[#allocation10_spill] sm:$0xff] %v5223_v23  ;;  %v2147_v8 = vld [vmem:[#allocation2 + $0x9e0] sm:$0xff]  ;;  %v5231_v0 = vld [vmem:[%s4246_s25 + $0x8b8] sm:$0xff] }
  0xab   : > { %v5228_v57 = vld [vmem:[%s4246_s25 + $0x680] sm:$0xff]  ;;  %7244 = vst [vmem:[#allocation23_spill] sm:$0xff] %v5231_v0  ;;  %v5234_v10 = vld [vmem:[%s4246_s25 + $0x8d0] sm:$0xff]  ;;  %2291 = vmatpush1.bf16.msra.mxu0 %v7246_v26  ;;  %1013 = vst.msk [vmem:[#allocation2 + $0x798] sm:$0xff] %vm660_vm1, %v974_v62 }
  0xac   : > { %2329 = vmatprep.subr.bf16.mxu1 %v7241_v35  ;;  %7245 = vst [vmem:[#allocation24_spill] sm:$0xff] %v5234_v10  ;;  %v2097_v35 = vld [vmem:[#allocation2 + $0x850] sm:$0xff]  ;;  %v3596_v55 = vld [vmem:[%s4246_s25 + $0x6a0] sm:$0xff]  ;;  %v3599_v22 = vld [vmem:[%s4246_s25 + $0x6b8] sm:$0xff]  ;;  %2292 = vmatprep.subr.bf16.mxu0 %v2148_v53 }
  0xad   : > { %v5247_v45 = vld [vmem:[%s4246_s25 + $0x8f0] sm:$0xff]  ;;  %2330 = vmatpush1.bf16.msra.mxu1 %v2071_v56  ;;  %v1840_v13 = vld [vmem:[#allocation2 + $0x48] sm:$0xff]  ;;  %v977_v42 = vpack.c.bf16 %v3599_v22, %v3596_v55  ;;  %v5253_v62 = vld [vmem:[%s4246_s25 + $0x698] sm:$0xff] }
  0xae   : > { %7247 = vst [vmem:[#allocation25_spill] sm:$0xff] %v5247_v45  ;;  %v5250_v26 = vld [vmem:[%s4246_s25 + $0x908] sm:$0xff]  ;;  %7249 = vst [vmem:[#allocation27_spill] sm:$0xff] %v5253_v62  ;;  %2331 = vmatprep.subr.bf16.mxu1 %v7250_v41  ;;  %v5261_v0 = vld [vmem:[%s4246_s25 + $0x6b0] sm:$0xff] }
  0xaf   : > { %7248 = vst [vmem:[#allocation26_spill] sm:$0xff] %v5250_v26  ;;  %7251 = vst [vmem:[#allocation28_spill] sm:$0xff] %v5261_v0  ;;  %v5264_v56 = vld [vmem:[%s4246_s25 + $0x8e8] sm:$0xff]  ;;  %v5267_v53 = vld [vmem:[%s4246_s25 + $0x900] sm:$0xff]  ;;  %2293 = vmatpush1.bf16.msra.mxu0 %v2147_v8 }
  0xb0   : > { %7252 = vst [vmem:[#allocation29_spill] sm:$0xff] %v5264_v56  ;;  %7253 = vst [vmem:[#allocation30_spill] sm:$0xff] %v5267_v53  ;;  %v3602_v5 = vld [vmem:[%s4246_s25 + $0x6d0] sm:$0xff]  ;;  %v3605_v55 = vld [vmem:[%s4246_s25 + $0x6e8] sm:$0xff]  ;;  %2354 = vmatprep.subr.bf16.mxu0 %v1840_v13 }
  0xb1   : > { %1016 = vst.msk [vmem:[#allocation2 + $0x868] sm:$0xff] %vm660_vm1, %v977_v42  ;;  %v5277_v41 = vld [vmem:[%s4246_s25 + $0x920] sm:$0xff]  ;;  %v1866_v45 = vld [vmem:[#allocation2 + $0x118] sm:$0xff]  ;;  %v980_v26 = vpack.c.bf16 %v3605_v55, %v3602_v5  ;;  %v5283_v42 = vld [vmem:[%s4246_s25 + $0x6c8] sm:$0xff]  ;;  %2332 = vmatpush1.bf16.msra.mxu1 %v2097_v35 }
  0xb2   : > { %7254 = vst [vmem:[#allocation31_spill] sm:$0xff] %v5277_v41  ;;  %v2123_v14 = vld [vmem:[#allocation2 + $0x920] sm:$0xff]  ;;  %v5280_v10 = vld [vmem:[%s4246_s25 + $0x938] sm:$0xff]  ;;  %7256 = vst [vmem:[#allocation33_spill] sm:$0xff] %v5283_v42 }
  0xb3   : > { %7255 = vst [vmem:[#allocation32_spill] sm:$0xff] %v5280_v10  ;;  %v5288_v63 = vld [vmem:[%s4246_s25 + $0x6e0] sm:$0xff]  ;;  %v5291_v56 = vld [vmem:[%s4246_s25 + $0x918] sm:$0xff]  ;;  %v5294_v53 = vld [vmem:[%s4246_s25 + $0x930] sm:$0xff] }
  0xb4   : > { %7257 = vst [vmem:[#allocation34_spill] sm:$0xff] %v5288_v63  ;;  %7258 = vst [vmem:[#allocation35_spill] sm:$0xff] %v5291_v56  ;;  %v7260_v8 = vld [vmem:[#allocation13_spill] sm:$0xff]  ;;  %v7261_v62 = vld [vmem:[#allocation12_spill] sm:$0xff] }
  0xb5   : > { %7259 = vst [vmem:[#allocation36_spill] sm:$0xff] %v5294_v53  ;;  %v7262_v0 = vpack.c.bf16 %v7260_v8, %v7261_v62  ;;  %1019 = vst.msk [vmem:[#allocation2 + $0x938] sm:$0xff] %vm660_vm1, %v980_v26  ;;  %v3608_v5 = vld [vmem:[%s4246_s25 + $0x700] sm:$0x7]  ;;  %v1026_v55 = vld [vmem:[#allocation2 + $0xa08] sm:$0x3]  ;;  %v7264_v8 = vpack.c.bf16 %v4918_v43, %v4915_v36 }
  0xb6   : > { %v3682_v22 = vld [vmem:[%s4246_s25 + $0x950] sm:$0x7]  ;;  %v2150_v41 = vld [vmem:[#allocation2 + $0x9f8] sm:$0xff]  ;;  %v983_v7 = vpack.c.bf16 %v3608_v5, %v3608_v5  ;;  %v1023_v13 = vld [vmem:[#allocation2 + $0xa00] sm:$0x3] }
  0xb7   : > { %2333 = vmatprep.subr.bf16.mxu1 %v7262_v0  ;;  %v7263_v10 = vld [vmem:[#allocation5_spill] sm:$0xff]  ;;  %v1142_v23 = vpack.c.bf16 %v3682_v22, %v3682_v22  ;;  %v1183_v62 = vld [vmem:[#allocation2 + $0xa18] sm:$0x3]  ;;  %v3681_v56 = vld [vmem:[%s4246_s25 + $0x948] sm:$0x7] }
  0xb8   : > { %2301 = vmatmul.mubr.bf16.vlgmr.msra.gmra.mrb[4].mxu0 %v7263_v10  ;;  %v3607_v0 = vld [vmem:[%s4246_s25 + $0x6f8] sm:$0x7]  ;;  %v2149_v26 = vld [vmem:[#allocation2 + $0x9f0] sm:$0xff]  ;;  %v5315_v42 = vld [vmem:[%s7040_s0 + $0x4] ss:$8 sps:$4 sm:$0xff]   ;;  %2334 = vmatpush1.bf16.msra.mxu1 %v2123_v14  ;;  %v1027_v36 = vsel %vm4418_vm6, %v983_v7, %v1026_v55  ;;  %v1141_v22 = vpack.c.bf16 %v3681_v56, %v3681_v56 }
  0xb9   : > { %2355 = vmatpush1.bf16.msra.mxu0 %v7264_v8  ;;  %v982_v35 = vpack.c.bf16 %v3607_v0, %v3607_v0  ;;  %v1180_v53 = vld [vmem:[#allocation2 + $0xa10] sm:$0x3]  ;;  %3990 = vmatprep.mubr.msk.bf16.mxu0 %vm2178_vm0, %v5315_v42  ;;  %v1184_v43 = vsel %vm4385_vm4, %v1142_v23, %v1183_v62  ;;  %v5324_v5 = vld [vmem:[%s4246_s25 + $0x960] sm:$0xff]  ;;  %v5327_v0 = vld [vmem:[%s4246_s25 + $0x978] sm:$0xff]  ;;  %1028 = vst [vmem:[#allocation2 + $0xa08] sm:$0x3] %v1027_v36 }
  0xba   : > { %2356 = vmatprep.subr.bf16.mxu0 %v1866_v45  ;;  %v3686_v8 = vld [vmem:[%s4246_s25 + $0x970] sm:$0xff]  ;;  %2335 = vmatprep.subr.bf16.mxu1 %v2150_v41  ;;  %v1892_v63 = vld [vmem:[#allocation2 + $0x1e8] sm:$0xff]  ;;  %1185 = vst [vmem:[#allocation2 + $0xa18] sm:$0x3] %v1184_v43  ;;  %v3611_v14 = vld [vmem:[%s4246_s25 + $0x718] sm:$0xff]  ;;  %v1181_v56 = vsel %vm4385_vm4, %v1141_v22, %v1180_v53 }
  0xbb   : > { %v1024_v7 = vsel %vm4385_vm4, %v982_v35, %v1023_v13  ;;  %v3689_v23 = vld [vmem:[%s4246_s25 + $0x988] sm:$0xff]  ;;  %v3614_v41 = vld [vmem:[%s4246_s25 + $0x730] sm:$0xff]  ;;  %v5343_v36 = vld [vmem:[%s4246_s25 + $0x980] sm:$0xff]  ;;  %v7265_v35 = vpack.c.bf16 %v4953_v9, %v4950_v18  ;;  %1182 = vst [vmem:[#allocation2 + $0xa10] sm:$0x3] %v1181_v56 }
  0xbc   : > { %1025 = vst [vmem:[#allocation2 + $0xa00] sm:$0x3] %v1024_v7  ;;  %v1267_v55 = vpack.c.bf16 %v3689_v23, %v3686_v8  ;;  %v5340_v62 = vld [vmem:[%s4246_s25 + $0x968] sm:$0xff]  ;;  %v1107_v13 = vpack.c.bf16 %v3614_v41, %v3611_v14  ;;  %v5351_v53 = vld [vmem:[%s4246_s25 + $0x990] sm:$0xff]  ;;  %v3692_v8 = vld [vmem:[%s4246_s25 + $0x9a0] sm:$0xff]  ;;  %2336 = vmatpush1.bf16.msra.mxu1 %v2149_v26  ;;  %v7266_v14 = vpack.c.bf16 %v4912_v54, %v4904_v6 }
  0xbd   : > { %2357 = vmatpush1.bf16.msra.mxu0 %v7265_v35  ;;  %v5354_v22 = vld [vmem:[%s4246_s25 + $0x9a8] sm:$0xff]  ;;  %v1918_v18 = vld [vmem:[#allocation2 + $0x2b8] sm:$0xff]  ;;  %v5371_v41 = vld [vmem:[%s4246_s25 + $0x9b0] sm:$0xff] }
  0xbe   : > { %2358 = vmatprep.subr.bf16.mxu0 %v1892_v63  ;;  %1306 = vst.msk [vmem:[#allocation2 + $0x78] sm:$0xff] %vm660_vm1, %v1267_v55  ;;  %v3695_v7 = vld [vmem:[%s4246_s25 + $0x9b8] sm:$0xff]  ;;  %v3617_v23 = vld [vmem:[%s4246_s25 + $0x748] sm:$0xff]  ;;  %2397 = vmatprep.subr.bf16.mxu1 %v7266_v14  ;;  %1146 = vst.msk [vmem:[#allocation2 + $0x60] sm:$0xff] %vm660_vm1, %v1107_v13  ;;  %v7267_v13 = vpack.c.bf16 %v4991_v34, %v4983_v15 }
  0xbf   : > { %v1270_v26 = vpack.c.bf16 %v3695_v7, %v3692_v8  ;;  %v3620_v63 = vld [vmem:[%s4246_s25 + $0x760] sm:$0xff]  ;;  %v5368_v56 = vld [vmem:[%s4246_s25 + $0x998] sm:$0xff]  ;;  %v3698_v54 = vld [vmem:[%s4246_s25 + $0x9d0] sm:$0xff]  ;;  %2344 = vmatmul.mubr.bf16.vlgmr.msra.gmra.mrb[4].mxu1 %v7263_v10 }
  0xc0   : > { %v1110_v55 = vpack.c.bf16 %v3620_v63, %v3617_v23  ;;  %v5376_v43 = vld [vmem:[%s4246_s25 + $0x9c0] sm:$0xff]  ;;  %v5379_v6 = vld [vmem:[%s4246_s25 + $0x9d8] sm:$0xff]  ;;  %v3701_v7 = vld [vmem:[%s4246_s25 + $0x9e8] sm:$0xff]  ;;  %v7268_v63 = vpack.c.bf16 %v4930_v37, %v4927_v32  ;;  %3991 = vmatprep.mubr.msk.bf16.mxu1 %vm2178_vm0, %v5315_v42 }
  0xc1   : > { %2359 = vmatpush1.bf16.msra.mxu0 %v7267_v13  ;;  %1309 = vst.msk [vmem:[#allocation2 + $0x148] sm:$0xff] %vm660_vm1, %v1270_v26  ;;  %v3623_v23 = vld [vmem:[%s4246_s25 + $0x778] sm:$0xff]  ;;  %v3626_v14 = vld [vmem:[%s4246_s25 + $0x790] sm:$0xff]  ;;  %v1273_v34 = vpack.c.bf16 %v3701_v7, %v3698_v54  ;;  %v5397_v10 = vld [vmem:[%s4246_s25 + $0x9c8] sm:$0xff]  ;;  %v7269_v26 = vpack.c.bf16 %v4947_v30, %v4941_v50 }
  0xc2   : > { %2398 = vmatpush1.bf16.msra.mxu1 %v7268_v63  ;;  %2360 = vmatprep.subr.bf16.mxu0 %v1918_v18  ;;  %1149 = vst.msk [vmem:[#allocation2 + $0x130] sm:$0xff] %vm660_vm1, %v1110_v55  ;;  %v1113_v15 = vpack.c.bf16 %v3626_v14, %v3623_v23  ;;  %v1944_v13 = vld [vmem:[#allocation2 + $0x388] sm:$0xff]  ;;  %v5405_v32 = vld [vmem:[%s4246_s25 + $0x9e0] sm:$0xff]  ;;  %v5408_v37 = vld [vmem:[%s4246_s25 + $0x9f0] sm:$0xff]  ;;  %v7270_v55 = vpack.c.bf16 %v5027_v58, %v5019_v51 }
  0xc3   : > { %2399 = vmatprep.subr.bf16.mxu1 %v7269_v26  ;;  %1312 = vst.msk [vmem:[#allocation2 + $0x218] sm:$0xff] %vm660_vm1, %v1273_v34  ;;  %v5415_v50 = vld [vmem:[%s4246_s25 + $0xa08] sm:$0xff]  ;;  %v3704_v30 = vld [vmem:[%s4246_s25 + $0xa00] sm:$0xff]  ;;  %v3707_v7 = vld [vmem:[%s4246_s25 + $0xa18] sm:$0xff]  ;;  %v7271_v14 = vpack.c.bf16 %v4966_v12, %v4963_v44  ;;  %v7272_v51 = vpack.c.bf16 %v4980_v20, %v4974_v59 }
  0xc4   : > { %1152 = vst.msk [vmem:[#allocation2 + $0x200] sm:$0xff] %vm660_vm1, %v1113_v15  ;;  %v3629_v23 = vld [vmem:[%s4246_s25 + $0x7a8] sm:$0xff]  ;;  %v1970_v63 = vld [vmem:[#allocation2 + $0x458] sm:$0xff]  ;;  %v1276_v34 = vpack.c.bf16 %v3707_v7, %v3704_v30  ;;  %v3632_v15 = vld [vmem:[%s4246_s25 + $0x7c0] sm:$0xff]  ;;  %v7273_v30 = vpack.c.bf16 %v5060_v28, %v5052_v27 }
  0xc5   : > { %2361 = vmatpush1.bf16.msra.mxu0 %v7270_v55  ;;  %v5430_v26 = vld [vmem:[%s4246_s25 + $0x9f8] sm:$0xff]  ;;  %v1116_v58 = vpack.c.bf16 %v3632_v15, %v3629_v23  ;;  %v5436_v55 = vld [vmem:[%s4246_s25 + $0xa10] sm:$0xff]  ;;  %v5439_v18 = vld [vmem:[%s4246_s25 + $0xa20] sm:$0xff] }
  0xc6   : > { %2400 = vmatpush1.bf16.msra.mxu1 %v7271_v14  ;;  %2362 = vmatprep.subr.bf16.mxu0 %v1944_v13  ;;  %v5442_v44 = vld [vmem:[%s4246_s25 + $0xa38] sm:$0xff]  ;;  %1315 = vst.msk [vmem:[#allocation2 + $0x2e8] sm:$0xff] %vm660_vm1, %v1276_v34  ;;  %v3710_v59 = vld [vmem:[%s4246_s25 + $0xa30] sm:$0xff]  ;;  %v3713_v20 = vld [vmem:[%s4246_s25 + $0xa48] sm:$0xff]  ;;  %v7274_v34 = vpack.c.bf16 %v5003_v40, %v4994_v29 }
  0xc7   : > { %2401 = vmatprep.subr.bf16.mxu1 %v7272_v51  ;;  %1155 = vst.msk [vmem:[#allocation2 + $0x2d0] sm:$0xff] %vm660_vm1, %v1116_v58  ;;  %v1279_v7 = vpack.c.bf16 %v3713_v20, %v3710_v59  ;;  %v3635_v23 = vld [vmem:[%s4246_s25 + $0x7d8] sm:$0xff]  ;;  %v3638_v14 = vld [vmem:[%s4246_s25 + $0x7f0] sm:$0xff]  ;;  %v5461_v51 = vld [vmem:[%s4246_s25 + $0xa28] sm:$0xff]  ;;  %v7275_v58 = vpack.c.bf16 %v5016_v16, %v5013_v47  ;;  %v7276_v16 = vpack.c.bf16 %v5093_v24, %v5088_v33 }
  0xc8   : > { %v1119_v15 = vpack.c.bf16 %v3638_v14, %v3635_v23  ;;  %v5464_v27 = vld [vmem:[%s4246_s25 + $0xa40] sm:$0xff]  ;;  %v5467_v28 = vld [vmem:[%s4246_s25 + $0xa50] sm:$0xff]  ;;  %v1996_v59 = vld [vmem:[#allocation2 + $0x528] sm:$0xff] }
  0xc9   : > { %2363 = vmatpush1.bf16.msra.mxu0 %v7273_v30  ;;  %1318 = vst.msk [vmem:[#allocation2 + $0x3b8] sm:$0xff] %vm660_vm1, %v1279_v7  ;;  %v5476_v40 = vld [vmem:[%s4246_s25 + $0xa68] sm:$0xff]  ;;  %v3716_v20 = vld [vmem:[%s4246_s25 + $0xa60] sm:$0xff]  ;;  %v3719_v30 = vld [vmem:[%s4246_s25 + $0xa78] sm:$0xff] }
  0xca   : > { %2402 = vmatpush1.bf16.msra.mxu1 %v7274_v34  ;;  %2364 = vmatprep.subr.bf16.mxu0 %v1970_v63  ;;  %1158 = vst.msk [vmem:[#allocation2 + $0x3a0] sm:$0xff] %vm660_vm1, %v1119_v15  ;;  %v3641_v47 = vld [vmem:[%s4246_s25 + $0x808] sm:$0xff]  ;;  %v1282_v7 = vpack.c.bf16 %v3719_v30, %v3716_v20  ;;  %v3644_v23 = vld [vmem:[%s4246_s25 + $0x820] sm:$0xff]  ;;  %v5489_v14 = vld [vmem:[%s4246_s25 + $0xa58] sm:$0xff]  ;;  %v7277_v15 = vpack.c.bf16 %v5033_v60, %v5030_v52 }
  0xcb   : > { %2403 = vmatprep.subr.bf16.mxu1 %v7275_v58  ;;  %v5492_v34 = vld [vmem:[%s4246_s25 + $0xa70] sm:$0xff]  ;;  %v1122_v58 = vpack.c.bf16 %v3644_v23, %v3641_v47  ;;  %v5500_v33 = vld [vmem:[%s4246_s25 + $0xa80] sm:$0xff]  ;;  %v5503_v20 = vld [vmem:[%s4246_s25 + $0xa98] sm:$0xff] }
  0xcc   : > { %v3722_v30 = vld [vmem:[%s4246_s25 + $0xa90] sm:$0xff]  ;;  %v2022_v52 = vld [vmem:[#allocation2 + $0x5f8] sm:$0xff]  ;;  %1321 = vst.msk [vmem:[#allocation2 + $0x488] sm:$0xff] %vm660_vm1, %v1282_v7  ;;  %v5517_v24 = vld [vmem:[%s4246_s25 + $0xa88] sm:$0xff] }
  0xcd   : > { %2365 = vmatpush1.bf16.msra.mxu0 %v7276_v16  ;;  %v7278_v16 = vpack.c.bf16 %v5049_v1, %v5046_v4  ;;  %v3647_v47 = vld [vmem:[%s4246_s25 + $0x838] sm:$0xff]  ;;  %1161 = vst.msk [vmem:[#allocation2 + $0x470] sm:$0xff] %vm660_vm1, %v1122_v58  ;;  %v7279_v1 = vpack.c.bf16 %v5129_v39, %v5121_v3  ;;  %v5523_v7 = vld [vmem:[%s4246_s25 + $0xaa0] sm:$0xff]  ;;  %v5529_v29 = vld [vmem:[%s4246_s25 + $0xac8] sm:$0xff]  ;;  %v7280_v58 = vpack.c.bf16 %v5066_v49, %v5063_v17 }
  0xce   : > { %2404 = vmatpush1.bf16.msra.mxu1 %v7277_v15  ;;  %2366 = vmatprep.subr.bf16.mxu0 %v1996_v59  ;;  %v3725_v59 = vld [vmem:[%s4246_s25 + $0xaa8] sm:$0xff]  ;;  %v3650_v15 = vld [vmem:[%s4246_s25 + $0x850] sm:$0xff]  ;;  %v5554_v39 = vld [vmem:[%s4246_s25 + $0xae0] sm:$0xff] }
  0xcf   : > { %2405 = vmatprep.subr.bf16.mxu1 %v7278_v16  ;;  %v1285_v23 = vpack.c.bf16 %v3725_v59, %v3722_v30  ;;  %v1125_v4 = vpack.c.bf16 %v3650_v15, %v3647_v47  ;;  %v5526_v16 = vld [vmem:[%s4246_s25 + $0xab0] sm:$0xff]  ;;  %v3728_v30 = vld [vmem:[%s4246_s25 + $0xac0] sm:$0xff]  ;;  %v3731_v59 = vld [vmem:[%s4246_s25 + $0xad8] sm:$0xff]  ;;  %v7281_v47 = vpack.c.bf16 %v5085_v31, %v5082_v48  ;;  %v7282_v48 = vpack.c.bf16 %v5162_v38, %v5154_v19 }
  0xd0   : > { %v2048_v17 = vld [vmem:[#allocation2 + $0x6c8] sm:$0xff]  ;;  %v1288_v49 = vpack.c.bf16 %v3731_v59, %v3728_v30  ;;  %v3734_v30 = vld [vmem:[%s4246_s25 + $0xaf0] sm:$0xff]  ;;  %v7286_v31 = vpack.c.bf16 %v5118_v11, %v5112_v61  ;;  %v2074_v3 = vld [vmem:[#allocation2 + $0x798] sm:$0xff]  ;;  %v7287_v11 = vpack.c.bf16 %v5195_v46, %v5187_v2 }
  0xd1   : > { %2367 = vmatpush1.bf16.msra.mxu0 %v7279_v1  ;;  %1324 = vst.msk [vmem:[#allocation2 + $0x558] sm:$0xff] %vm660_vm1, %v1285_v23  ;;  %1164 = vst.msk [vmem:[#allocation2 + $0x540] sm:$0xff] %vm660_vm1, %v1125_v4  ;;  %v3656_v23 = vld [vmem:[%s4246_s25 + $0x880] sm:$0xff]  ;;  %v5548_v1 = vld [vmem:[%s4246_s25 + $0xab8] sm:$0xff] }
  0xd2   : > { %2406 = vmatpush1.bf16.msra.mxu1 %v7280_v58  ;;  %2368 = vmatprep.subr.bf16.mxu0 %v2022_v52  ;;  %v3653_v52 = vld [vmem:[%s4246_s25 + $0x868] sm:$0xff]  ;;  %v5551_v58 = vld [vmem:[%s4246_s25 + $0xad0] sm:$0xff]  ;;  %1327 = vst.msk [vmem:[#allocation2 + $0x628] sm:$0xff] %vm660_vm1, %v1288_v49  ;;  %v5563_v4 = vld [vmem:[%s4246_s25 + $0xaf8] sm:$0xff] }
  0xd3   : > { %2407 = vmatprep.subr.bf16.mxu1 %v7281_v47  ;;  %v1128_v15 = vpack.c.bf16 %v3656_v23, %v3653_v52  ;;  %v3737_v59 = vld [vmem:[%s4246_s25 + $0xb08] sm:$0xff]  ;;  %v7283_v47 = vld [vmem:[#allocation15_spill] sm:$0xff]  ;;  %v7284_v52 = vld [vmem:[#allocation14_spill] sm:$0xff] }
  0xd4   : > { %v7285_v23 = vpack.c.bf16 %v7283_v47, %v7284_v52  ;;  %v1291_v19 = vpack.c.bf16 %v3737_v59, %v3734_v30  ;;  %v3659_v49 = vld [vmem:[%s4246_s25 + $0x898] sm:$0xff]  ;;  %v5579_v52 = vld [vmem:[%s4246_s25 + $0xae8] sm:$0xff]  ;;  %v5588_v30 = vld [vmem:[%s4246_s25 + $0xb10] sm:$0xff] }
  0xd5   : > { %2369 = vmatpush1.bf16.msra.mxu0 %v7282_v48  ;;  %1167 = vst.msk [vmem:[#allocation2 + $0x610] sm:$0xff] %vm660_vm1, %v1128_v15  ;;  %v3662_v48 = vld [vmem:[%s4246_s25 + $0x8b0] sm:$0xff]  ;;  %v5591_v59 = vld [vmem:[%s4246_s25 + $0xb28] sm:$0xff]  ;;  %v3740_v61 = vld [vmem:[%s4246_s25 + $0xb20] sm:$0xff] }
  0xd6   : > { %2408 = vmatpush1.bf16.msra.mxu1 %v7285_v23  ;;  %2370 = vmatprep.subr.bf16.mxu0 %v2048_v17  ;;  %v1131_v47 = vpack.c.bf16 %v3662_v48, %v3659_v49  ;;  %v5582_v17 = vld [vmem:[%s4246_s25 + $0xb00] sm:$0xff]  ;;  %1330 = vst.msk [vmem:[#allocation2 + $0x6f8] sm:$0xff] %vm660_vm1, %v1291_v19  ;;  %v3743_v23 = vld [vmem:[%s4246_s25 + $0xb38] sm:$0xff]  ;;  %v3665_v19 = vld [vmem:[%s4246_s25 + $0x8c8] sm:$0xff] }
  0xd7   : > { %2409 = vmatprep.subr.bf16.mxu1 %v7286_v31  ;;  %v7288_v49 = vld [vmem:[#allocation6_spill] sm:$0xff]  ;;  %v7289_v48 = vld [vmem:[#allocation7_spill] sm:$0xff]  ;;  %v2100_v38 = vld [vmem:[#allocation2 + $0x868] sm:$0xff]  ;;  %v1294_v60 = vpack.c.bf16 %v3743_v23, %v3740_v61 }
  0xd8   : > { %1170 = vst.msk [vmem:[#allocation2 + $0x6e0] sm:$0xff] %vm660_vm1, %v1131_v47  ;;  %v7290_v15 = vpack.c.bf16 %v7288_v49, %v7289_v48  ;;  %v3668_v46 = vld [vmem:[%s4246_s25 + $0x8e0] sm:$0xff]  ;;  %v5607_v2 = vld [vmem:[%s4246_s25 + $0xb18] sm:$0xff]  ;;  %v7292_v47 = vld [vmem:[#allocation17_spill] sm:$0xff] }
  0xd9   : > { %2371 = vmatpush1.bf16.msra.mxu0 %v7287_v11  ;;  %7291 = vst [vmem:[#allocation13_spill] sm:$0xff] %v5607_v2  ;;  %v7293_v11 = vld [vmem:[#allocation16_spill] sm:$0xff]  ;;  %v1134_v31 = vpack.c.bf16 %v3668_v46, %v3665_v19  ;;  %v5613_v63 = vld [vmem:[%s4246_s25 + $0xb30] sm:$0xff]  ;;  %v5616_v13 = vld [vmem:[%s4246_s25 + $0xb40] sm:$0xff] }
  0xda   : > { %2410 = vmatpush1.bf16.msra.mxu1 %v7290_v15  ;;  %2372 = vmatprep.subr.bf16.mxu0 %v2074_v3  ;;  %v7294_v12 = vpack.c.bf16 %v7292_v47, %v7293_v11  ;;  %7295 = vst [vmem:[#allocation12_spill] sm:$0xff] %v5613_v63  ;;  %v5619_v15 = vld [vmem:[%s4246_s25 + $0xb58] sm:$0xff]  ;;  %1333 = vst.msk [vmem:[#allocation2 + $0x7c8] sm:$0xff] %vm660_vm1, %v1294_v60  ;;  %v3746_v23 = vld [vmem:[%s4246_s25 + $0xb50] sm:$0xff] }
  0xdb   : > { %v7296_v19 = vld [vmem:[#allocation10_spill] sm:$0xff]  ;;  %1173 = vst.msk [vmem:[#allocation2 + $0x7b0] sm:$0xff] %vm660_vm1, %v1134_v31  ;;  %v3674_v60 = vld [vmem:[%s4246_s25 + $0x910] sm:$0xff]  ;;  %v7298_v47 = vld [vmem:[#allocation19_spill] sm:$0xff] }
  0xdc   : > { %2411 = vmatprep.subr.bf16.mxu1 %v7294_v12  ;;  %v3749_v12 = vld [vmem:[%s4246_s25 + $0xb68] sm:$0xff]  ;;  %v7297_v49 = vpack.c.bf16 %v5228_v57, %v7296_v19  ;;  %v3671_v46 = vld [vmem:[%s4246_s25 + $0x8f8] sm:$0xff]  ;;  %v5641_v57 = vld [vmem:[%s4246_s25 + $0xb60] sm:$0xff] }
  0xdd   : > { %v1297_v48 = vpack.c.bf16 %v3749_v12, %v3746_v23  ;;  %v7299_v11 = vld [vmem:[#allocation18_spill] sm:$0xff]  ;;  %v1137_v61 = vpack.c.bf16 %v3674_v60, %v3671_v46  ;;  %v5638_v35 = vld [vmem:[%s4246_s25 + $0xb48] sm:$0xff]  ;;  %7302 = vst [vmem:[#allocation15_spill] sm:$0xff] %v5641_v57  ;;  %v5644_v19 = vld [vmem:[%s4246_s25 + $0xb70] sm:$0xff] }
  0xde   : > { %2373 = vmatpush1.bf16.msra.mxu0 %v7297_v49  ;;  %v7300_v3 = vpack.c.bf16 %v7298_v47, %v7299_v11  ;;  %7301 = vst [vmem:[#allocation5_spill] sm:$0xff] %v5638_v35  ;;  %7303 = vst [vmem:[#allocation14_spill] sm:$0xff] %v5644_v19  ;;  %v7304_v31 = vld [vmem:[#allocation8_spill] sm:$0xff]  ;;  %v7305_v23 = vld [vmem:[#allocation9_spill] sm:$0xff] }
  0xdf   : > { %2374 = vmatprep.subr.bf16.mxu0 %v2100_v38  ;;  %v7306_v12 = vpack.c.bf16 %v7304_v31, %v7305_v23  ;;  %v2126_v49 = vld [vmem:[#allocation2 + $0x938] sm:$0xff]  ;;  %1336 = vst.msk [vmem:[#allocation2 + $0x898] sm:$0xff] %vm660_vm1, %v1297_v48  ;;  %v3752_v46 = vld [vmem:[%s4246_s25 + $0xb80] sm:$0xff]  ;;  %1176 = vst.msk [vmem:[#allocation2 + $0x880] sm:$0xff] %vm660_vm1, %v1137_v61 }
  0xe0   : > { %2412 = vmatpush1.bf16.msra.mxu1 %v7300_v3  ;;  %v5653_v3 = vld [vmem:[%s4246_s25 + $0xb88] sm:$0xff]  ;;  %v3755_v47 = vld [vmem:[%s4246_s25 + $0xb98] sm:$0xff]  ;;  %v7308_v23 = vld [vmem:[#allocation27_spill] sm:$0xff] }
  0xe1   : > { %2413 = vmatprep.subr.bf16.mxu1 %v7306_v12  ;;  %v3677_v11 = vld [vmem:[%s4246_s25 + $0x928] sm:$0xff]  ;;  %v1300_v48 = vpack.c.bf16 %v3755_v47, %v3752_v46  ;;  %v3680_v54 = vld [vmem:[%s4246_s25 + $0x940] sm:$0xff]  ;;  %v5666_v38 = vld [vmem:[%s4246_s25 + $0xb78] sm:$0xff] }
  0xe2   : > { %v7307_v31 = vld [vmem:[#allocation28_spill] sm:$0xff]  ;;  %7310 = vst [vmem:[#allocation6_spill] sm:$0xff] %v5666_v38  ;;  %v5669_v8 = vld [vmem:[%s4246_s25 + $0xb90] sm:$0xff]  ;;  %v1140_v61 = vpack.c.bf16 %v3680_v54, %v3677_v11  ;;  %v3756_v57 = vld [vmem:[%s4246_s25 + $0xba0] sm:$0x7] }
  0xe3   : > { %v7309_v12 = vpack.c.bf16 %v7307_v31, %v7308_v23  ;;  %7311 = vst [vmem:[#allocation7_spill] sm:$0xff] %v5669_v8  ;;  %v7312_v9 = vld [vmem:[#allocation21_spill] sm:$0xff]  ;;  %v7313_v45 = vld [vmem:[#allocation20_spill] sm:$0xff]  ;;  %v7315_v46 = vld [vmem:[#allocation11_spill] sm:$0xff] }
  0xe4   : > { %v7314_v35 = vpack.c.bf16 %v7312_v9, %v7313_v45  ;;  %v1340_v31 = vld [vmem:[#allocation2 + $0xa28] sm:$0x3]  ;;  %v3758_v23 = vld [vmem:[%s4246_s25 + $0xbb0] sm:$0x7]  ;;  %v7316_v47 = vld [vmem:[#allocation22_spill] sm:$0xff]  ;;  %1339 = vst.msk [vmem:[#allocation2 + $0x968] sm:$0xff] %vm660_vm1, %v1300_v48  ;;  %v1301_v45 = vpack.c.bf16 %v3756_v57, %v3756_v57 }
  0xe5   : > { %2375 = vmatpush1.bf16.msra.mxu0 %v7309_v12  ;;  %v7317_v12 = vpack.c.bf16 %v7315_v46, %v7316_v47  ;;  %v2152_v2 = vld [vmem:[#allocation2 + $0xa08] sm:$0xff]  ;;  %v1303_v9 = vpack.c.bf16 %v3758_v23, %v3758_v23  ;;  %1179 = vst.msk [vmem:[#allocation2 + $0x950] sm:$0xff] %vm660_vm1, %v1140_v61  ;;  %v1186_v11 = vld [vmem:[#allocation2 + $0xa20] sm:$0x3]  ;;  %v7318_v38 = vld [vmem:[#allocation34_spill] sm:$0xff] }
  0xe6   : > { %2414 = vmatpush1.bf16.msra.mxu1 %v7314_v35  ;;  %2376 = vmatprep.subr.bf16.mxu0 %v2126_v49  ;;  %v1346_v35 = vld [vmem:[#allocation2 + $0xa38] sm:$0x3]  ;;  %v3757_v60 = vld [vmem:[%s4246_s25 + $0xba8] sm:$0x7]  ;;  %v7319_v8 = vld [vmem:[#allocation33_spill] sm:$0xff]  ;;  %v1341_v46 = vsel %vm4385_vm4, %v1301_v45, %v1340_v31 }
  0xe7   : > { %2415 = vmatprep.subr.bf16.mxu1 %v7317_v12  ;;  %v3683_v49 = vld [vmem:[%s4246_s25 + $0x958] sm:$0x7]  ;;  %v7320_v63 = vpack.c.bf16 %v7318_v38, %v7319_v8  ;;  %v1347_v57 = vsel %vm4418_vm6, %v1303_v9, %v1346_v35  ;;  %v1302_v48 = vpack.c.bf16 %v3757_v60, %v3757_v60  ;;  %v1343_v23 = vld [vmem:[#allocation2 + $0xa30] sm:$0x3]  ;;  %v5693_v47 = vld [vmem:[%s4246_s25 + $0xbc0] sm:$0xff] }
  0xe8   : > { %v1143_v54 = vpack.c.bf16 %v3683_v49, %v3683_v49  ;;  %v5696_v61 = vld [vmem:[%s4246_s25 + $0xbd8] sm:$0xff]  ;;  %v7321_v12 = vld [vmem:[#allocation24_spill] sm:$0xff]  ;;  %v7322_v49 = vld [vmem:[#allocation23_spill] sm:$0xff]  ;;  %1342 = vst [vmem:[#allocation2 + $0xa28] sm:$0x3] %v1341_v46 }
  0xe9   : > { %2377 = vmatpush1.bf16.msra.mxu0 %v7320_v63  ;;  %v7323_v19 = vpack.c.bf16 %v7321_v12, %v7322_v49  ;;  %v2151_v8 = vld [vmem:[#allocation2 + $0xa00] sm:$0xff]  ;;  %1348 = vst [vmem:[#allocation2 + $0xa38] sm:$0x3] %v1347_v57  ;;  %v5706_v60 = vld [vmem:[%s4246_s25 + $0xe10] sm:$0xff]  ;;  %v5709_v31 = vld [vmem:[%s4246_s25 + $0xe28] sm:$0xff] }
  0xea   : > { %2378 = vmatprep.subr.bf16.mxu0 %v2152_v2  ;;  %v1187_v63 = vsel %vm4418_vm6, %v1143_v54, %v1186_v11  ;;  %7324 = vst [vmem:[#allocation17_spill] sm:$0xff] %v5706_v60  ;;  %7325 = vst [vmem:[#allocation16_spill] sm:$0xff] %v5709_v31  ;;  %v7326_v45 = vld [vmem:[#allocation26_spill] sm:$0xff]  ;;  %v7327_v9 = vld [vmem:[#allocation25_spill] sm:$0xff]  ;;  %v1344_v2 = vsel %vm4385_vm4, %v1302_v48, %v1343_v23 }
  0xeb   : > { %2416 = vmatpush1.bf16.msra.mxu1 %v7323_v19  ;;  %v7328_v19 = vpack.c.bf16 %v7326_v45, %v7327_v9  ;;  %1188 = vst [vmem:[#allocation2 + $0xa20] sm:$0x3] %v1187_v63  ;;  %v5721_v54 = vld [vmem:[%s7041_s1] ss:$2 sm:$0xff]  ;;  %v5724_v11 = vld [vmem:[%s4246_s25 + $0xbb8] sm:$0xff]  ;;  %v5729_v46 = vld [vmem:[%s4246_s25 + $0xbd0] sm:$0xff] }
  0xec   : > { %1345 = vst [vmem:[#allocation2 + $0xa30] sm:$0x3] %v1344_v2  ;;  %2912 = vrot.lane.b32.xlu0 %v5721_v54, %s4055_s6  ;;  %v3761_v57 = vld [vmem:[%s4246_s25 + $0xbc8] sm:$0xff]  ;;  %v3764_v48 = vld [vmem:[%s4246_s25 + $0xbe0] sm:$0xff]  ;;  %v5736_v49 = vld [vmem:[%s4246_s25 + $0xbf0] sm:$0xff] }
  0xed   : > { %2417 = vmatprep.subr.bf16.mxu1 %v7328_v19  ;;  %2379 = vmatpush1.bf16.msra.mxu0 %v2151_v8  ;;  %v1427_v12 = vpack.c.bf16 %v3764_v48, %v3761_v57  ;;  %7329 = vst [vmem:[#allocation10_spill] sm:$0xff] %v5736_v49  ;;  %v5739_v63 = vld [vmem:[%s4246_s25 + $0xc08] sm:$0xff]  ;;  %v5742_v45 = vld [vmem:[%s4246_s25 + $0xe40] sm:$0xff]  ;;  %v7331_v9 = vld [vmem:[#allocation30_spill] sm:$0xff]  ;;  %v7334_v8 = vpack.c.bf16 %v5327_v0, %v5324_v5 }
  0xee   : > { %7330 = vst [vmem:[#allocation19_spill] sm:$0xff] %v5742_v45  ;;  %v7332_v19 = vld [vmem:[#allocation29_spill] sm:$0xff]  ;;  %v1843_v35 = vld [vmem:[#allocation2 + $0x60] sm:$0xff]  ;;  %v5753_v48 = vld [vmem:[%s4246_s25 + $0xe58] sm:$0xff] }
  0xef   : > { %v7333_v2 = vpack.c.bf16 %v7331_v9, %v7332_v19  ;;  %2440 = vmatprep.subr.bf16.mxu0 %v7334_v8  ;;  %7335 = vst [vmem:[#allocation18_spill] sm:$0xff] %v5753_v48  ;;  %v5756_v23 = vld [vmem:[%s4246_s25 + $0xbe8] sm:$0xff]  ;;  %v7338_v60 = vld [vmem:[#allocation31_spill] sm:$0xff]  ;;  %v2154_v9 = vld [vmem:[#allocation2 + $0xa18] sm:$0xff] }
  0xf0   : > { %7336 = vst [vmem:[#allocation8_spill] sm:$0xff] %v5756_v23  ;;  %v7337_v38 = vld [vmem:[#allocation32_spill] sm:$0xff]  ;;  %1466 = vst.msk [vmem:[#allocation2 + $0x90] sm:$0xff] %vm660_vm1, %v1427_v12  ;;  %v5765_v0 = vld [vmem:[%s4246_s25 + $0xc00] sm:$0xff] }
  0xf1   : > { %2418 = vmatpush1.bf16.msra.mxu1 %v7333_v2  ;;  %v7339_v31 = vpack.c.bf16 %v7337_v38, %v7338_v60  ;;  %7340 = vst [vmem:[#allocation9_spill] sm:$0xff] %v5765_v0  ;;  %v3767_v19 = vld [vmem:[%s4246_s25 + $0xbf8] sm:$0xff]  ;;  %v5771_v2 = vld [vmem:[%s7040_s0] ss:$8 sps:$4 sm:$0xff]   ;;  %v3770_v60 = vld [vmem:[%s4246_s25 + $0xc10] sm:$0xff]  ;;  %v7345_v0 = vpack.c.bf16 %v5354_v22, %v5351_v53 }
  0xf2   : > { %2387 = vmatmul.mubr.bf16.vlgmr.msra.gmra.mrb[8].mxu0 %v5771_v2  ;;  %v5781_v12 = vld [vmem:[%s4246_s25 + $0xc38] sm:$0xff]  ;;  %v2153_v8 = vld [vmem:[#allocation2 + $0xa10] sm:$0xff]  ;;  %v1430_v5 = vpack.c.bf16 %v3770_v60, %v3767_v19  ;;  %v7342_v45 = vld [vmem:[#allocation36_spill] sm:$0xff] }
  0xf3   : > { %2419 = vmatprep.subr.bf16.mxu1 %v7339_v31  ;;  %v5778_v31 = vld [vmem:[%s4246_s25 + $0xc20] sm:$0xff]  ;;  %2441 = vmatpush1.bf16.msra.mxu0 %v1843_v35  ;;  %v5788_v38 = vld [vmem:[%s4246_s25 + $0xe70] sm:$0xff]  ;;  %v5797_v49 = vld [vmem:[%s4246_s25 + $0xe88] sm:$0xff] }
  0xf4   : > { %3992 = vmatprep.mubr.msk.bf16.mxu0 %vm2178_vm0, %v5315_v42  ;;  %7341 = vst [vmem:[#allocation28_spill] sm:$0xff] %v5788_v38  ;;  %v7343_v48 = vld [vmem:[#allocation35_spill] sm:$0xff]  ;;  %2442 = vmatprep.subr.bf16.mxu0 %v7345_v0  ;;  %v1869_v35 = vld [vmem:[#allocation2 + $0x130] sm:$0xff]  ;;  %7346 = vst [vmem:[#allocation27_spill] sm:$0xff] %v5797_v49 }
  0xf5   : > { %v7344_v23 = vpack.c.bf16 %v7342_v45, %v7343_v48  ;;  %v5800_v19 = vld [vmem:[%s4246_s25 + $0xc18] sm:$0xff]  ;;  %1469 = vst.msk [vmem:[#allocation2 + $0x160] sm:$0xff] %vm660_vm1, %v1430_v5  ;;  %v3773_v48 = vld [vmem:[%s4246_s25 + $0xc28] sm:$0xff]  ;;  %v3776_v22 = vld [vmem:[%s4246_s25 + $0xc40] sm:$0xff] }
  0xf6   : > { %v1846_v60 = vld [vmem:[#allocation2 + $0x78] sm:$0xff]  ;;  %v5813_v0 = vld [vmem:[%s4246_s25 + $0xc50] sm:$0xff]  ;;  %v5816_v57 = vld [vmem:[%s4246_s25 + $0xc68] sm:$0xff] }
  0xf7   : > { %2420 = vmatpush1.bf16.msra.mxu1 %v7344_v23  ;;  %v5806_v23 = vld [vmem:[%s4246_s25 + $0xc30] sm:$0xff]  ;;  %7347 = vst [vmem:[#allocation21_spill] sm:$0xff] %v5813_v0  ;;  %7348 = vst [vmem:[#allocation20_spill] sm:$0xff] %v5816_v57  ;;  %2443 = vmatpush1.bf16.msra.mxu0 %v1869_v35  ;;  %v5821_v45 = vld [vmem:[%s4246_s25 + $0xea0] sm:$0xff]  ;;  %v7351_v35 = vpack.c.bf16 %v5379_v6, %v5376_v43 }
  0xf8   : > { %2421 = vmatprep.subr.bf16.mxu1 %v2154_v9  ;;  %v1433_v9 = vpack.c.bf16 %v3776_v22, %v3773_v48  ;;  %7349 = vst [vmem:[#allocation11_spill] sm:$0xff] %v5821_v45  ;;  %v5824_v38 = vld [vmem:[%s4246_s25 + $0xeb8] sm:$0xff]  ;;  %v5827_v49 = vld [vmem:[%s4246_s25 + $0xc48] sm:$0xff]  ;;  %v1895_v48 = vld [vmem:[#allocation2 + $0x200] sm:$0xff]  ;;  %v7356_v22 = vpack.c.bf16 %v5343_v36, %v5340_v62 }
  0xf9   : > { %7350 = vst [vmem:[#allocation22_spill] sm:$0xff] %v5824_v38  ;;  %v1872_v53 = vld [vmem:[#allocation2 + $0x148] sm:$0xff]  ;;  %2444 = vmatprep.subr.bf16.mxu0 %v7351_v35  ;;  %v5835_v5 = vld [vmem:[%s4246_s25 + $0xc60] sm:$0xff]  ;;  %v3779_v0 = vld [vmem:[%s4246_s25 + $0xc58] sm:$0xff] }
  0xfa   : > { %1472 = vst.msk [vmem:[#allocation2 + $0x230] sm:$0xff] %vm660_vm1, %v1433_v9  ;;  %v3782_v57 = vld [vmem:[%s4246_s25 + $0xc70] sm:$0xff]  ;;  %v5843_v43 = vld [vmem:[%s4246_s25 + $0xc80] sm:$0xff]  ;;  %v5846_v6 = vld [vmem:[%s4246_s25 + $0xc98] sm:$0xff] }
  0xfb   : > { %2422 = vmatpush1.bf16.msra.mxu1 %v2153_v8  ;;  %7352 = vst [vmem:[#allocation34_spill] sm:$0xff] %v5843_v43  ;;  %7353 = vst [vmem:[#allocation33_spill] sm:$0xff] %v5846_v6  ;;  %v1436_v35 = vpack.c.bf16 %v3782_v57, %v3779_v0  ;;  %v5851_v45 = vld [vmem:[%s4246_s25 + $0xed0] sm:$0xff]  ;;  %v5854_v38 = vld [vmem:[%s4246_s25 + $0xee8] sm:$0xff]  ;;  %2445 = vmatpush1.bf16.msra.mxu0 %v1895_v48  ;;  %v7357_v6 = vpack.c.bf16 %v5415_v50, %v5408_v37 }
  0xfc   : > { %2483 = vmatprep.subr.bf16.mxu1 %v1846_v60  ;;  %7354 = vst [vmem:[#allocation24_spill] sm:$0xff] %v5851_v45  ;;  %7355 = vst [vmem:[#allocation23_spill] sm:$0xff] %v5854_v38  ;;  %v5857_v60 = vld [vmem:[%s4246_s25 + $0xc78] sm:$0xff]  ;;  %v5863_v8 = vld [vmem:[%s4246_s25 + $0xc90] sm:$0xff] }
  0xfd   : > { %v3785_v57 = vld [vmem:[%s4246_s25 + $0xc88] sm:$0xff]  ;;  %v3788_v0 = vld [vmem:[%s4246_s25 + $0xca0] sm:$0xff]  ;;  %v1898_v43 = vld [vmem:[#allocation2 + $0x218] sm:$0xff]  ;;  %2446 = vmatprep.subr.bf16.mxu0 %v7357_v6  ;;  %1475 = vst.msk [vmem:[#allocation2 + $0x300] sm:$0xff] %vm660_vm1, %v1436_v35  ;;  %v7362_v6 = vpack.c.bf16 %v5371_v41, %v5368_v56 }
  0xfe   : > { %2430 = vmatmul.mubr.bf16.vlgmr.msra.gmra.mrb[8].mxu1 %v5771_v2  ;;  %v1921_v48 = vld [vmem:[#allocation2 + $0x2d0] sm:$0xff]  ;;  %v1439_v45 = vpack.c.bf16 %v3788_v0, %v3785_v57  ;;  %v5880_v62 = vld [vmem:[%s4246_s25 + $0xcc8] sm:$0xff]  ;;  %v5887_v37 = vld [vmem:[%s4246_s25 + $0xf00] sm:$0xff] }
  0xff   : > { %2484 = vmatpush1.bf16.msra.mxu1 %v7356_v22  ;;  %v5877_v38 = vld [vmem:[%s4246_s25 + $0xcb0] sm:$0xff]  ;;  %3993 = vmatprep.mubr.msk.bf16.mxu1 %vm2178_vm0, %v5315_v42  ;;  %7358 = vst [vmem:[#allocation26_spill] sm:$0xff] %v5887_v37  ;;  %v5890_v50 = vld [vmem:[%s4246_s25 + $0xf18] sm:$0xff]  ;;  %v5893_v22 = vld [vmem:[%s4246_s25 + $0xca8] sm:$0xff]  ;;  %v7363_v37 = vpack.c.bf16 %v5442_v44, %v5439_v18 }
 0x100   : > { %2485 = vmatprep.subr.bf16.mxu1 %v1872_v53  ;;  %7359 = vst [vmem:[#allocation25_spill] sm:$0xff] %v5890_v50  ;;  %1478 = vst.msk [vmem:[#allocation2 + $0x3d0] sm:$0xff] %vm660_vm1, %v1439_v45  ;;  %v5899_v53 = vld [vmem:[%s4246_s25 + $0xcc0] sm:$0xff]  ;;  %v3791_v35 = vld [vmem:[%s4246_s25 + $0xcb8] sm:$0xff]  ;;  %2447 = vmatpush1.bf16.msra.mxu0 %v1921_v48 }
 0x101   : > { %v3794_v42 = vld [vmem:[%s4246_s25 + $0xcd0] sm:$0xff]  ;;  %v5906_v36 = vld [vmem:[%s4246_s25 + $0xce0] sm:$0xff]  ;;  %v5909_v45 = vld [vmem:[%s4246_s25 + $0xcf8] sm:$0xff]  ;;  %2448 = vmatprep.subr.bf16.mxu0 %v7363_v37 }
 0x102   : > { %v1442_v0 = vpack.c.bf16 %v3794_v42, %v3791_v35  ;;  %7360 = vst [vmem:[#allocation30_spill] sm:$0xff] %v5906_v36  ;;  %v5912_v9 = vld [vmem:[%s4246_s25 + $0xf30] sm:$0xff]  ;;  %v1924_v48 = vld [vmem:[#allocation2 + $0x2e8] sm:$0xff]  ;;  %v1947_v35 = vld [vmem:[#allocation2 + $0x3a0] sm:$0xff] }
 0x103   : > { %7361 = vst [vmem:[#allocation29_spill] sm:$0xff] %v5912_v9  ;;  %2486 = vmatpush1.bf16.msra.mxu1 %v7362_v6  ;;  %v5923_v57 = vld [vmem:[%s4246_s25 + $0xf48] sm:$0xff]  ;;  %v5926_v50 = vld [vmem:[%s4246_s25 + $0xcd8] sm:$0xff]  ;;  %v5932_v41 = vld [vmem:[%s4246_s25 + $0xcf0] sm:$0xff] }
 0x104   : > { %7364 = vst [vmem:[#allocation32_spill] sm:$0xff] %v5923_v57  ;;  %2487 = vmatprep.subr.bf16.mxu1 %v1898_v43  ;;  %1481 = vst.msk [vmem:[#allocation2 + $0x4a0] sm:$0xff] %vm660_vm1, %v1442_v0  ;;  %v3797_v18 = vld [vmem:[%s4246_s25 + $0xce8] sm:$0xff]  ;;  %v3800_v44 = vld [vmem:[%s4246_s25 + $0xd00] sm:$0xff]  ;;  %2449 = vmatpush1.bf16.msra.mxu0 %v1947_v35 }
 0x105   : > { %v1445_v6 = vpack.c.bf16 %v3800_v44, %v3797_v18  ;;  %v5939_v42 = vld [vmem:[%s4246_s25 + $0xd10] sm:$0xff]  ;;  %v5942_v36 = vld [vmem:[%s4246_s25 + $0xd28] sm:$0xff]  ;;  %v5945_v43 = vld [vmem:[%s4246_s25 + $0xf60] sm:$0xff]  ;;  %v7368_v18 = vpack.c.bf16 %v5405_v32, %v5397_v10  ;;  %v7369_v44 = vpack.c.bf16 %v5476_v40, %v5467_v28  ;;  %v7373_v32 = vpack.c.bf16 %v5436_v55, %v5430_v26 }
 0x106   : > { %7365 = vst [vmem:[#allocation31_spill] sm:$0xff] %v5939_v42  ;;  %7366 = vst [vmem:[#allocation36_spill] sm:$0xff] %v5945_v43  ;;  %v1973_v0 = vld [vmem:[#allocation2 + $0x470] sm:$0xff]  ;;  %v5950_v9 = vld [vmem:[%s4246_s25 + $0xf78] sm:$0xff] }
 0x107   : > { %7367 = vst [vmem:[#allocation35_spill] sm:$0xff] %v5950_v9  ;;  %v5953_v57 = vld [vmem:[%s4246_s25 + $0xd08] sm:$0xff]  ;;  %2488 = vmatpush1.bf16.msra.mxu1 %v7368_v18  ;;  %2450 = vmatprep.subr.bf16.mxu0 %v7369_v44  ;;  %1484 = vst.msk [vmem:[#allocation2 + $0x570] sm:$0xff] %vm660_vm1, %v1445_v6  ;;  %v5965_v56 = vld [vmem:[%s4246_s25 + $0xd20] sm:$0xff] }
 0x108   : > { %v3803_v37 = vld [vmem:[%s4246_s25 + $0xd18] sm:$0xff]  ;;  %v3806_v42 = vld [vmem:[%s4246_s25 + $0xd30] sm:$0xff]  ;;  %2489 = vmatprep.subr.bf16.mxu1 %v1924_v48  ;;  %v5972_v40 = vld [vmem:[%s4246_s25 + $0xd40] sm:$0xff]  ;;  %2451 = vmatpush1.bf16.msra.mxu0 %v1973_v0  ;;  %v7374_v0 = vpack.c.bf16 %v5503_v20, %v5500_v33 }
 0x109   : > { %v1950_v10 = vld [vmem:[#allocation2 + $0x3b8] sm:$0xff]  ;;  %v1448_v28 = vpack.c.bf16 %v3806_v42, %v3803_v37  ;;  %7370 = vst [vmem:[#allocation37_spill] sm:$0xff] %v5972_v40  ;;  %v5980_v44 = vld [vmem:[%s4246_s25 + $0xf90] sm:$0xff]  ;;  %v5983_v35 = vld [vmem:[%s4246_s25 + $0xfa8] sm:$0xff] }
 0x10a   : > { %v5975_v18 = vld [vmem:[%s4246_s25 + $0xd58] sm:$0xff]  ;;  %7371 = vst [vmem:[#allocation38_spill] sm:$0xff] %v5980_v44  ;;  %7372 = vst [vmem:[#allocation39_spill] sm:$0xff] %v5983_v35  ;;  %v5992_v42 = vld [vmem:[%s4246_s25 + $0xd50] sm:$0xff]  ;;  %2452 = vmatprep.subr.bf16.mxu0 %v7374_v0 }
 0x10b   : > { %v5986_v43 = vld [vmem:[%s4246_s25 + $0xd38] sm:$0xff]  ;;  %1487 = vst.msk [vmem:[#allocation2 + $0x640] sm:$0xff] %vm660_vm1, %v1448_v28  ;;  %v3809_v37 = vld [vmem:[%s4246_s25 + $0xd48] sm:$0xff]  ;;  %v3812_v6 = vld [vmem:[%s4246_s25 + $0xd60] sm:$0xff]  ;;  %2490 = vmatpush1.bf16.msra.mxu1 %v7373_v32  ;;  %v7378_v32 = vpack.c.bf16 %v5464_v27, %v5461_v51 }
 0x10c   : > { %v1976_v9 = vld [vmem:[#allocation2 + $0x488] sm:$0xff]  ;;  %v1999_v28 = vld [vmem:[#allocation2 + $0x540] sm:$0xff]  ;;  %v1451_v44 = vpack.c.bf16 %v3812_v6, %v3809_v37  ;;  %v6005_v35 = vld [vmem:[%s4246_s25 + $0xd70] sm:$0xff]  ;;  %2491 = vmatprep.subr.bf16.mxu1 %v1950_v10 }
 0x10d   : > { %7375 = vst [vmem:[#allocation40_spill] sm:$0xff] %v6005_v35  ;;  %v6008_v40 = vld [vmem:[%s4246_s25 + $0xd88] sm:$0xff]  ;;  %v6013_v55 = vld [vmem:[%s4246_s25 + $0xfc0] sm:$0xff]  ;;  %v6016_v33 = vld [vmem:[%s4246_s25 + $0xfd8] sm:$0xff]  ;;  %2453 = vmatpush1.bf16.msra.mxu0 %v1999_v28  ;;  %v7379_v28 = vpack.c.bf16 %v5529_v29, %v5526_v16 }
 0x10e   : > { %7376 = vst [vmem:[#allocation41_spill] sm:$0xff] %v6013_v55  ;;  %7377 = vst [vmem:[#allocation42_spill] sm:$0xff] %v6016_v33  ;;  %v6019_v20 = vld [vmem:[%s4246_s25 + $0xd68] sm:$0xff]  ;;  %v6025_v6 = vld [vmem:[%s4246_s25 + $0xd80] sm:$0xff] }
 0x10f   : > { %1490 = vst.msk [vmem:[#allocation2 + $0x710] sm:$0xff] %vm660_vm1, %v1451_v44  ;;  %v3815_v10 = vld [vmem:[%s4246_s25 + $0xd78] sm:$0xff]  ;;  %v3818_v37 = vld [vmem:[%s4246_s25 + $0xd90] sm:$0xff]  ;;  %v6032_v35 = vld [vmem:[%s4246_s25 + $0xda0] sm:$0xff]  ;;  %2492 = vmatpush1.bf16.msra.mxu1 %v7378_v32  ;;  %2454 = vmatprep.subr.bf16.mxu0 %v7379_v28 }
 0x110   : > { %v2025_v0 = vld [vmem:[#allocation2 + $0x610] sm:$0xff]  ;;  %v1454_v48 = vpack.c.bf16 %v3818_v37, %v3815_v10  ;;  %v6035_v44 = vld [vmem:[%s4246_s25 + $0xdb8] sm:$0xff]  ;;  %v6049_v10 = vld [vmem:[%s4246_s25 + $0x1008] sm:$0xff]  ;;  %2493 = vmatprep.subr.bf16.mxu1 %v1976_v9 }
 0x111   : > { %v2002_v55 = vld [vmem:[#allocation2 + $0x558] sm:$0xff]  ;;  %v6046_v26 = vld [vmem:[%s4246_s25 + $0xff0] sm:$0xff]  ;;  %7381 = vst [vmem:[#allocation44_spill] sm:$0xff] %v6049_v10  ;;  %v3821_v29 = vld [vmem:[%s4246_s25 + $0xda8] sm:$0xff]  ;;  %2455 = vmatpush1.bf16.msra.mxu0 %v2025_v0 }
 0x112   : > { %7380 = vst [vmem:[#allocation43_spill] sm:$0xff] %v6046_v26  ;;  %v6052_v37 = vld [vmem:[%s4246_s25 + $0xd98] sm:$0xff]  ;;  %1493 = vst.msk [vmem:[#allocation2 + $0x7e0] sm:$0xff] %vm660_vm1, %v1454_v48  ;;  %v6058_v27 = vld [vmem:[%s4246_s25 + $0xdb0] sm:$0xff] }
 0x113   : > { %7382 = vst [vmem:[#allocation45_spill] sm:$0xff] %v6052_v37  ;;  %7383 = vst [vmem:[#allocation46_spill] sm:$0xff] %v6058_v27  ;;  %v3824_v16 = vld [vmem:[%s4246_s25 + $0xdc0] sm:$0xff]  ;;  %v6067_v9 = vld [vmem:[%s7041_s1 + $0x10] ss:$2 sm:$0xff] }
 0x114   : > { %v2051_v32 = vld [vmem:[#allocation2 + $0x6e0] sm:$0xff]  ;;  %v1457_v33 = vpack.c.bf16 %v3824_v16, %v3821_v29  ;;  %v6070_v48 = vld [vmem:[%s4246_s25 + $0xdd0] sm:$0xff]  ;;  %2914 = vrot.lane.b32.xlu0 %v6067_v9, %s4055_s6  ;;  %v6075_v51 = vld [vmem:[%s4246_s25 + $0xde8] sm:$0xff]  ;;  %v7387_v29 = vpack.c.bf16 %v5492_v34, %v5489_v14  ;;  %v7388_v16 = vpack.c.bf16 %v5563_v4, %v5554_v39 }
 0x115   : > { %7384 = vst [vmem:[#allocation47_spill] sm:$0xff] %v6070_v48  ;;  %v6078_v26 = vld [vmem:[%s4246_s25 + $0x1020] sm:$0xff]  ;;  %v6081_v10 = vld [vmem:[%s4246_s25 + $0x1038] sm:$0xff]  ;;  %v6095_v37 = vld [vmem:[%s4246_s25 + $0xdc8] sm:$0xff] }
 0x116   : > { %7385 = vst [vmem:[#allocation48_spill] sm:$0xff] %v6078_v26  ;;  %7386 = vst [vmem:[#allocation49_spill] sm:$0xff] %v6081_v10  ;;  %2494 = vmatpush1.bf16.msra.mxu1 %v7387_v29  ;;  %2456 = vmatprep.subr.bf16.mxu0 %v7388_v16  ;;  %v6098_v27 = vld [vmem:[%s4246_s25 + $0xde0] sm:$0xff]  ;;  %v3827_v14 = vld [vmem:[%s4246_s25 + $0xdd8] sm:$0xff] }
 0x117   : > { %1496 = vst.msk [vmem:[#allocation2 + $0x8b0] sm:$0xff] %vm660_vm1, %v1457_v33  ;;  %7389 = vst [vmem:[#allocation50_spill] sm:$0xff] %v6095_v37  ;;  %2495 = vmatprep.subr.bf16.mxu1 %v2002_v55  ;;  %v2028_v34 = vld [vmem:[#allocation2 + $0x628] sm:$0xff]  ;;  %v3830_v4 = vld [vmem:[%s4246_s25 + $0xdf0] sm:$0xff]  ;;  %2457 = vmatpush1.bf16.msra.mxu0 %v2051_v32  ;;  %v7392_v37 = vpack.c.bf16 %v5591_v59, %v5588_v30 }
 0x118   : > { %7390 = vst [vmem:[#allocation51_spill] sm:$0xff] %v6098_v27  ;;  %v6107_v33 = vld [vmem:[%s7041_s1 + $0x20] ss:$2 sm:$0xff]  ;;  %v1460_v29 = vpack.c.bf16 %v3830_v4, %v3827_v14  ;;  %v4002_v16 = vld [vmem:[%s7041_s1 + $0x11] ss:$2 sm:$0xff]  ;;  %v7391_v14 = vpack.c.bf16 %v5523_v7, %v5517_v24 }
 0x119   : > { %2916 = vrot.lane.b32.xlu1 %v6107_v33, %s4055_s6  ;;  %v3832_v55 = vld [vmem:[%s4246_s25 + $0xe00] sm:$0x7]  ;;  %v1503_v28 = vld [vmem:[#allocation2 + $0xa48] sm:$0x3]  ;;  %2963 = vrot.lane.b32.xlu0 %v4002_v16, %s4056_s15  ;;  %v3906_v0 = vld [vmem:[%s4246_s25 + $0x1050] sm:$0x7] }
 0x11a   : > { %v1462_v39 = vpack.c.bf16 %v3832_v55, %v3832_v55  ;;  %v1660_v26 = vld [vmem:[#allocation2 + $0xa58] sm:$0x3]  ;;  %2496 = vmatpush1.bf16.msra.mxu1 %v7391_v14  ;;  %2458 = vmatprep.subr.bf16.mxu0 %v7392_v37  ;;  %v2077_v27 = vld [vmem:[#allocation2 + $0x7b0] sm:$0xff]  ;;  %1499 = vst.msk [vmem:[#allocation2 + $0x980] sm:$0xff] %vm660_vm1, %v1460_v29  ;;  %v1621_v32 = vpack.c.bf16 %v3906_v0, %v3906_v0  ;;  %v1500_v55 = vld [vmem:[#allocation2 + $0xa40] sm:$0x3] }
 0x11b   : > { %v3831_v10 = vld [vmem:[%s4246_s25 + $0xdf8] sm:$0x7]  ;;  %v3833_v48 = vld [vmem:[%s4246_s25 + $0xe08] sm:$0x7]  ;;  %2497 = vmatprep.subr.bf16.mxu1 %v2028_v34  ;;  %v1506_v14 = vld [vmem:[#allocation2 + $0xa50] sm:$0x3]  ;;  %2459 = vmatpush1.bf16.msra.mxu0 %v2077_v27 }
 0x11c   : > { %v2054_v4 = vld [vmem:[#allocation2 + $0x6f8] sm:$0xff]  ;;  %v1461_v16 = vpack.c.bf16 %v3831_v10, %v3831_v10  ;;  %v1504_v24 = vsel %vm4385_vm4, %v1462_v39, %v1503_v28  ;;  %v1463_v7 = vpack.c.bf16 %v3833_v48, %v3833_v48  ;;  %v4001_v30 = vld [vmem:[%s7041_s1 + $0x1] ss:$2 sm:$0xff]  ;;  %v1661_v37 = vsel %vm4385_vm4, %v1621_v32, %v1660_v26  ;;  %v6139_v28 = vld [vmem:[%s4246_s25 + $0x1070] sm:$0xff] }
 0x11d   : > { %v3836_v59 = vld [vmem:[%s4246_s25 + $0xe20] sm:$0xff]  ;;  %1505 = vst [vmem:[#allocation2 + $0xa48] sm:$0x3] %v1504_v24  ;;  %2961 = vrot.lane.b32.xlu1 %v4001_v30, %s4056_s15  ;;  %v3839_v0 = vld [vmem:[%s4246_s25 + $0xe38] sm:$0xff]  ;;  %v6142_v48 = vld [vmem:[%s4246_s25 + $0x1088] sm:$0xff] }
 0x11e   : > { %v1501_v10 = vsel %vm4385_vm4, %v1461_v16, %v1500_v55  ;;  %v2103_v34 = vld [vmem:[#allocation2 + $0x880] sm:$0xff]  ;;  %1662 = vst [vmem:[#allocation2 + $0xa58] sm:$0x3] %v1661_v37  ;;  %v1507_v26 = vsel %vm4418_vm6, %v1463_v7, %v1506_v14  ;;  %2998 = vrot.lane.b32.xlu0 %v5721_v54, %s4057_s3  ;;  %v1587_v39 = vpack.c.bf16 %v3839_v0, %v3836_v59  ;;  %v6151_v27 = vld [vmem:[%s4246_s25 + $0xe18] sm:$0xff]  ;;  %v6154_v32 = vld [vmem:[%s4246_s25 + $0xe30] sm:$0xff] }
 0x11f   : > { %1502 = vst [vmem:[#allocation2 + $0xa40] sm:$0x3] %v1501_v10  ;;  %v7393_v16 = vpack.c.bf16 %v5551_v58, %v5548_v1  ;;  %v2080_v55 = vld [vmem:[#allocation2 + $0x7c8] sm:$0xff]  ;;  %v7394_v54 = vpack.c.bf16 %v5619_v15, %v5616_v13  ;;  %1508 = vst [vmem:[#allocation2 + $0xa50] sm:$0x3] %v1507_v26  ;;  %v6168_v14 = vld [vmem:[%s4246_s25 + $0x1080] sm:$0xff] }
 0x120   : > { %v6165_v7 = vld [vmem:[%s4246_s25 + $0x1068] sm:$0xff]  ;;  %v3842_v30 = vld [vmem:[%s4246_s25 + $0xe50] sm:$0xff]  ;;  %1626 = vst.msk [vmem:[#allocation2 + $0xa8] sm:$0xff] %vm660_vm1, %v1587_v39  ;;  %v6176_v58 = vld [vmem:[%s4246_s25 + $0x10a0] sm:$0xff] }
 0x121   : > { %2498 = vmatpush1.bf16.msra.mxu1 %v7393_v16  ;;  %2460 = vmatprep.subr.bf16.mxu0 %v7394_v54  ;;  %v3845_v1 = vld [vmem:[%s4246_s25 + $0xe68] sm:$0xff]  ;;  %v6179_v15 = vld [vmem:[%s4246_s25 + $0x10b8] sm:$0xff]  ;;  %v2129_v26 = vld [vmem:[#allocation2 + $0x950] sm:$0xff] }
 0x122   : > { %2499 = vmatprep.subr.bf16.mxu1 %v2054_v4  ;;  %v1590_v59 = vpack.c.bf16 %v3845_v1, %v3842_v30  ;;  %v6184_v10 = vld [vmem:[%s4246_s25 + $0xe48] sm:$0xff]  ;;  %v6187_v4 = vld [vmem:[%s4246_s25 + $0xe60] sm:$0xff]  ;;  %v6190_v0 = vld [vmem:[%s4246_s25 + $0x1098] sm:$0xff]  ;;  %2461 = vmatpush1.bf16.msra.mxu0 %v2103_v34  ;;  %v7397_v30 = vpack.c.bf16 %v5582_v17, %v5579_v52 }
 0x123   : > { %7395 = vst [vmem:[#allocation52_spill] sm:$0xff] %v6190_v0  ;;  %v6195_v16 = vld [vmem:[%s4246_s25 + $0x10b0] sm:$0xff]  ;;  %v3848_v54 = vld [vmem:[%s4246_s25 + $0xe80] sm:$0xff]  ;;  %3002 = vrot.lane.b32.xlu0 %v6107_v33, %s4057_s3  ;;  %v7398_v1 = vld [vmem:[#allocation14_spill] sm:$0xff] }
 0x124   : > { %7396 = vst [vmem:[#allocation53_spill] sm:$0xff] %v6195_v16  ;;  %v7399_v34 = vpack.c.bf16 %v5653_v3, %v7398_v1  ;;  %1629 = vst.msk [vmem:[#allocation2 + $0x178] sm:$0xff] %vm660_vm1, %v1590_v59  ;;  %v3851_v13 = vld [vmem:[%s4246_s25 + $0xe98] sm:$0xff]  ;;  %v6211_v29 = vld [vmem:[%s4246_s25 + $0x10d0] sm:$0xff] }
 0x125   : > { %2500 = vmatpush1.bf16.msra.mxu1 %v7397_v30  ;;  %7400 = vst [vmem:[#allocation14_spill] sm:$0xff] %v6211_v29  ;;  %v6214_v33 = vld [vmem:[%s4246_s25 + $0x10e8] sm:$0xff]  ;;  %v1593_v17 = vpack.c.bf16 %v3851_v13, %v3848_v54  ;;  %v6219_v30 = vld [vmem:[%s4246_s25 + $0xe78] sm:$0xff]  ;;  %v6222_v59 = vld [vmem:[%s4246_s25 + $0xe90] sm:$0xff] }
 0x126   : > { %2462 = vmatprep.subr.bf16.mxu0 %v7399_v34  ;;  %7401 = vst [vmem:[#allocation54_spill] sm:$0xff] %v6214_v33  ;;  %2501 = vmatprep.subr.bf16.mxu1 %v2080_v55  ;;  %v2156_v52 = vld [vmem:[#allocation2 + $0xa28] sm:$0xff]  ;;  %v2106_v1 = vld [vmem:[#allocation2 + $0x898] sm:$0xff]  ;;  %v6231_v55 = vld [vmem:[%s4246_s25 + $0x10e0] sm:$0xff] }
 0x127   : > { %v6227_v37 = vld [vmem:[%s4246_s25 + $0x10c8] sm:$0xff]  ;;  %2463 = vmatpush1.bf16.msra.mxu0 %v2129_v26  ;;  %1632 = vst.msk [vmem:[#allocation2 + $0x248] sm:$0xff] %vm660_vm1, %v1593_v17  ;;  %7403 = vst [vmem:[#allocation56_spill] sm:$0xff] %v6231_v55  ;;  %v3854_v13 = vld [vmem:[%s4246_s25 + $0xeb0] sm:$0xff] }
 0x128   : > { %7402 = vst [vmem:[#allocation55_spill] sm:$0xff] %v6227_v37  ;;  %v7404_v54 = vld [vmem:[#allocation12_spill] sm:$0xff]  ;;  %v7405_v3 = vld [vmem:[#allocation13_spill] sm:$0xff]  ;;  %2464 = vmatprep.subr.bf16.mxu0 %v2156_v52  ;;  %v2155_v34 = vld [vmem:[#allocation2 + $0xa20] sm:$0xff] }
 0x129   : > { %v7406_v39 = vpack.c.bf16 %v7404_v54, %v7405_v3  ;;  %v2132_v24 = vld [vmem:[#allocation2 + $0x968] sm:$0xff]  ;;  %v6241_v17 = vld [vmem:[%s4246_s25 + $0x1100] sm:$0xff]  ;;  %v6244_v0 = vld [vmem:[%s4246_s25 + $0x1118] sm:$0xff] }
 0x12a   : > { %v3857_v26 = vld [vmem:[%s4246_s25 + $0xec8] sm:$0xff]  ;;  %7407 = vst [vmem:[#allocation12_spill] sm:$0xff] %v6241_v17  ;;  %7408 = vst [vmem:[#allocation13_spill] sm:$0xff] %v6244_v0  ;;  %v6257_v29 = vld [vmem:[%s4246_s25 + $0x10f8] sm:$0xff]  ;;  %v7416_v0 = vpack.c.bf16 %v5696_v61, %v5693_v47 }
 0x12b   : > { %2502 = vmatpush1.bf16.msra.mxu1 %v7406_v39  ;;  %v1596_v33 = vpack.c.bf16 %v3857_v26, %v3854_v13  ;;  %v6247_v3 = vld [vmem:[%s4246_s25 + $0xea8] sm:$0xff]  ;;  %v6250_v39 = vld [vmem:[%s4246_s25 + $0xec0] sm:$0xff]  ;;  %7410 = vst [vmem:[#allocation58_spill] sm:$0xff] %v6257_v29  ;;  %v6260_v37 = vld [vmem:[%s4246_s25 + $0x1110] sm:$0xff]  ;;  %2465 = vmatpush1.bf16.msra.mxu0 %v2155_v34  ;;  %v7421_v13 = vpack.c.bf16 %v5729_v46, %v5724_v11 }
 0x12c   : > { %2503 = vmatprep.subr.bf16.mxu1 %v2106_v1  ;;  %7409 = vst [vmem:[#allocation57_spill] sm:$0xff] %v6247_v3  ;;  %7411 = vst [vmem:[#allocation59_spill] sm:$0xff] %v6260_v37  ;;  %v3860_v1 = vld [vmem:[%s4246_s25 + $0xee0] sm:$0xff]  ;;  %v3863_v26 = vld [vmem:[%s4246_s25 + $0xef8] sm:$0xff]  ;;  %2526 = vmatprep.subr.bf16.mxu0 %v7416_v0 }
 0x12d   : > { %1635 = vst.msk [vmem:[#allocation2 + $0x318] sm:$0xff] %vm660_vm1, %v1596_v33  ;;  %v6268_v55 = vld [vmem:[%s4246_s25 + $0x1130] sm:$0xff]  ;;  %v7413_v52 = vld [vmem:[#allocation15_spill] sm:$0xff]  ;;  %v1599_v34 = vpack.c.bf16 %v3863_v26, %v3860_v1  ;;  %v6277_v16 = vld [vmem:[%s4246_s25 + $0x1148] sm:$0xff] }
 0x12e   : > { %7412 = vst [vmem:[#allocation60_spill] sm:$0xff] %v6268_v55  ;;  %v7414_v17 = vld [vmem:[#allocation5_spill] sm:$0xff]  ;;  %7417 = vst [vmem:[#allocation15_spill] sm:$0xff] %v6277_v16  ;;  %v6280_v33 = vld [vmem:[%s4246_s25 + $0xed8] sm:$0xff]  ;;  %2473 = vmatmul.mubr.bf16.vlgmr.msra.gmra.mrb[12].mxu0 %v5771_v2 }
 0x12f   : > { %v7415_v54 = vpack.c.bf16 %v7413_v52, %v7414_v17  ;;  %v6283_v3 = vld [vmem:[%s4246_s25 + $0xef0] sm:$0xff]  ;;  %v6290_v47 = vld [vmem:[%s4246_s25 + $0x1128] sm:$0xff]  ;;  %v6293_v61 = vld [vmem:[%s4246_s25 + $0x1140] sm:$0xff]  ;;  %1638 = vst.msk [vmem:[#allocation2 + $0x3e8] sm:$0xff] %vm660_vm1, %v1599_v34  ;;  %2527 = vmatpush1.bf16.msra.mxu0 %v7421_v13 }
 0x130   : > { %7418 = vst [vmem:[#allocation5_spill] sm:$0xff] %v6290_v47  ;;  %7419 = vst [vmem:[#allocation61_spill] sm:$0xff] %v6293_v61  ;;  %v3866_v0 = vld [vmem:[%s4246_s25 + $0xf10] sm:$0xff]  ;;  %v2158_v52 = vld [vmem:[#allocation2 + $0xa38] sm:$0xff] }
 0x131   : > { %2504 = vmatpush1.bf16.msra.mxu1 %v7415_v54  ;;  %v3869_v54 = vld [vmem:[%s4246_s25 + $0xf28] sm:$0xff]  ;;  %v6302_v1 = vld [vmem:[%s4246_s25 + $0x1160] sm:$0xff]  ;;  %v2157_v26 = vld [vmem:[#allocation2 + $0xa30] sm:$0xff] }
 0x132   : > { %2505 = vmatprep.subr.bf16.mxu1 %v2132_v24  ;;  %7420 = vst [vmem:[#allocation62_spill] sm:$0xff] %v6302_v1  ;;  %v6310_v17 = vld [vmem:[%s7040_s0 + $0x4] ss:$8 sps:$4 sm:$0xff]   ;;  %v1602_v34 = vpack.c.bf16 %v3869_v54, %v3866_v0  ;;  %v6315_v24 = vld [vmem:[%s4246_s25 + $0x1178] sm:$0xff]  ;;  %v6337_v37 = vld [vmem:[%s4246_s25 + $0x1170] sm:$0xff] }
 0x133   : > { %3994 = vmatprep.mubr.msk.bf16.mxu0 %vm2178_vm0, %v6310_v17  ;;  %7422 = vst [vmem:[#allocation63_spill] sm:$0xff] %v6315_v24  ;;  %v6318_v47 = vld [vmem:[%s4246_s25 + $0xf08] sm:$0xff]  ;;  %v6321_v61 = vld [vmem:[%s4246_s25 + $0xf20] sm:$0xff]  ;;  %v7424_v46 = vld [vmem:[#allocation6_spill] sm:$0xff] }
 0x134   : > { %v7423_v11 = vld [vmem:[#allocation7_spill] sm:$0xff]  ;;  %v7426_v55 = vld [vmem:[#allocation10_spill] sm:$0xff]  ;;  %7429 = vst [vmem:[#allocation6_spill] sm:$0xff] %v6337_v37  ;;  %1641 = vst.msk [vmem:[#allocation2 + $0x4b8] sm:$0xff] %vm660_vm1, %v1602_v34 }
 0x135   : > { %v7425_v13 = vpack.c.bf16 %v7423_v11, %v7424_v46  ;;  %v7427_v16 = vpack.c.bf16 %v5739_v63, %v7426_v55  ;;  %v6334_v29 = vld [vmem:[%s4246_s25 + $0x1158] sm:$0xff]  ;;  %v3872_v11 = vld [vmem:[%s4246_s25 + $0xf40] sm:$0xff]  ;;  %v6345_v55 = vld [vmem:[%s4246_s25 + $0x1190] sm:$0xff] }
 0x136   : > { %7428 = vst [vmem:[#allocation7_spill] sm:$0xff] %v6334_v29  ;;  %7430 = vst [vmem:[#allocation10_spill] sm:$0xff] %v6345_v55  ;;  %v6348_v46 = vld [vmem:[%s4246_s25 + $0x11a8] sm:$0xff]  ;;  %v6353_v54 = vld [vmem:[%s4246_s25 + $0xf38] sm:$0xff] }
 0x137   : > { %2506 = vmatpush1.bf16.msra.mxu1 %v7425_v13  ;;  %2528 = vmatprep.subr.bf16.mxu0 %v7427_v16  ;;  %v3875_v16 = vld [vmem:[%s4246_s25 + $0xf58] sm:$0xff]  ;;  %7431 = vst [vmem:[#allocation64_spill] sm:$0xff] %v6348_v46  ;;  %v7432_v34 = vld [vmem:[#allocation9_spill] sm:$0xff]  ;;  %v7433_v1 = vld [vmem:[#allocation8_spill] sm:$0xff] }
 0x138   : > { %2507 = vmatprep.subr.bf16.mxu1 %v2158_v52  ;;  %v1605_v13 = vpack.c.bf16 %v3875_v16, %v3872_v11  ;;  %v6356_v52 = vld [vmem:[%s4246_s25 + $0xf50] sm:$0xff]  ;;  %v7434_v24 = vpack.c.bf16 %v7432_v34, %v7433_v1  ;;  %v6364_v29 = vld [vmem:[%s4246_s25 + $0x1188] sm:$0xff]  ;;  %v6367_v37 = vld [vmem:[%s4246_s25 + $0x11a0] sm:$0xff]  ;;  %v7437_v16 = vpack.c.bf16 %v5781_v12, %v5778_v31 }
 0x139   : > { %7435 = vst [vmem:[#allocation9_spill] sm:$0xff] %v6364_v29  ;;  %7436 = vst [vmem:[#allocation8_spill] sm:$0xff] %v6367_v37  ;;  %v3878_v11 = vld [vmem:[%s4246_s25 + $0xf70] sm:$0xff]  ;;  %v3881_v1 = vld [vmem:[%s4246_s25 + $0xf88] sm:$0xff] }
 0x13a   : > { %2529 = vmatpush1.bf16.msra.mxu0 %v7434_v24  ;;  %1644 = vst.msk [vmem:[#allocation2 + $0x588] sm:$0xff] %vm660_vm1, %v1605_v13  ;;  %v6378_v34 = vld [vmem:[%s4246_s25 + $0x11c0] sm:$0xff]  ;;  %v6381_v0 = vld [vmem:[%s4246_s25 + $0x11d8] sm:$0xff]  ;;  %v7440_v63 = vld [vmem:[#allocation16_spill] sm:$0xff]  ;;  %v1608_v12 = vpack.c.bf16 %v3881_v1, %v3878_v11 }
 0x13b   : > { %2508 = vmatpush1.bf16.msra.mxu1 %v2157_v26  ;;  %2530 = vmatprep.subr.bf16.mxu0 %v7437_v16  ;;  %7438 = vst [vmem:[#allocation65_spill] sm:$0xff] %v6378_v34  ;;  %7439 = vst [vmem:[#allocation66_spill] sm:$0xff] %v6381_v0  ;;  %v7441_v55 = vld [vmem:[#allocation17_spill] sm:$0xff]  ;;  %v6389_v13 = vld [vmem:[%s4246_s25 + $0xf68] sm:$0xff] }
 0x13c   : > { %v7442_v46 = vpack.c.bf16 %v7440_v63, %v7441_v55  ;;  %v1849_v31 = vld [vmem:[#allocation2 + $0x90] sm:$0xff]  ;;  %v6392_v16 = vld [vmem:[%s4246_s25 + $0xf80] sm:$0xff]  ;;  %v6397_v29 = vld [vmem:[%s4246_s25 + $0x11b8] sm:$0xff]  ;;  %1647 = vst.msk [vmem:[#allocation2 + $0x658] sm:$0xff] %vm660_vm1, %v1608_v12 }
 0x13d   : > { %7443 = vst [vmem:[#allocation16_spill] sm:$0xff] %v6397_v29  ;;  %v6400_v63 = vld [vmem:[%s4246_s25 + $0x11d0] sm:$0xff]  ;;  %v3884_v55 = vld [vmem:[%s4246_s25 + $0xfa0] sm:$0xff]  ;;  %v3887_v1 = vld [vmem:[%s4246_s25 + $0xfb8] sm:$0xff] }
 0x13e   : > { %2569 = vmatprep.subr.bf16.mxu1 %v7442_v46  ;;  %7444 = vst [vmem:[#allocation17_spill] sm:$0xff] %v6400_v63  ;;  %2516 = vmatmul.mubr.bf16.vlgmr.msra.gmra.mrb[12].mxu1 %v5771_v2  ;;  %v7445_v46 = vpack.c.bf16 %v5806_v23, %v5800_v19  ;;  %v6412_v26 = vld [vmem:[%s4246_s25 + $0x11f0] sm:$0xff]  ;;  %v6415_v24 = vld [vmem:[%s4246_s25 + $0x1208] sm:$0xff]  ;;  %v1875_v2 = vld [vmem:[#allocation2 + $0x160] sm:$0xff]  ;;  %v1611_v12 = vpack.c.bf16 %v3887_v1, %v3884_v55 }
 0x13f   : > { %7446 = vst [vmem:[#allocation67_spill] sm:$0xff] %v6412_v26  ;;  %7447 = vst [vmem:[#allocation68_spill] sm:$0xff] %v6415_v24  ;;  %2570 = vmatpush1.bf16.msra.mxu1 %v1849_v31  ;;  %v7448_v34 = vld [vmem:[#allocation20_spill] sm:$0xff]  ;;  %v7449_v19 = vld [vmem:[#allocation21_spill] sm:$0xff]  ;;  %3995 = vmatprep.mubr.msk.bf16.mxu1 %vm2178_vm0, %v6310_v17 }
 0x140   : > { %2531 = vmatpush1.bf16.msra.mxu0 %v7445_v46  ;;  %v7450_v23 = vpack.c.bf16 %v7448_v34, %v7449_v19  ;;  %v6423_v11 = vld [vmem:[%s4246_s25 + $0xf98] sm:$0xff]  ;;  %v6426_v29 = vld [vmem:[%s4246_s25 + $0xfb0] sm:$0xff]  ;;  %v7452_v0 = vld [vmem:[#allocation19_spill] sm:$0xff]  ;;  %1650 = vst.msk [vmem:[#allocation2 + $0x728] sm:$0xff] %vm660_vm1, %v1611_v12  ;;  %v7458_v46 = vpack.c.bf16 %v5835_v5, %v5827_v49 }
 0x141   : > { %v7451_v63 = vld [vmem:[#allocation18_spill] sm:$0xff]  ;;  %v6436_v31 = vld [vmem:[%s4246_s25 + $0x11e8] sm:$0xff]  ;;  %v6439_v55 = vld [vmem:[%s4246_s25 + $0x1200] sm:$0xff] }
 0x142   : > { %2532 = vmatprep.subr.bf16.mxu0 %v7450_v23  ;;  %v7453_v37 = vpack.c.bf16 %v7451_v63, %v7452_v0  ;;  %7454 = vst [vmem:[#allocation20_spill] sm:$0xff] %v6436_v31  ;;  %7455 = vst [vmem:[#allocation21_spill] sm:$0xff] %v6439_v55  ;;  %v3890_v1 = vld [vmem:[%s4246_s25 + $0xfd0] sm:$0xff]  ;;  %v3893_v0 = vld [vmem:[%s4246_s25 + $0xfe8] sm:$0xff] }
 0x143   : > { %v6447_v63 = vld [vmem:[%s4246_s25 + $0x1220] sm:$0xff]  ;;  %v6450_v19 = vld [vmem:[%s4246_s25 + $0x1238] sm:$0xff]  ;;  %v1901_v23 = vld [vmem:[#allocation2 + $0x230] sm:$0xff]  ;;  %v1614_v34 = vpack.c.bf16 %v3893_v0, %v3890_v1 }
 0x144   : > { %2571 = vmatprep.subr.bf16.mxu1 %v7453_v37  ;;  %7456 = vst [vmem:[#allocation18_spill] sm:$0xff] %v6447_v63  ;;  %7457 = vst [vmem:[#allocation19_spill] sm:$0xff] %v6450_v19  ;;  %2533 = vmatpush1.bf16.msra.mxu0 %v7458_v46  ;;  %v6458_v26 = vld [vmem:[%s4246_s25 + $0xfc8] sm:$0xff]  ;;  %v6461_v37 = vld [vmem:[%s4246_s25 + $0xfe0] sm:$0xff] }
 0x145   : > { %7459 = vst [vmem:[#allocation69_spill] sm:$0xff] %v6458_v26  ;;  %2572 = vmatpush1.bf16.msra.mxu1 %v1875_v2  ;;  %v7460_v31 = vld [vmem:[#allocation33_spill] sm:$0xff]  ;;  %v7461_v55 = vld [vmem:[#allocation34_spill] sm:$0xff]  ;;  %v3896_v1 = vld [vmem:[%s4246_s25 + $0x1000] sm:$0xff] }
 0x146   : > { %v7462_v24 = vpack.c.bf16 %v7460_v31, %v7461_v55  ;;  %v6469_v5 = vld [vmem:[%s4246_s25 + $0x1218] sm:$0xff]  ;;  %v6472_v46 = vld [vmem:[%s4246_s25 + $0x1230] sm:$0xff]  ;;  %v7465_v0 = vld [vmem:[#allocation27_spill] sm:$0xff]  ;;  %1653 = vst.msk [vmem:[#allocation2 + $0x7f8] sm:$0xff] %vm660_vm1, %v1614_v34  ;;  %v7470_v34 = vpack.c.bf16 %v5863_v8, %v5857_v60 }
 0x147   : > { %7463 = vst [vmem:[#allocation33_spill] sm:$0xff] %v6469_v5  ;;  %7464 = vst [vmem:[#allocation34_spill] sm:$0xff] %v6472_v46  ;;  %v7466_v12 = vld [vmem:[#allocation28_spill] sm:$0xff]  ;;  %v3899_v2 = vld [vmem:[%s4246_s25 + $0x1018] sm:$0xff] }
 0x148   : > { %2534 = vmatprep.subr.bf16.mxu0 %v7462_v24  ;;  %v7467_v63 = vpack.c.bf16 %v7465_v0, %v7466_v12  ;;  %v6483_v31 = vld [vmem:[%s4246_s25 + $0x1250] sm:$0xff]  ;;  %v6486_v55 = vld [vmem:[%s4246_s25 + $0x1268] sm:$0xff]  ;;  %v1617_v49 = vpack.c.bf16 %v3899_v2, %v3896_v1  ;;  %v6491_v26 = vld [vmem:[%s4246_s25 + $0xff8] sm:$0xff]  ;;  %v7473_v2 = vpack.c.bf16 %v5880_v62, %v5877_v38 }
 0x149   : > { %7468 = vst [vmem:[#allocation27_spill] sm:$0xff] %v6483_v31  ;;  %7469 = vst [vmem:[#allocation28_spill] sm:$0xff] %v6486_v55  ;;  %2535 = vmatpush1.bf16.msra.mxu0 %v7470_v34  ;;  %v6502_v0 = vld [vmem:[%s4246_s25 + $0x1248] sm:$0xff]  ;;  %v6505_v24 = vld [vmem:[%s4246_s25 + $0x1260] sm:$0xff] }
 0x14a   : > { %2573 = vmatprep.subr.bf16.mxu1 %v7467_v63  ;;  %v6494_v63 = vld [vmem:[%s4246_s25 + $0x1010] sm:$0xff]  ;;  %7471 = vst [vmem:[#allocation70_spill] sm:$0xff] %v6502_v0  ;;  %7472 = vst [vmem:[#allocation71_spill] sm:$0xff] %v6505_v24  ;;  %2536 = vmatprep.subr.bf16.mxu0 %v7473_v2  ;;  %v3905_v60 = vld [vmem:[%s4246_s25 + $0x1048] sm:$0xff] }
 0x14b   : > { %v3902_v1 = vld [vmem:[%s4246_s25 + $0x1030] sm:$0xff]  ;;  %2574 = vmatpush1.bf16.msra.mxu1 %v1901_v23  ;;  %1656 = vst.msk [vmem:[#allocation2 + $0x8c8] sm:$0xff] %vm660_vm1, %v1617_v49  ;;  %v6516_v34 = vld [vmem:[%s4246_s25 + $0x1280] sm:$0xff]  ;;  %v6519_v19 = vld [vmem:[%s4246_s25 + $0x1298] sm:$0xff] }
 0x14c   : > { %7474 = vst [vmem:[#allocation72_spill] sm:$0xff] %v6516_v34  ;;  %7475 = vst [vmem:[#allocation73_spill] sm:$0xff] %v6519_v19  ;;  %v7476_v12 = vld [vmem:[#allocation22_spill] sm:$0xff]  ;;  %v7477_v31 = vld [vmem:[#allocation11_spill] sm:$0xff]  ;;  %v1620_v5 = vpack.c.bf16 %v3905_v60, %v3902_v1 }
 0x14d   : > { %v7478_v55 = vpack.c.bf16 %v7476_v12, %v7477_v31  ;;  %v1927_v23 = vld [vmem:[#allocation2 + $0x300] sm:$0xff]  ;;  %v6527_v62 = vld [vmem:[%s4246_s25 + $0x1028] sm:$0xff]  ;;  %v6535_v8 = vld [vmem:[%s4246_s25 + $0x1278] sm:$0xff] }
 0x14e   : > { %7479 = vst [vmem:[#allocation22_spill] sm:$0xff] %v6527_v62  ;;  %v6530_v49 = vld [vmem:[%s4246_s25 + $0x1040] sm:$0xff]  ;;  %7480 = vst [vmem:[#allocation11_spill] sm:$0xff] %v6535_v8  ;;  %v6538_v0 = vld [vmem:[%s4246_s25 + $0x1290] sm:$0xff] }
 0x14f   : > { %2575 = vmatprep.subr.bf16.mxu1 %v7478_v55  ;;  %7481 = vst [vmem:[#allocation74_spill] sm:$0xff] %v6538_v0  ;;  %v3908_v31 = vld [vmem:[%s4246_s25 + $0x1060] sm:$0x7]  ;;  %v7482_v55 = vpack.c.bf16 %v5899_v53, %v5893_v22  ;;  %1659 = vst.msk [vmem:[#allocation2 + $0x998] sm:$0xff] %vm660_vm1, %v1620_v5  ;;  %v1666_v60 = vld [vmem:[#allocation2 + $0xa68] sm:$0x3] }
 0x150   : > { %v1623_v1 = vpack.c.bf16 %v3908_v31, %v3908_v31  ;;  %v3982_v38 = vld [vmem:[%s4246_s25 + $0x12b0] sm:$0x7]  ;;  %v1823_v2 = vld [vmem:[#allocation2 + $0xa78] sm:$0x3]  ;;  %2576 = vmatpush1.bf16.msra.mxu1 %v1927_v23  ;;  %v1663_v5 = vld [vmem:[#allocation2 + $0xa60] sm:$0x3] }
 0x151   : > { %2537 = vmatpush1.bf16.msra.mxu0 %v7482_v55  ;;  %v1953_v34 = vld [vmem:[#allocation2 + $0x3d0] sm:$0xff]  ;;  %v7483_v19 = vld [vmem:[#allocation30_spill] sm:$0xff]  ;;  %v1782_v22 = vpack.c.bf16 %v3982_v38, %v3982_v38  ;;  %v7485_v55 = vld [vmem:[#allocation23_spill] sm:$0xff] }
 0x152   : > { %v7484_v24 = vpack.c.bf16 %v5909_v45, %v7483_v19  ;;  %v3907_v53 = vld [vmem:[%s4246_s25 + $0x1058] sm:$0x7]  ;;  %v7486_v46 = vld [vmem:[#allocation24_spill] sm:$0xff]  ;;  %v1667_v31 = vsel %vm4418_vm6, %v1623_v1, %v1666_v60  ;;  %v1820_v0 = vld [vmem:[#allocation2 + $0xa70] sm:$0x3]  ;;  %v7488_v1 = vpack.c.bf16 %v5932_v41, %v5926_v50 }
 0x153   : > { %v7487_v12 = vpack.c.bf16 %v7485_v55, %v7486_v46  ;;  %v1622_v8 = vpack.c.bf16 %v3907_v53, %v3907_v53  ;;  %v3981_v23 = vld [vmem:[%s4246_s25 + $0x12a8] sm:$0x7]  ;;  %v3911_v62 = vld [vmem:[%s4246_s25 + $0x1078] sm:$0xff]  ;;  %1668 = vst [vmem:[#allocation2 + $0xa68] sm:$0x3] %v1667_v31  ;;  %v1824_v45 = vsel %vm4385_vm4, %v1782_v22, %v1823_v2  ;;  %v3920_v46 = vld [vmem:[%s4246_s25 + $0x10c0] sm:$0xff] }
 0x154   : > { %2538 = vmatprep.subr.bf16.mxu0 %v7484_v24  ;;  %v1781_v19 = vpack.c.bf16 %v3981_v23, %v3981_v23  ;;  %v3914_v24 = vld [vmem:[%s4246_s25 + $0x1090] sm:$0xff]  ;;  %v3917_v38 = vld [vmem:[%s4246_s25 + $0x10a8] sm:$0xff]  ;;  %1825 = vst [vmem:[#allocation2 + $0xa78] sm:$0x3] %v1824_v45  ;;  %v3923_v2 = vld [vmem:[%s4246_s25 + $0x10d8] sm:$0xff] }
 0x155   : > { %2577 = vmatprep.subr.bf16.mxu1 %v7487_v12  ;;  %v1979_v12 = vld [vmem:[#allocation2 + $0x4a0] sm:$0xff]  ;;  %2539 = vmatpush1.bf16.msra.mxu0 %v7488_v1  ;;  %v1664_v60 = vsel %vm4385_vm4, %v1622_v8, %v1663_v5  ;;  %v1747_v53 = vpack.c.bf16 %v3914_v24, %v3911_v62  ;;  %v1750_v55 = vpack.c.bf16 %v3920_v46, %v3917_v38  ;;  %v3926_v22 = vld [vmem:[%s4246_s25 + $0x10f0] sm:$0xff]  ;;  %v3929_v8 = vld [vmem:[%s4246_s25 + $0x1108] sm:$0xff] }
 0x156   : > { %2578 = vmatpush1.bf16.msra.mxu1 %v1953_v34  ;;  %v7489_v31 = vld [vmem:[#allocation31_spill] sm:$0xff]  ;;  %1665 = vst [vmem:[#allocation2 + $0xa60] sm:$0x3] %v1664_v60  ;;  %v1821_v50 = vsel %vm4385_vm4, %v1781_v19, %v1820_v0  ;;  %v1753_v41 = vpack.c.bf16 %v3926_v22, %v3923_v2  ;;  %v3935_v5 = vld [vmem:[%s4246_s25 + $0x1138] sm:$0xff]  ;;  %v7491_v45 = vld [vmem:[#allocation25_spill] sm:$0xff]  ;;  %v7494_v2 = vpack.c.bf16 %v5965_v56, %v5953_v57 }
 0x157   : > { %v7490_v23 = vpack.c.bf16 %v5942_v36, %v7489_v31  ;;  %v3932_v62 = vld [vmem:[%s4246_s25 + $0x1120] sm:$0xff]  ;;  %v7492_v24 = vld [vmem:[#allocation26_spill] sm:$0xff]  ;;  %1822 = vst [vmem:[#allocation2 + $0xa70] sm:$0x3] %v1821_v50  ;;  %1786 = vst.msk [vmem:[#allocation2 + $0xc0] sm:$0xff] %vm660_vm1, %v1747_v53 }
 0x158   : > { %v7493_v38 = vpack.c.bf16 %v7491_v45, %v7492_v24  ;;  %1789 = vst.msk [vmem:[#allocation2 + $0x190] sm:$0xff] %vm660_vm1, %v1750_v55  ;;  %v1756_v21 = vpack.c.bf16 %v3932_v62, %v3929_v8  ;;  %v3938_v36 = vld [vmem:[%s4246_s25 + $0x1150] sm:$0xff]  ;;  %v3941_v0 = vld [vmem:[%s4246_s25 + $0x1168] sm:$0xff]  ;;  %v3944_v34 = vld [vmem:[%s4246_s25 + $0x1180] sm:$0xff] }
 0x159   : > { %2540 = vmatprep.subr.bf16.mxu0 %v7490_v23  ;;  %1792 = vst.msk [vmem:[#allocation2 + $0x260] sm:$0xff] %vm660_vm1, %v1753_v41  ;;  %v1759_v19 = vpack.c.bf16 %v3938_v36, %v3935_v5  ;;  %v1762_v46 = vpack.c.bf16 %v3944_v34, %v3941_v0  ;;  %v3947_v1 = vld [vmem:[%s4246_s25 + $0x1198] sm:$0xff]  ;;  %v3950_v60 = vld [vmem:[%s4246_s25 + $0x11b0] sm:$0xff]  ;;  %v3953_v55 = vld [vmem:[%s4246_s25 + $0x11c8] sm:$0xff] }
 0x15a   : > { %2579 = vmatprep.subr.bf16.mxu1 %v7493_v38  ;;  %2541 = vmatpush1.bf16.msra.mxu0 %v7494_v2  ;;  %1795 = vst.msk [vmem:[#allocation2 + $0x330] sm:$0xff] %vm660_vm1, %v1756_v21  ;;  %v1765_v53 = vpack.c.bf16 %v3950_v60, %v3947_v1  ;;  %v3956_v22 = vld [vmem:[%s4246_s25 + $0x11e0] sm:$0xff]  ;;  %v3959_v31 = vld [vmem:[%s4246_s25 + $0x11f8] sm:$0xff]  ;;  %v7495_v23 = vld [vmem:[#allocation37_spill] sm:$0xff] }
 0x15b   : > { %2580 = vmatpush1.bf16.msra.mxu1 %v1979_v12  ;;  %v7496_v50 = vpack.c.bf16 %v5975_v18, %v7495_v23  ;;  %1798 = vst.msk [vmem:[#allocation2 + $0x400] sm:$0xff] %vm660_vm1, %v1759_v19  ;;  %1801 = vst.msk [vmem:[#allocation2 + $0x4d0] sm:$0xff] %vm660_vm1, %v1762_v46  ;;  %v1768_v57 = vpack.c.bf16 %v3956_v22, %v3953_v55  ;;  %v3962_v56 = vld [vmem:[%s4246_s25 + $0x1210] sm:$0xff]  ;;  %v3965_v41 = vld [vmem:[%s4246_s25 + $0x1228] sm:$0xff]  ;;  %v7500_v19 = vpack.c.bf16 %v5992_v42, %v5986_v43 }
 0x15c   : > { %v3968_v8 = vld [vmem:[%s4246_s25 + $0x1240] sm:$0xff]  ;;  %v7497_v62 = vld [vmem:[#allocation32_spill] sm:$0xff]  ;;  %v7498_v5 = vld [vmem:[#allocation29_spill] sm:$0xff]  ;;  %1804 = vst.msk [vmem:[#allocation2 + $0x5a0] sm:$0xff] %vm660_vm1, %v1765_v53  ;;  %v1771_v18 = vpack.c.bf16 %v3962_v56, %v3959_v31 }
 0x15d   : > { %2542 = vmatprep.subr.bf16.mxu0 %v7496_v50  ;;  %v7499_v45 = vpack.c.bf16 %v7497_v62, %v7498_v5  ;;  %v2005_v12 = vld [vmem:[#allocation2 + $0x570] sm:$0xff]  ;;  %v1774_v24 = vpack.c.bf16 %v3968_v8, %v3965_v41  ;;  %v3971_v38 = vld [vmem:[%s4246_s25 + $0x1258] sm:$0xff]  ;;  %1807 = vst.msk [vmem:[#allocation2 + $0x670] sm:$0xff] %vm660_vm1, %v1768_v57  ;;  %v3977_v0 = vld [vmem:[%s4246_s25 + $0x1288] sm:$0xff]  ;;  %v7507_v57 = vpack.c.bf16 %v6035_v44, %v6032_v35 }
 0x15e   : > { %v3974_v21 = vld [vmem:[%s4246_s25 + $0x1270] sm:$0xff]  ;;  %v3980_v34 = vld [vmem:[%s4246_s25 + $0x12a0] sm:$0xff]  ;;  %2543 = vmatpush1.bf16.msra.mxu0 %v7500_v19  ;;  %1810 = vst.msk [vmem:[#allocation2 + $0x740] sm:$0xff] %vm660_vm1, %v1771_v18  ;;  %v3983_v60 = vld [vmem:[%s4246_s25 + $0x12b8] sm:$0x7] }
 0x15f   : > { %2581 = vmatprep.subr.bf16.mxu1 %v7499_v45  ;;  %v1777_v36 = vpack.c.bf16 %v3974_v21, %v3971_v38  ;;  %1813 = vst.msk [vmem:[#allocation2 + $0x810] sm:$0xff] %vm660_vm1, %v1774_v24  ;;  %v1780_v46 = vpack.c.bf16 %v3980_v34, %v3977_v0  ;;  %v6622_v1 = vld [vmem:[%s7041_s1 + $0x21] ss:$2 sm:$0xff]  ;;  %v1783_v43 = vpack.c.bf16 %v3983_v60, %v3983_v60  ;;  %v7509_v41 = vld [vmem:[#allocation38_spill] sm:$0xff]  ;;  %v2057_v62 = vld [vmem:[#allocation2 + $0x710] sm:$0xff] }
 0x160   : > { %2582 = vmatpush1.bf16.msra.mxu1 %v2005_v12  ;;  %v7501_v2 = vld [vmem:[#allocation40_spill] sm:$0xff]  ;;  %v7503_v42 = vld [vmem:[#allocation35_spill] sm:$0xff]  ;;  %2965 = vrot.lane.b32.xlu1 %v6622_v1, %s4056_s15  ;;  %v7511_v25 = vld [vmem:[#allocation46_spill] sm:$0xff]  ;;  %s4062_s15 = smov 126  }
 0x161   : > { %v7502_v53 = vpack.c.bf16 %v6008_v40, %v7501_v2  ;;  %1816 = vst.msk [vmem:[#allocation2 + $0x8e0] sm:$0xff] %vm660_vm1, %v1777_v36  ;;  %v7504_v55 = vld [vmem:[#allocation36_spill] sm:$0xff]  ;;  %v2031_v31 = vld [vmem:[#allocation2 + $0x640] sm:$0xff]  ;;  %1819 = vst.msk [vmem:[#allocation2 + $0x9b0] sm:$0xff] %vm660_vm1, %v1780_v46  ;;  %v7506_v40 = vpack.c.bf16 %v6025_v6, %v6019_v20  ;;  %vm3291_vm1 = vcmask 703488  }
 0x162   : > { %v7505_v22 = vpack.c.bf16 %v7503_v42, %v7504_v55  ;;  %v1826_v23 = vld [vmem:[#allocation2 + $0xa80] sm:$0x3]  ;;  %v7512_v5 = vld [vmem:[#allocation45_spill] sm:$0xff]  ;;  %v7516_v12 = vld [vmem:[#allocation42_spill] sm:$0xff] }
 0x163   : > { %2544 = vmatprep.subr.bf16.mxu0 %v7502_v53  ;;  %v1827_v50 = vsel %vm4418_vm6, %v1783_v43, %v1826_v23  ;;  %v7508_v56 = vld [vmem:[#allocation39_spill] sm:$0xff]  ;;  %v7513_v45 = vpack.c.bf16 %v7511_v25, %v7512_v5  ;;  %v7517_v35 = vld [vmem:[#allocation41_spill] sm:$0xff]  ;;  %v2160_v24 = vld [vmem:[#allocation2 + $0xa48] sm:$0xff]  ;;  %v7532_v25 = vpack.c.bf16 %v6168_v14, %v6165_v7 }
 0x164   : > { %2583 = vmatprep.subr.bf16.mxu1 %v7505_v22  ;;  %2545 = vmatpush1.bf16.msra.mxu0 %v7506_v40  ;;  %1828 = vst [vmem:[#allocation2 + $0xa80] sm:$0x3] %v1827_v50  ;;  %v7510_v8 = vpack.c.bf16 %v7508_v56, %v7509_v41  ;;  %v7514_v20 = vld [vmem:[#allocation47_spill] sm:$0xff]  ;;  %v7518_v44 = vpack.c.bf16 %v7516_v12, %v7517_v35  ;;  %v7520_v21 = vld [vmem:[#allocation50_spill] sm:$0xff]  ;;  %v7522_v0 = vld [vmem:[#allocation44_spill] sm:$0xff]  ;;  %v2216_v50 = vpop.f32.mrb[0].mxu0 }
 0x165   : > { %2584 = vmatpush1.bf16.msra.mxu1 %v2031_v31  ;;  %2546 = vmatprep.subr.bf16.mxu0 %v7507_v57  ;;  %v7515_v6 = vpack.c.bf16 %v6075_v51, %v7514_v20  ;;  %v2083_v18 = vld [vmem:[#allocation2 + $0x7e0] sm:$0xff]  ;;  %v2109_v46 = vld [vmem:[#allocation2 + $0x8b0] sm:$0xff]  ;;  %v1852_v51 = vld [vmem:[#allocation2 + $0xa8] sm:$0xff]  ;;  %v7528_v31 = vpack.c.bf16 %v6154_v32, %v6151_v27  ;;  %2741 = vst [vmem:[#allocation3] sm:$0xff] %v2216_v50  ;;  %v2218_v57 = vpop.f32.mrb[1].mxu0 }
 0x166   : > { %2585 = vmatprep.subr.bf16.mxu1 %v7510_v8  ;;  %3000 = vrot.lane.b32.xlu1 %v6067_v9, %s4057_s3  ;;  %v7519_v38 = vld [vmem:[#allocation51_spill] sm:$0xff]  ;;  %v7525_v60 = vld [vmem:[#allocation49_spill] sm:$0xff]  ;;  %v7526_v2 = vld [vmem:[#allocation48_spill] sm:$0xff]  ;;  %2742 = vst [vmem:[#allocation3 + $0x8] sm:$0xff] %v2218_v57  ;;  %v2220_v56 = vpop.f32.mrb[2].mxu0  ;;  %v7529_v41 = vpack.c.bf16 %v6187_v4, %v6184_v10  ;;  %v7530_v32 = vpack.c.bf16 %v6142_v48, %v6139_v28  ;;  %v2259_v28 = vpop.f32.mrb[0].mxu1 }
 0x167   : > { %v7521_v36 = vpack.c.bf16 %v7519_v38, %v7520_v21  ;;  %v2159_v9 = vld [vmem:[#allocation2 + $0xa40] sm:$0xff]  ;;  %v7527_v53 = vpack.c.bf16 %v7525_v60, %v7526_v2  ;;  %v1878_v42 = vld [vmem:[#allocation2 + $0x178] sm:$0xff]  ;;  %v2161_v23 = vld [vmem:[#allocation2 + $0xa50] sm:$0xff]  ;;  %v2222_v27 = vpop.f32.mrb[3].mxu0  ;;  %v7533_v10 = vpack.c.bf16 %v6179_v15, %v6176_v58  ;;  %2743 = vst [vmem:[#allocation3 + $0x10] sm:$0xff] %v2259_v28  ;;  %v2261_v48 = vpop.f32.mrb[1].mxu1  ;;  %v7542_v35 = vpack.c.bf16 %v6283_v3, %v6280_v33 }
 0x168   : > { %2547 = vmatpush1.bf16.msra.mxu0 %v7513_v45  ;;  %v7523_v34 = vld [vmem:[#allocation43_spill] sm:$0xff]  ;;  %v2162_v55 = vld [vmem:[#allocation2 + $0xa58] sm:$0xff]  ;;  %v1904_v40 = vld [vmem:[#allocation2 + $0x248] sm:$0xff]  ;;  %2768 = vst [vmem:[#allocation3 + $0xd8] sm:$0xff] %v2222_v27  ;;  %v2263_v45 = vpop.f32.mrb[2].mxu1  ;;  %v7556_v60 = vpack.c.bf16 %v6356_v52, %v6353_v54 }
 0x169   : > { %2586 = vmatpush1.bf16.msra.mxu1 %v2057_v62  ;;  %2548 = vmatprep.subr.bf16.mxu0 %v7515_v6  ;;  %v7524_v19 = vpack.c.bf16 %v7522_v0, %v7523_v34  ;;  %v2135_v43 = vld [vmem:[#allocation2 + $0x980] sm:$0xff]  ;;  %v1930_v8 = vld [vmem:[#allocation2 + $0x318] sm:$0xff]  ;;  %v7531_v62 = vpack.c.bf16 %v6222_v59, %v6219_v30  ;;  %v1956_v4 = vld [vmem:[#allocation2 + $0x3e8] sm:$0xff]  ;;  %2744 = vst [vmem:[#allocation3 + $0x18] sm:$0xff] %v2261_v48  ;;  %v2265_v12 = vpop.f32.mrb[3].mxu1 }
 0x16a   : > { %2587 = vmatprep.subr.bf16.mxu1 %v7518_v44  ;;  %v6669_v22 = vld [vmem:[%s7040_s0] ss:$8 sps:$4 sm:$0xff]   ;;  %v7534_v5 = vld [vmem:[#allocation57_spill] sm:$0xff]  ;;  %v7539_v58 = vld [vmem:[#allocation54_spill] sm:$0xff]  ;;  %2769 = vst [vmem:[#allocation3 + $0xe0] sm:$0xff] %v2263_v45 }
 0x16b   : > { %v7535_v30 = vpack.c.bf16 %v6250_v39, %v7534_v5  ;;  %v7536_v59 = vld [vmem:[#allocation53_spill] sm:$0xff]  ;;  %v7537_v7 = vld [vmem:[#allocation52_spill] sm:$0xff]  ;;  %v7540_v15 = vld [vmem:[#allocation14_spill] sm:$0xff]  ;;  %2770 = vst [vmem:[#allocation3 + $0xe8] sm:$0xff] %v2265_v12 }
 0x16c   : > { %2549 = vmatpush1.bf16.msra.mxu0 %v7521_v36  ;;  %v7538_v14 = vpack.c.bf16 %v7536_v59, %v7537_v7  ;;  %v7541_v20 = vpack.c.bf16 %v7539_v58, %v7540_v15  ;;  %v1982_v6 = vld [vmem:[#allocation2 + $0x4b8] sm:$0xff]  ;;  %v7543_v39 = vld [vmem:[#allocation56_spill] sm:$0xff]  ;;  %v7544_v44 = vld [vmem:[#allocation55_spill] sm:$0xff]  ;;  %v7585_v7 = vpack.c.bf16 %v6494_v63, %v6491_v26 }
 0x16d   : > { %2588 = vmatpush1.bf16.msra.mxu1 %v2083_v18  ;;  %2550 = vmatprep.subr.bf16.mxu0 %v2160_v24  ;;  %v7545_v18 = vpack.c.bf16 %v7543_v39, %v7544_v44  ;;  %v7546_v24 = vld [vmem:[#allocation13_spill] sm:$0xff]  ;;  %v7547_v38 = vld [vmem:[#allocation12_spill] sm:$0xff]  ;;  %v7550_v0 = vld [vmem:[#allocation59_spill] sm:$0xff] }
 0x16e   : > { %2589 = vmatprep.subr.bf16.mxu1 %v7524_v19  ;;  %v7548_v21 = vpack.c.bf16 %v7546_v24, %v7547_v38  ;;  %v2008_v36 = vld [vmem:[#allocation2 + $0x588] sm:$0xff]  ;;  %v7551_v34 = vld [vmem:[#allocation58_spill] sm:$0xff]  ;;  %v7553_v3 = vld [vmem:[#allocation15_spill] sm:$0xff] }
 0x16f   : > { %v7552_v19 = vpack.c.bf16 %v7550_v0, %v7551_v34  ;;  %v7554_v33 = vld [vmem:[#allocation60_spill] sm:$0xff]  ;;  %v7557_v2 = vld [vmem:[#allocation61_spill] sm:$0xff]  ;;  %v7565_v50 = vld [vmem:[#allocation7_spill] sm:$0xff] }
 0x170   : > { %2551 = vmatpush1.bf16.msra.mxu0 %v2159_v9  ;;  %v7549_v9 = vpack.c.bf16 %v6321_v61, %v6318_v47  ;;  %v7560_v47 = vld [vmem:[#allocation63_spill] sm:$0xff]  ;;  %v7561_v61 = vld [vmem:[#allocation62_spill] sm:$0xff]  ;;  %v7567_v54 = vld [vmem:[#allocation64_spill] sm:$0xff] }
 0x171   : > { %2590 = vmatpush1.bf16.msra.mxu1 %v2109_v46  ;;  %2612 = vmatprep.subr.bf16.mxu0 %v1852_v51  ;;  %v7555_v46 = vpack.c.bf16 %v7553_v3, %v7554_v33  ;;  %v2034_v51 = vld [vmem:[#allocation2 + $0x658] sm:$0xff]  ;;  %v7571_v27 = vld [vmem:[#allocation8_spill] sm:$0xff]  ;;  %v7579_v28 = vld [vmem:[#allocation17_spill] sm:$0xff] }
 0x172   : > { %2591 = vmatprep.subr.bf16.mxu1 %v7527_v53  ;;  %v7558_v53 = vld [vmem:[#allocation5_spill] sm:$0xff]  ;;  %v7568_v52 = vld [vmem:[#allocation10_spill] sm:$0xff]  ;;  %v7580_v48 = vld [vmem:[#allocation16_spill] sm:$0xff] }
 0x173   : > { %2559 = vmatmul.mubr.bf16.vlgmr.msra.gmra.mrb[16].mxu0 %v6669_v22  ;;  %v7569_v57 = vpack.c.bf16 %v7567_v54, %v7568_v52  ;;  %v2086_v56 = vld [vmem:[#allocation2 + $0x7f8] sm:$0xff]  ;;  %v7581_v5 = vpack.c.bf16 %v7579_v28, %v7580_v48  ;;  %v7587_v45 = vld [vmem:[#allocation20_spill] sm:$0xff]  ;;  %v7595_v44 = vld [vmem:[#allocation33_spill] sm:$0xff] }
 0x174   : > { %2613 = vmatpush1.bf16.msra.mxu0 %v7528_v31  ;;  %3996 = vmatprep.mubr.msk.bf16.mxu0 %vm2178_vm0, %v6310_v17  ;;  %v7563_v31 = vpack.c.bf16 %v6392_v16, %v6389_v13  ;;  %v7574_v13 = vld [vmem:[#allocation66_spill] sm:$0xff]  ;;  %v7575_v16 = vld [vmem:[#allocation65_spill] sm:$0xff]  ;;  %v2163_v26 = vld [vmem:[#allocation2 + $0xa60] sm:$0xff] }
 0x175   : > { %2592 = vmatpush1.bf16.msra.mxu1 %v2135_v43  ;;  %2614 = vmatprep.subr.bf16.mxu0 %v1878_v42  ;;  %v7559_v43 = vpack.c.bf16 %v7557_v2, %v7558_v53  ;;  %v7562_v42 = vpack.c.bf16 %v7560_v47, %v7561_v61  ;;  %v2138_v59 = vld [vmem:[#allocation2 + $0x998] sm:$0xff]  ;;  %v7597_v63 = vld [vmem:[#allocation28_spill] sm:$0xff]  ;;  %v7598_v24 = vld [vmem:[#allocation27_spill] sm:$0xff] }
 0x176   : > { %2593 = vmatprep.subr.bf16.mxu1 %v2162_v55  ;;  %v2060_v55 = vld [vmem:[#allocation2 + $0x728] sm:$0xff]  ;;  %v7590_v15 = vld [vmem:[#allocation18_spill] sm:$0xff]  ;;  %v7599_v38 = vpack.c.bf16 %v7597_v63, %v7598_v24  ;;  %v4040_v0 = vld [vmem:[#allocation2] sm:$0xff] }
 0x177   : > { %v7592_v12 = vld [vmem:[#allocation22_spill] sm:$0xff]  ;;  %v1855_v34 = vld [vmem:[#allocation2 + $0xc0] sm:$0xff]  ;;  %v1881_v2 = vld [vmem:[#allocation2 + $0x190] sm:$0xff] }
 0x178   : > { %2615 = vmatpush1.bf16.msra.mxu0 %v7529_v41  ;;  %v7570_v41 = vpack.c.bf16 %v6426_v29, %v6423_v11  ;;  %v7582_v29 = vld [vmem:[#allocation68_spill] sm:$0xff]  ;;  %v7583_v11 = vld [vmem:[#allocation67_spill] sm:$0xff]  ;;  %v7594_v39 = vld [vmem:[#allocation34_spill] sm:$0xff] }
 0x179   : > { %2594 = vmatpush1.bf16.msra.mxu1 %v2161_v23  ;;  %2616 = vmatprep.subr.bf16.mxu0 %v1904_v40  ;;  %v7564_v23 = vld [vmem:[#allocation6_spill] sm:$0xff]  ;;  %v2165_v53 = vld [vmem:[#allocation2 + $0xa70] sm:$0xff] }
 0x17a   : > { %2655 = vmatprep.subr.bf16.mxu1 %v7530_v32  ;;  %v7566_v40 = vpack.c.bf16 %v7564_v23, %v7565_v50  ;;  %v7572_v32 = vld [vmem:[#allocation9_spill] sm:$0xff]  ;;  %v2166_v33 = vld [vmem:[#allocation2 + $0xa78] sm:$0xff]  ;;  %v1959_v50 = vld [vmem:[#allocation2 + $0x400] sm:$0xff] }
 0x17b   : > { %v1985_v52 = vld [vmem:[#allocation2 + $0x4d0] sm:$0xff] }
 0x17c   : > { %2602 = vmatmul.mubr.bf16.vlgmr.msra.gmra.mrb[16].mxu1 %v6669_v22  ;;  %2617 = vmatpush1.bf16.msra.mxu0 %v7531_v62  ;;  %v7576_v62 = vpack.c.bf16 %v7574_v13, %v7575_v16  ;;  %v2167_v13 = vld [vmem:[#allocation2 + $0xa80] sm:$0xff] }
 0x17d   : > { %2656 = vmatpush1.bf16.msra.mxu1 %v7532_v25  ;;  %2618 = vmatprep.subr.bf16.mxu0 %v1930_v8  ;;  %v7573_v8 = vpack.c.bf16 %v7571_v27, %v7572_v32  ;;  %v2112_v25 = vld [vmem:[#allocation2 + $0x8c8] sm:$0xff]  ;;  %v2089_v27 = vld [vmem:[#allocation2 + $0x810] sm:$0xff]  ;;  %v2115_v32 = vld [vmem:[#allocation2 + $0x8e0] sm:$0xff] }
 0x17e   : > { %2657 = vmatprep.subr.bf16.mxu1 %v7533_v10  ;;  %3997 = vmatprep.mubr.msk.bf16.mxu1 %vm2178_vm0, %v6310_v17  ;;  %v7577_v10 = vld [vmem:[#allocation69_spill] sm:$0xff] }
 0x180   : > { %2619 = vmatpush1.bf16.msra.mxu0 %v7535_v30  ;;  %v7584_v30 = vpack.c.bf16 %v7582_v29, %v7583_v11 }
 0x181   : > { %2658 = vmatpush1.bf16.msra.mxu1 %v7538_v14  ;;  %2620 = vmatprep.subr.bf16.mxu0 %v1956_v4  ;;  %v7578_v4 = vpack.c.bf16 %v6461_v37, %v7577_v10  ;;  %v7586_v14 = vld [vmem:[#allocation21_spill] sm:$0xff]  ;;  %v7589_v37 = vld [vmem:[#allocation19_spill] sm:$0xff] }
 0x182   : > { %2659 = vmatprep.subr.bf16.mxu1 %v7541_v20  ;;  %v7588_v58 = vpack.c.bf16 %v7586_v14, %v7587_v45  ;;  %v7591_v20 = vpack.c.bf16 %v7589_v37, %v7590_v15 }
 0x184   : > { %2621 = vmatpush1.bf16.msra.mxu0 %v7542_v35  ;;  %v7593_v35 = vpack.c.bf16 %v6530_v49, %v7592_v12  ;;  %v7603_v49 = vld [vmem:[#allocation73_spill] sm:$0xff] }
 0x185   : > { %2660 = vmatpush1.bf16.msra.mxu1 %v7545_v18  ;;  %2622 = vmatprep.subr.bf16.mxu0 %v1982_v6  ;;  %v2164_v6 = vld [vmem:[#allocation2 + $0xa68] sm:$0xff]  ;;  %v7596_v18 = vpack.c.bf16 %v7594_v39, %v7595_v44 }
 0x186   : > { %2661 = vmatprep.subr.bf16.mxu1 %v7548_v21  ;;  %v7600_v21 = vld [vmem:[#allocation71_spill] sm:$0xff] }
 0x188   : > { %2623 = vmatpush1.bf16.msra.mxu0 %v7549_v9 }
 0x189   : > { %2662 = vmatpush1.bf16.msra.mxu1 %v7552_v19  ;;  %2624 = vmatprep.subr.bf16.mxu0 %v2008_v36  ;;  %v7601_v36 = vld [vmem:[#allocation70_spill] sm:$0xff]  ;;  %v7604_v19 = vld [vmem:[#allocation72_spill] sm:$0xff] }
 0x18a   : > { %2663 = vmatprep.subr.bf16.mxu1 %v7555_v46  ;;  %v7602_v9 = vpack.c.bf16 %v7600_v21, %v7601_v36  ;;  %v7605_v3 = vpack.c.bf16 %v7603_v49, %v7604_v19  ;;  %v7606_v46 = vld [vmem:[#allocation74_spill] sm:$0xff] }
 0x18c   : > { %2625 = vmatpush1.bf16.msra.mxu0 %v7556_v60 }
 0x18d   : > { %2664 = vmatpush1.bf16.msra.mxu1 %v7559_v43  ;;  %2626 = vmatprep.subr.bf16.mxu0 %v2034_v51  ;;  %v7607_v51 = vld [vmem:[#allocation11_spill] sm:$0xff]  ;;  %v2302_v43 = vpop.f32.mrb[4].mxu0 }
 0x18e   : > { %2665 = vmatprep.subr.bf16.mxu1 %v7562_v42  ;;  %v7608_v60 = vpack.c.bf16 %v7606_v46, %v7607_v51  ;;  %2745 = vst [vmem:[#allocation3 + $0x20] sm:$0xff] %v2302_v43  ;;  %v2304_v47 = vpop.f32.mrb[5].mxu0  ;;  %v6792_v43 = vpop.permute.xlu1 %2916 }
 0x18f   : > { %2746 = vst [vmem:[#allocation3 + $0x28] sm:$0xff] %v2304_v47  ;;  %v2306_v61 = vpop.f32.mrb[6].mxu0 }
 0x190   : > { %2627 = vmatpush1.bf16.msra.mxu0 %v7563_v31  ;;  %2771 = vst [vmem:[#allocation3 + $0xf0] sm:$0xff] %v2306_v61  ;;  %v2308_v42 = vpop.f32.mrb[7].mxu0 }
 0x191   : > { %2666 = vmatpush1.bf16.msra.mxu1 %v7566_v40  ;;  %2628 = vmatprep.subr.bf16.mxu0 %v2060_v55  ;;  %v1907_v55 = vld [vmem:[#allocation2 + $0x260] sm:$0xff]  ;;  %2772 = vst [vmem:[#allocation3 + $0xf8] sm:$0xff] %v2308_v42 }
 0x192   : > { %2667 = vmatprep.subr.bf16.mxu1 %v7569_v57  ;;  %v2345_v31 = vpop.f32.mrb[4].mxu1  ;;  %v2011_v57 = vld [vmem:[#allocation2 + $0x5a0] sm:$0xff] }
 0x193   : > { %2747 = vst [vmem:[#allocation3 + $0x30] sm:$0xff] %v2345_v31  ;;  %v2347_v23 = vpop.f32.mrb[5].mxu1 }
 0x194   : > { %2629 = vmatpush1.bf16.msra.mxu0 %v7570_v41  ;;  %2748 = vst [vmem:[#allocation3 + $0x38] sm:$0xff] %v2347_v23  ;;  %v2349_v40 = vpop.f32.mrb[6].mxu1  ;;  %v2063_v41 = vld [vmem:[#allocation2 + $0x740] sm:$0xff] }
 0x195   : > { %2668 = vmatpush1.bf16.msra.mxu1 %v7573_v8  ;;  %2630 = vmatprep.subr.bf16.mxu0 %v2086_v56  ;;  %2773 = vst [vmem:[#allocation3 + $0x100] sm:$0xff] %v2349_v40  ;;  %v2351_v54 = vpop.f32.mrb[7].mxu1  ;;  %v2037_v56 = vld [vmem:[#allocation2 + $0x670] sm:$0xff] }
 0x196   : > { %2669 = vmatprep.subr.bf16.mxu1 %v7576_v62  ;;  %2774 = vst [vmem:[#allocation3 + $0x108] sm:$0xff] %v2351_v54  ;;  %v2141_v8 = vld [vmem:[#allocation2 + $0x9b0] sm:$0xff] }
 0x197   : > { %v2899_v40 = vld [vmem:[#allocation3 + $0x3] ss:$8 sm:$0xf] }
 0x198   : > { %2631 = vmatpush1.bf16.msra.mxu0 %v7578_v4  ;;  %v3022_v4 = vld [vmem:[#allocation3 + $0xf] ss:$8 sm:$0xf] }
 0x199   : > { %2670 = vmatpush1.bf16.msra.mxu1 %v7581_v5  ;;  %2632 = vmatprep.subr.bf16.mxu0 %v2112_v25 }
 0x19a   : > { %2671 = vmatprep.subr.bf16.mxu1 %v7584_v30 }
 0x19c   : > { %2633 = vmatpush1.bf16.msra.mxu0 %v7585_v7 }
 0x19d   : > { %2672 = vmatpush1.bf16.msra.mxu1 %v7588_v58  ;;  %2634 = vmatprep.subr.bf16.mxu0 %v2138_v59 }
 0x19e   : > { %2673 = vmatprep.subr.bf16.mxu1 %v7591_v20 }
 0x1a0   : > { %2635 = vmatpush1.bf16.msra.mxu0 %v7593_v35 }
 0x1a1   : > { %2674 = vmatpush1.bf16.msra.mxu1 %v7596_v18  ;;  %2636 = vmatprep.subr.bf16.mxu0 %v2164_v6 }
 0x1a2   : > { %2675 = vmatprep.subr.bf16.mxu1 %v7599_v38 }
 0x1a4   : > { %2637 = vmatpush1.bf16.msra.mxu0 %v2163_v26 }
 0x1a5   : > { %2676 = vmatpush1.bf16.msra.mxu1 %v7602_v9  ;;  %2698 = vmatprep.subr.bf16.mxu0 %v4040_v0 }
 0x1a6   : > { %2677 = vmatprep.subr.bf16.mxu1 %v7605_v3 }
 0x1a7   : > { %2645 = vmatmul.mubr.bf16.vlgmr.msra.gmra.mrb[20].mxu0 %v6669_v22 }
 0x1a8   : > { %2699 = vmatpush1.bf16.msra.mxu0 %v1855_v34  ;;  %3998 = vmatprep.mubr.msk.bf16.mxu0 %vm2178_vm0, %v6310_v17  ;;  %v1933_v17 = vld [vmem:[#allocation2 + $0x330] sm:$0xff]  ;;  %vm3209_vm0 = vcmask 1031168  }
 0x1a9   : > { %2678 = vmatpush1.bf16.msra.mxu1 %v7608_v60  ;;  %2700 = vmatprep.subr.bf16.mxu0 %v4040_v0 }
 0x1aa   : > { %2679 = vmatprep.subr.bf16.mxu1 %v2166_v33  ;;  %v2913_v33 = vpop.permute.xlu0 %2912 }
 0x1ab   : > { %v2918_v47 = vrot.slane %v2913_v33, 7 }
 0x1ac   : > { %2701 = vmatpush1.bf16.msra.mxu0 %v1881_v2 }
 0x1ad   : > { %2680 = vmatpush1.bf16.msra.mxu1 %v2165_v53  ;;  %2702 = vmatprep.subr.bf16.mxu0 %v4040_v0 }
 0x1ae   : > { %v2915_v2 = vpop.permute.xlu0 %2914 }
 0x1af   : > { %v2919_v54 = vrot.slane %v2915_v2, 7 }
 0x1b0   : > { %2688 = vmatmul.mubr.bf16.vlgmr.msra.gmra.mrb[20].mxu1 %v6669_v22  ;;  %2703 = vmatpush1.bf16.msra.mxu0 %v1907_v55  ;;  %v2900_v55 = vld [vmem:[#allocation3 + $0x3] ss:$8 sm:$0xf0] }
 0x1b1   : > { %2704 = vmatprep.subr.bf16.mxu0 %v4040_v0 }
 0x1b4   : > { %2705 = vmatpush1.bf16.msra.mxu0 %v1933_v17  ;;  %v2964_v17 = vpop.permute.xlu0 %2963 }
 0x1b5   : > { %2706 = vmatprep.subr.bf16.mxu0 %v4040_v0 }
 0x1b8   : > { %2707 = vmatpush1.bf16.msra.mxu0 %v1959_v50  ;;  %v2920_v50 = vrot.slane %v6792_v43, 7 }
 0x1b9   : > { %2708 = vmatprep.subr.bf16.mxu0 %v4040_v0 }
 0x1bc   : > { %2709 = vmatpush1.bf16.msra.mxu0 %v1985_v52  ;;  %v2962_v52 = vpop.permute.xlu1 %2961 }
 0x1bd   : > { %2710 = vmatprep.subr.bf16.mxu0 %v4040_v0 }
 0x1c0   : > { %2711 = vmatpush1.bf16.msra.mxu0 %v2011_v57  ;;  %v2901_v57 = vor.u32 %v2900_v55, %v2899_v40 }
 0x1c1   : > { %2712 = vmatprep.subr.bf16.mxu0 %v4040_v0 }
 0x1c4   : > { %2713 = vmatpush1.bf16.msra.mxu0 %v2037_v56  ;;  %v2922_v56 = vsel %vm2921_vm7, %v2918_v47, %v2913_v33 }
 0x1c5   : > { %2714 = vmatprep.subr.bf16.mxu0 %v4040_v0  ;;  %v2388_v16 = vpop.f32.mrb[8].mxu0 }
 0x1c6   : > { %2749 = vst [vmem:[#allocation3 + $0x40] sm:$0xff] %v2388_v16  ;;  %v2390_v62 = vpop.f32.mrb[9].mxu0  ;;  %v2968_v16 = vrot.slane %v2964_v17, 7 }
 0x1c7   : > { %2750 = vst [vmem:[#allocation3 + $0x48] sm:$0xff] %v2390_v62  ;;  %v2392_v25 = vpop.f32.mrb[10].mxu0  ;;  %v6809_v62 = vpop.permute.xlu0 %2998 }
 0x1c8   : > { %2715 = vmatpush1.bf16.msra.mxu0 %v2063_v41  ;;  %2775 = vst [vmem:[#allocation3 + $0x110] sm:$0xff] %v2392_v25  ;;  %v2394_v10 = vpop.f32.mrb[11].mxu0 }
 0x1c9   : > { %2716 = vmatprep.subr.bf16.mxu0 %v4040_v0  ;;  %2776 = vst [vmem:[#allocation3 + $0x118] sm:$0xff] %v2394_v10  ;;  %v4042_v10 = vld [vmem:[%s7041_s1 + $0x1] ss:$2 sm:$0xff] }
 0x1cc   : > { %2717 = vmatpush1.bf16.msra.mxu0 %v2089_v27  ;;  %v2925_v27 = vsel %vm2831_vm8, %v2919_v54, %v2920_v50 }
 0x1cd   : > { %2718 = vmatprep.subr.bf16.mxu0 %v4040_v0  ;;  %v3023_v48 = vld [vmem:[#allocation3 + $0xf] ss:$8 sm:$0xf0] }
 0x1ce   : > { %v3024_v29 = vor.u32 %v3023_v48, %v3022_v4 }
 0x1d0   : > { %2719 = vmatpush1.bf16.msra.mxu0 %v2115_v32  ;;  %3166 = vrot.lane.b32.xlu1 %v3024_v29, %s4055_s6  ;;  %v6804_v32 = vld [vmem:[%s7041_s1 + $0x11] ss:$2 sm:$0xff]  ;;  %v2926_v29 = vsel %vm2921_vm7, %v2925_v27, %v6792_v43 }
 0x1d1   : > { %2720 = vmatprep.subr.bf16.mxu0 %v4040_v0  ;;  %v2431_v28 = vpop.f32.mrb[8].mxu1 }
 0x1d2   : > { %2751 = vst [vmem:[#allocation3 + $0x50] sm:$0xff] %v2431_v28  ;;  %v2433_v5 = vpop.f32.mrb[9].mxu1  ;;  %v2966_v25 = vpop.permute.xlu1 %2965  ;;  %v2931_v28 = vmul.f32 %v2922_v56, %v2901_v57 }
 0x1d3   : > { %2752 = vst [vmem:[#allocation3 + $0x58] sm:$0xff] %v2433_v5  ;;  %v2435_v11 = vpop.f32.mrb[10].mxu1 }
 0x1d4   : > { %2721 = vmatpush1.bf16.msra.mxu0 %v2141_v8  ;;  %2777 = vst [vmem:[#allocation3 + $0x120] sm:$0xff] %v2435_v11  ;;  %v2949_v11 = vld [vmem:[#allocation3 + $0xd] ss:$8 sm:$0xf0] }
 0x1d5   : > { %2722 = vmatprep.subr.bf16.mxu0 %v4040_v0 }
 0x1d8   : > { %2723 = vmatpush1.bf16.msra.mxu0 %v2167_v13  ;;  %v2923_v13 = vsel %vm2831_vm8, %v2918_v47, %v2919_v54 }
 0x1da   : > { %v2903_v5 = vld [vmem:[#allocation3 + $0x43] ss:$8 sm:$0xf] }
 0x1db   : > { %2731 = vmatmul.mubr.bf16.vlgmr.msra.gmra.mrb[24].mxu0 %v6669_v22  ;;  %v2437_v22 = vpop.f32.mrb[11].mxu1 }
 0x1dc   : > { %2778 = vst [vmem:[#allocation3 + $0x128] sm:$0xff] %v2437_v22  ;;  %v2967_v22 = vrot.slane %v2962_v52, 7 }
 0x201   : > { %v2474_v30 = vpop.f32.mrb[12].mxu0 }
 0x202   : > { %2753 = vst [vmem:[#allocation3 + $0x60] sm:$0xff] %v2474_v30  ;;  %v2476_v59 = vpop.f32.mrb[13].mxu0 }
 0x203   : > { %2754 = vst [vmem:[#allocation3 + $0x68] sm:$0xff] %v2476_v59  ;;  %v2478_v7 = vpop.f32.mrb[14].mxu0  ;;  %v2924_v59 = vsel %vm2921_vm7, %v2923_v13, %v2915_v2 }
 0x204   : > { %2779 = vst [vmem:[#allocation3 + $0x130] sm:$0xff] %v2478_v7  ;;  %v2480_v14 = vpop.f32.mrb[15].mxu0 }
 0x205   : > { %2780 = vst [vmem:[#allocation3 + $0x138] sm:$0xff] %v2480_v14  ;;  %v2948_v14 = vld [vmem:[#allocation3 + $0xd] ss:$8 sm:$0xf] }
 0x209   : > { %v3026_v39 = vld [vmem:[#allocation3 + $0x4f] ss:$8 sm:$0xf] }
 0x211   : > { %v2517_v45 = vpop.f32.mrb[12].mxu1 }
 0x212   : > { %2755 = vst [vmem:[#allocation3 + $0x70] sm:$0xff] %v2517_v45  ;;  %v2519_v58 = vpop.f32.mrb[13].mxu1  ;;  %v2972_v45 = vsel %vm2831_vm8, %v2967_v22, %v2968_v16 }
 0x213   : > { %2756 = vst [vmem:[#allocation3 + $0x78] sm:$0xff] %v2519_v58  ;;  %v2521_v37 = vpop.f32.mrb[14].mxu1  ;;  %v6820_v58 = vpop.permute.xlu0 %3002 }
 0x214   : > { %2781 = vst [vmem:[#allocation3 + $0x140] sm:$0xff] %v2521_v37  ;;  %v2523_v15 = vpop.f32.mrb[15].mxu1  ;;  %v2950_v37 = vor.u32 %v2949_v11, %v2948_v14 }
 0x215   : > { %2782 = vst [vmem:[#allocation3 + $0x148] sm:$0xff] %v2523_v15 }
 0x21a   : > { %v2904_v8 = vld [vmem:[#allocation3 + $0x43] ss:$8 sm:$0xf0] }
 0x21b   : > { %v2905_v30 = vor.u32 %v2904_v8, %v2903_v5 }
 0x246   : > { %v2560_v20 = vpop.f32.mrb[16].mxu0 }
 0x247   : > { %2757 = vst [vmem:[#allocation3 + $0x80] sm:$0xff] %v2560_v20  ;;  %v2562_v6 = vpop.f32.mrb[17].mxu0  ;;  %v2952_v20 = vld [vmem:[#allocation3 + $0x4d] ss:$8 sm:$0xf] }
 0x248   : > { %2758 = vst [vmem:[#allocation3 + $0x88] sm:$0xff] %v2562_v6  ;;  %v2564_v12 = vpop.f32.mrb[18].mxu0  ;;  %v2971_v6 = vsel %vm2970_vm9, %v2967_v22, %v2962_v52 }
 0x249   : > { %2783 = vst [vmem:[#allocation3 + $0x150] sm:$0xff] %v2564_v12  ;;  %v2566_v35 = vpop.f32.mrb[19].mxu0  ;;  %v3001_v12 = vpop.permute.xlu1 %3000 }
 0x24a   : > { %2784 = vst [vmem:[#allocation3 + $0x158] sm:$0xff] %v2566_v35  ;;  %v2932_v35 = vmul.f32 %v2924_v59, %v2905_v30 }
 0x24e   : > { %v3027_v44 = vld [vmem:[#allocation3 + $0x4f] ss:$8 sm:$0xf0]  ;;  %v2953_v7 = vld [vmem:[#allocation3 + $0x4d] ss:$8 sm:$0xf0] }
 0x24f   : > { %v2603_v18 = vpop.f32.mrb[16].mxu1  ;;  %v3028_v26 = vor.u32 %v3027_v44, %v3026_v39  ;;  %v2954_v39 = vor.u32 %v2953_v7, %v2952_v20  ;;  %v2969_v44 = vrot.slane %v2966_v25, 7  ;;  %v2990_v54 = vld [vmem:[#allocation3 + $0x4e] ss:$8 sm:$0xf0] }
 0x250   : > { %2759 = vst [vmem:[#allocation3 + $0x90] sm:$0xff] %v2603_v18  ;;  %v2605_v63 = vpop.f32.mrb[17].mxu1  ;;  %v2973_v18 = vsel %vm2970_vm9, %v2972_v45, %v2964_v17 }
 0x251   : > { %2760 = vst [vmem:[#allocation3 + $0x98] sm:$0xff] %v2605_v63  ;;  %3168 = vrot.lane.b32.xlu0 %v3028_v26, %s4055_s6  ;;  %v2607_v24 = vpop.f32.mrb[18].mxu1  ;;  %v2980_v63 = vmul.f32 %v2971_v6, %v2950_v37 }
 0x252   : > { %2785 = vst [vmem:[#allocation3 + $0x160] sm:$0xff] %v2607_v24  ;;  %v2609_v38 = vpop.f32.mrb[19].mxu1  ;;  %v2986_v24 = vld [vmem:[#allocation3 + $0xe] ss:$8 sm:$0xf0] }
 0x253   : > { %2786 = vst [vmem:[#allocation3 + $0x168] sm:$0xff] %v2609_v38  ;;  %v3167_v38 = vpop.permute.xlu1 %3166 }
 0x258   : > { %v2907_v4 = vld [vmem:[#allocation3 + $0x83] ss:$8 sm:$0xf] }
 0x27a   : > { %v2646_v21 = vpop.f32.mrb[20].mxu0 }
 0x27b   : > { %2761 = vst [vmem:[#allocation3 + $0xa0] sm:$0xff] %v2646_v21  ;;  %v2648_v36 = vpop.f32.mrb[21].mxu0  ;;  %v2981_v21 = vmul.f32 %v2973_v18, %v2954_v39  ;;  %v2845_v39 = vld [vmem:[#allocation3 + $0x1] ss:$8 sm:$0xf] }
 0x27c   : > { %2762 = vst [vmem:[#allocation3 + $0xa8] sm:$0xff] %v2648_v36  ;;  %v2650_v9 = vpop.f32.mrb[22].mxu0 }
 0x27d   : > { %2787 = vst [vmem:[#allocation3 + $0x170] sm:$0xff] %v2650_v9  ;;  %v2652_v0 = vpop.f32.mrb[23].mxu0  ;;  %v2974_v9 = vsel %vm2831_vm8, %v2968_v16, %v2969_v44 }
 0x27e   : > { %2788 = vst [vmem:[#allocation3 + $0x178] sm:$0xff] %v2652_v0 }
 0x282   : > { %v3030_v61 = vld [vmem:[#allocation3 + $0x8f] ss:$8 sm:$0xf]  ;;  %v2993_v27 = vld [vmem:[#allocation3 + $0x8e] ss:$8 sm:$0xf] }
 0x283   : > { %v2689_v34 = vpop.f32.mrb[20].mxu1 }
 0x284   : > { %2763 = vst [vmem:[#allocation3 + $0xb0] sm:$0xff] %v2689_v34  ;;  %v2691_v49 = vpop.f32.mrb[21].mxu1 }
 0x285   : > { %2764 = vst [vmem:[#allocation3 + $0xb8] sm:$0xff] %v2691_v49  ;;  %v2693_v19 = vpop.f32.mrb[22].mxu1  ;;  %v3004_v49 = vrot.slane %v6809_v62, 7 }
 0x286   : > { %2789 = vst [vmem:[#allocation3 + $0x180] sm:$0xff] %v2693_v19  ;;  %v2695_v3 = vpop.f32.mrb[23].mxu1  ;;  %v2956_v19 = vld [vmem:[#allocation3 + $0x8d] ss:$8 sm:$0xf] }
 0x287   : > { %2790 = vst [vmem:[#allocation3 + $0x188] sm:$0xff] %v2695_v3  ;;  %v3174_v3 = vrot.slane %v3167_v38, 1 }
 0x28c   : > { %v2908_v41 = vld [vmem:[#allocation3 + $0x83] ss:$8 sm:$0xf0] }
 0x28d   : > { %v2909_v48 = vor.u32 %v2908_v41, %v2907_v4  ;;  %v2989_v41 = vld [vmem:[#allocation3 + $0x4e] ss:$8 sm:$0xf] }
 0x28e   : > { %v2991_v13 = vor.u32 %v2990_v54, %v2989_v41  ;;  %v2864_v54 = vld [vmem:[#allocation3 + $0x42] ss:$8 sm:$0xf0] }
 0x28f   : > { %v2933_v15 = vmul.f32 %v2926_v29, %v2909_v48 }
 0x2ae   : > { %v2732_v46 = vpop.f32.mrb[24].mxu0 }
 0x2af   : > { %2765 = vst [vmem:[#allocation3 + $0xc0] sm:$0xff] %v2732_v46  ;;  %v2734_v51 = vpop.f32.mrb[25].mxu0  ;;  %v2985_v46 = vld [vmem:[#allocation3 + $0xe] ss:$8 sm:$0xf] }
 0x2b0   : > { %2766 = vst [vmem:[#allocation3 + $0xc8] sm:$0xff] %v2734_v51  ;;  %v2736_v60 = vpop.f32.mrb[26].mxu0  ;;  %v2975_v51 = vsel %vm2970_vm9, %v2974_v9, %v2966_v25  ;;  %v2987_v2 = vor.u32 %v2986_v24, %v2985_v46 }
 0x2b1   : > { %2791 = vst [vmem:[#allocation3 + $0x190] sm:$0xff] %v2736_v60  ;;  %v2738_v53 = vpop.f32.mrb[27].mxu0 }
 0x2b2   : > { %2792 = vst [vmem:[#allocation3 + $0x198] sm:$0xff] %v2738_v53 }
 0x2b6   : > { %v3031_v42 = vld [vmem:[#allocation3 + $0x8f] ss:$8 sm:$0xf0]  ;;  %v2957_v36 = vld [vmem:[#allocation3 + $0x8d] ss:$8 sm:$0xf0] }
 0x2b7   : > { %v3034_v31 = vld [vmem:[#allocation3 + $0xcf] ss:$8 sm:$0x1]  ;;  %v3032_v23 = vor.u32 %v3031_v42, %v3030_v61  ;;  %v2911_v34 = vld [vmem:[#allocation3 + $0xc3] ss:$8 sm:$0x1]  ;;  %v2958_v33 = vor.u32 %v2957_v36, %v2956_v19  ;;  %v3008_v61 = vsel %vm3007_vm11, %v3004_v49, %v6809_v62 }
 0x2b8   : > { %3172 = vrot.lane.b32.xlu0 %v3034_v31, %s4055_s6  ;;  %v2934_v60 = vmul.f32 %v2920_v50, %v2911_v34  ;;  %v2960_v47 = vld [vmem:[#allocation3 + $0xcd] ss:$8 sm:$0x1]  ;;  %v3017_v31 = vmul.f32 %v3008_v61, %v2987_v2  ;;  %v3006_v50 = vrot.slane %v6820_v58, 7 }
 0x2b9   : > { %3170 = vrot.lane.b32.xlu1 %v3032_v23, %s4055_s6  ;;  %v2982_v42 = vmul.f32 %v2975_v51, %v2958_v33  ;;  %v2983_v55 = vmul.f32 %v2969_v44, %v2960_v47  ;;  %v3005_v23 = vrot.slane %v3001_v12, 7  ;;  %v2997_v40 = vld [vmem:[#allocation3 + $0xce] ss:$8 sm:$0x1] }
 0x2ba   : > { %v2994_v52 = vld [vmem:[#allocation3 + $0x8e] ss:$8 sm:$0xf0]  ;;  %v3020_v8 = vmul.f32 %v3006_v50, %v2997_v40  ;;  %v2860_v44 = vld [vmem:[#allocation3 + $0x2] ss:$8 sm:$0xf0] }
 0x2bb   : > { %v3009_v57 = vsel %vm2831_vm8, %v3004_v49, %v3005_v23  ;;  %v3011_v56 = vsel %vm2831_vm8, %v3005_v23, %v3006_v50  ;;  %v2995_v16 = vor.u32 %v2994_v52, %v2993_v27  ;;  %v2850_v36 = vld [vmem:[#allocation3 + $0x41] ss:$8 sm:$0xf0]  ;;  %v2859_v19 = vld [vmem:[#allocation3 + $0x2] ss:$8 sm:$0xf] }
 0x2bc   : > { %2877 = vrot.lane.b32.xlu0 %v6804_v32, %s4058_s28  ;;  %v3010_v25 = vsel %vm3007_vm11, %v3009_v57, %v3001_v12  ;;  %v2849_v2 = vld [vmem:[#allocation3 + $0x41] ss:$8 sm:$0xf]  ;;  %v2868_v40 = vld [vmem:[#allocation3 + $0x82] ss:$8 sm:$0xf0] }
 0x2bd   : > { %2875 = vrot.lane.b32.xlu1 %v4042_v10, %s4058_s28  ;;  %v3018_v29 = vmul.f32 %v3010_v25, %v2991_v13 }
 0x2c0   : > { %3107 = vrot.lane.b32.xlu0 %v2931_v28, %s4059_s5 }
 0x2c1   : > { %2879 = vrot.lane.b32.xlu1 %v6622_v1, %s4058_s28 }
 0x2c3   : > { %v6827_v26 = vpop.permute.xlu0 %3168 }
 0x2c4   : > { %3111 = vrot.lane.b32.xlu0 %v2933_v15, %s4059_s5  ;;  %v3175_v0 = vrot.slane %v6827_v26, 1 }
 0x2c5   : > { %3109 = vrot.lane.b32.xlu1 %v2932_v35, %s4059_s5  ;;  %v2846_v35 = vld [vmem:[#allocation3 + $0x1] ss:$8 sm:$0xf0] }
 0x2c6   : > { %v3178_v53 = vsel %vm3088_vm10, %v3174_v3, %v3175_v0  ;;  %v2854_v3 = vld [vmem:[#allocation3 + $0x81] ss:$8 sm:$0xf0] }
 0x2c7   : > { %v3179_v17 = vsel %vm2921_vm7, %v3167_v38, %v3178_v53  ;;  %v2861_v53 = vor.u32 %v2860_v44, %v2859_v19 }
 0x2c8   : > { %3138 = vrot.lane.b32.xlu0 %v2980_v63, %s4055_s6  ;;  %v3188_v43 = vadd.f32 %v3179_v17, %v3017_v31 }
 0x2c9   : > { %3140 = vrot.lane.b32.xlu1 %v2981_v21, %s4055_s6  ;;  %v2847_v21 = vor.u32 %v2846_v35, %v2845_v39 }
 0x2cc   : > { %3049 = vrot.lane.b32.xlu0 %v4042_v10, %s4060_s7  ;;  %v3012_v10 = vsel %vm3007_vm11, %v3011_v56, %v6820_v58  ;;  %v2863_v56 = vld [vmem:[#allocation3 + $0x42] ss:$8 sm:$0xf] }
 0x2cd   : > { %3113 = vrot.lane.b32.xlu1 %v2934_v60, %s4059_s5  ;;  %v3019_v11 = vmul.f32 %v3012_v10, %v2995_v16  ;;  %v4045_v60 = vld [vmem:[%s7041_s1 + $0x20] ss:$2 sm:$0xff]  ;;  %v2865_v25 = vor.u32 %v2864_v54, %v2863_v56 }
 0x2d0   : > { %3142 = vrot.lane.b32.xlu0 %v2982_v42, %s4055_s6  ;;  %v2853_v42 = vld [vmem:[#allocation3 + $0x81] ss:$8 sm:$0xf] }
 0x2d1   : > { %3144 = vrot.lane.b32.xlu1 %v2983_v55, %s4055_s6  ;;  %v2851_v55 = vor.u32 %v2850_v36, %v2849_v2  ;;  %v2855_v50 = vor.u32 %v2854_v3, %v2853_v42  ;;  %v2945_v2 = vld [vmem:[#allocation3 + $0x8c] ss:$8 sm:$0xf0] }
 0x2d4   : > { %3227 = vrot.lane.b32.xlu0 %v3188_v43, %s4058_s28 }
 0x32a   : > { %v3173_v62 = vpop.permute.xlu0 %3172 }
 0x32b   : > { %v3177_v4 = vrot.slane %v3173_v62, 1  ;;  %v3191_v28 = vadd.f32 %v3173_v62, %v3020_v8  ;;  %v3171_v48 = vpop.permute.xlu1 %3170  ;;  %v2867_v8 = vld [vmem:[#allocation3 + $0x82] ss:$8 sm:$0xf] }
 0x32c   : > { %v3176_v5 = vrot.slane %v3171_v48, 1  ;;  %v2869_v62 = vor.u32 %v2868_v40, %v2867_v8 }
 0x32d   : > { %3233 = vrot.lane.b32.xlu1 %v3191_v28, %s4058_s28  ;;  %v2857_v28 = vld [vmem:[#allocation3 + $0xc1] ss:$8 sm:$0x1] }
 0x32e   : > { %v3180_v22 = vsel %vm3088_vm10, %v3175_v0, %v3176_v5  ;;  %v3182_v30 = vsel %vm3088_vm10, %v3176_v5, %v3177_v4  ;;  %v6856_v59 = vpop.permute.xlu0 %2877 }
 0x32f   : > { %v3183_v7 = vsel %vm2921_vm7, %v3171_v48, %v3182_v30  ;;  %v2876_v14 = vpop.permute.xlu1 %2875  ;;  %v3181_v45 = vsel %vm2921_vm7, %v6827_v26, %v3180_v22  ;;  %v4043_v26 = vld [vmem:[%s7041_s1 + $0x10] ss:$2 sm:$0xff]  ;;  %v2882_v9 = vrot.slane %v6856_v59, 7 }
 0x330   : > { %v3190_v58 = vadd.f32 %v3183_v7, %v3019_v11  ;;  %v3189_v37 = vadd.f32 %v3181_v45, %v3018_v29  ;;  %v2871_v7 = vld [vmem:[#allocation3 + $0xc2] ss:$8 sm:$0x1]  ;;  %v3037_v45 = vld [vmem:[#allocation3 + $0xd8] ss:$8 sm:$0xf0] }
 0x332   : > { %3231 = vrot.lane.b32.xlu0 %v3190_v58, %s4058_s28  ;;  %v3108_v15 = vpop.permute.xlu0 %3107  ;;  %3229 = vrot.lane.b32.xlu1 %v3189_v37, %s4058_s28  ;;  %v3036_v37 = vld [vmem:[#allocation3 + $0xd8] ss:$8 sm:$0xf] }
 0x333   : > { %v6863_v20 = vpop.permute.xlu1 %2879  ;;  %v3115_v0 = vrot.slane %v3108_v15, 1 }
 0x334   : > { %v2883_v34 = vrot.slane %v6863_v20, 7 }
 0x336   : > { %3053 = vrot.lane.b32.xlu0 %v6622_v1, %s4060_s7  ;;  %v3112_v6 = vpop.permute.xlu0 %3111  ;;  %3051 = vrot.lane.b32.xlu1 %v6804_v32, %s4060_s7  ;;  %v4044_v1 = vld [vmem:[%s7041_s1] ss:$2 sm:$0xff]  ;;  %v2881_v32 = vrot.slane %v2876_v14, 7  ;;  %v2888_v43 = vsel %vm2831_vm8, %v2882_v9, %v2883_v34 }
 0x337   : > { %v3110_v12 = vpop.permute.xlu1 %3109  ;;  %v3117_v33 = vrot.slane %v3112_v6, 1  ;;  %v2889_v13 = vsel %vm2884_vm12, %v2888_v43, %v6863_v20  ;;  %v3038_v20 = vor.u32 %v3037_v45, %v3036_v37 }
 0x338   : > { %v3116_v18 = vrot.slane %v3110_v12, 1  ;;  %v2885_v47 = vsel %vm2884_vm12, %v2881_v32, %v2876_v14  ;;  %v2886_v31 = vsel %vm2831_vm8, %v2881_v32, %v2882_v9  ;;  %v2896_v5 = vmul.f32 %v2889_v13, %v2869_v62  ;;  %v2937_v32 = vld [vmem:[#allocation3 + $0xc] ss:$8 sm:$0xf0] }
 0x339   : > { %v2894_v57 = vmul.f32 %v2885_v47, %v2861_v53  ;;  %v2887_v16 = vsel %vm2884_vm12, %v2886_v31, %v6856_v59  ;;  %v2897_v14 = vmul.f32 %v2883_v34, %v2871_v7 }
 0x33a   : > { %2822 = vrot.lane.b32.xlu0 %v4043_v26, %s4061_s10  ;;  %v3139_v63 = vpop.permute.xlu0 %3138  ;;  %2820 = vrot.lane.b32.xlu1 %v4044_v1, %s4061_s10  ;;  %v3119_v46 = vsel %vm3088_vm10, %v3115_v0, %v3116_v18  ;;  %v3122_v41 = vsel %vm3088_vm10, %v3116_v18, %v3117_v33  ;;  %v2895_v29 = vmul.f32 %v2887_v16, %v2865_v25  ;;  %v2941_v1 = vld [vmem:[#allocation3 + $0x4c] ss:$8 sm:$0xf0] }
 0x33b   : > { %v3146_v24 = vrot.slane %v3139_v63, 1  ;;  %v6877_v38 = vpop.permute.xlu1 %3140  ;;  %v3121_v52 = vsel %vm3120_vm13, %v3108_v15, %v3119_v46  ;;  %v3123_v4 = vsel %vm3120_vm13, %v3110_v12, %v3122_v41 }
 0x33c   : > { %v3147_v49 = vrot.slane %v6877_v38, 1  ;;  %v3130_v10 = vadd.f32 %v3121_v52, %v2894_v57  ;;  %v3131_v22 = vadd.f32 %v3123_v4, %v2895_v29 }
 0x33e   : > { %v3150_v51 = vsel %vm3088_vm10, %v3146_v24, %v3147_v49  ;;  %3076 = vrot.lane.b32.xlu0 %v2847_v21, %s4055_s6  ;;  %2824 = vrot.lane.b32.xlu1 %v4045_v60, %s4061_s10  ;;  %v6908_v11 = vpop.permute.xlu0 %3049  ;;  %v2940_v21 = vld [vmem:[#allocation3 + $0x4c] ss:$8 sm:$0xf] }
 0x33f   : > { %v3114_v61 = vpop.permute.xlu1 %3113  ;;  %v6893_v17 = vsel %vm2921_vm7, %v3139_v63, %v3150_v51  ;;  %v3055_v59 = vrot.slane %v6908_v11, 7  ;;  %v2942_v19 = vor.u32 %v2941_v1, %v2940_v21  ;;  %v2804_v1 = vld [vmem:[#allocation3] ss:$8 sm:$0xf] }
 0x340   : > { %v3118_v23 = vrot.slane %v3114_v61, 1  ;;  %v3133_v58 = vadd.f32 %v3114_v61, %v2897_v14 }
 0x341   : > { %v3059_v15 = vsel %vm3058_vm14, %v3055_v59, %v6908_v11 }
 0x342   : > { %v3124_v27 = vsel %vm3088_vm10, %v3117_v33, %v3118_v23  ;;  %3080 = vrot.lane.b32.xlu0 %v2855_v50, %s4055_s6  ;;  %3078 = vrot.lane.b32.xlu1 %v2851_v55, %s4055_s6  ;;  %v3143_v12 = vpop.permute.xlu0 %3142  ;;  %v2936_v33 = vld [vmem:[#allocation3 + $0xc] ss:$8 sm:$0xf]  ;;  %v3045_v23 = vld [vmem:[#allocation3 + $0x158] ss:$8 sm:$0xf0] }
 0x343   : > { %v3125_v48 = vsel %vm3120_vm13, %v3112_v6, %v3124_v27  ;;  %v3068_v6 = vmul.f32 %v3059_v15, %v3038_v20  ;;  %v3145_v35 = vpop.permute.xlu1 %3144  ;;  %v3148_v39 = vrot.slane %v3143_v12, 1  ;;  %v2938_v60 = vor.u32 %v2937_v32, %v2936_v33  ;;  %v2944_v50 = vld [vmem:[#allocation3 + $0x8c] ss:$8 sm:$0xf] }
 0x344   : > { %v3132_v30 = vadd.f32 %v3125_v48, %v2896_v5  ;;  %v3149_v63 = vrot.slane %v3145_v35, 1  ;;  %v2946_v56 = vor.u32 %v2945_v2, %v2944_v50  ;;  %v3044_v27 = vld [vmem:[#allocation3 + $0x158] ss:$8 sm:$0xf] }
 0x345   : > { %v3152_v26 = vsel %vm3088_vm10, %v3147_v49, %v3148_v39  ;;  %v3159_v31 = vadd.f32 %v6893_v17, %v2938_v60  ;;  %v3046_v16 = vor.u32 %v3045_v23, %v3044_v27  ;;  %v3040_v48 = vld [vmem:[#allocation3 + $0x118] ss:$8 sm:$0xf] }
 0x346   : > { %3196 = vrot.lane.b32.xlu0 %v3130_v10, %s4062_s15  ;;  %3082 = vrot.lane.b32.xlu1 %v2857_v28, %s4055_s6  ;;  %v3228_v18 = vpop.permute.xlu0 %3227  ;;  %v3153_v36 = vsel %vm2921_vm7, %v6877_v38, %v3152_v26  ;;  %v3154_v46 = vsel %vm3088_vm10, %v3148_v39, %v3149_v63  ;;  %v3041_v10 = vld [vmem:[#allocation3 + $0x118] ss:$8 sm:$0xf0]  ;;  %s6947_s6 = sld [smem:[#allocation4]] }
 0x347   : > { %v3235_v0 = vrot.slane %v3228_v18, 1  ;;  %v3160_v49 = vadd.f32 %v3153_v36, %v2942_v19  ;;  %v3155_v40 = vsel %vm2921_vm7, %v3143_v12, %v3154_v46  ;;  %v3042_v29 = vor.u32 %v3041_v10, %v3040_v48  ;;  %v2805_v63 = vld [vmem:[#allocation3] ss:$8 sm:$0xf0] }
 0x348   : > { %v3161_v17 = vadd.f32 %v3155_v40, %v2946_v56  ;;  %v2813_v60 = vld [vmem:[#allocation3 + $0x80] ss:$8 sm:$0xf0] }
 0x34a   : > { %3200 = vrot.lane.b32.xlu0 %v3132_v30, %s4062_s15  ;;  %3198 = vrot.lane.b32.xlu1 %v3131_v22, %s4062_s15  ;;  %v3048_v22 = vld [vmem:[#allocation3 + $0x198] ss:$8 sm:$0x1] }
 0x34e   : > { %3202 = vrot.lane.b32.xlu1 %v3133_v58, %s4062_s15 }
 0x352   : > { %3280 = vrot.lane.b32.xlu1 %v3068_v6, %s4063_s16 }
 0x39f   : > { %v3234_v44 = vpop.permute.xlu1 %3233 }
 0x3a0   : > { %v3238_v51 = vrot.slane %v3234_v44, 1 }
 0x3a4   : > { %v3232_v24 = vpop.permute.xlu0 %3231  ;;  %v3230_v9 = vpop.permute.xlu1 %3229 }
 0x3a5   : > { %v3237_v34 = vrot.slane %v3232_v24, 1  ;;  %v3236_v3 = vrot.slane %v3230_v9, 1 }
 0x3a7   : > { %v3239_v53 = vsel %vm3088_vm10, %v3235_v0, %v3236_v3  ;;  %v3241_v47 = vsel %vm3088_vm10, %v3236_v3, %v3237_v34  ;;  %v3243_v61 = vsel %vm3088_vm10, %v3237_v34, %v3238_v51  ;;  %v2806_v34 = vor.u32 %v2805_v63, %v2804_v1  ;;  %v2808_v3 = vld [vmem:[#allocation3 + $0x40] ss:$8 sm:$0xf] }
 0x3a8   : > { %v3242_v38 = vsel %vm2884_vm12, %v3230_v9, %v3241_v47  ;;  %v3054_v42 = vpop.permute.xlu0 %3053  ;;  %v3052_v55 = vpop.permute.xlu1 %3051  ;;  %v3240_v43 = vsel %vm2884_vm12, %v3228_v18, %v3239_v53  ;;  %v3244_v8 = vsel %vm2884_vm12, %v3232_v24, %v3243_v61  ;;  %v2809_v9 = vld [vmem:[#allocation3 + $0x40] ss:$8 sm:$0xf0] }
 0x3a9   : > { %v3249_v54 = vadd.f32 %v3242_v38, %v3160_v49  ;;  %v3057_v52 = vrot.slane %v3054_v42, 7  ;;  %v3056_v57 = vrot.slane %v3052_v55, 7  ;;  %v3248_v41 = vadd.f32 %v3240_v43, %v3159_v31  ;;  %v2812_v61 = vld [vmem:[#allocation3 + $0x80] ss:$8 sm:$0xf] }
 0x3aa   : > { %v3250_v28 = vadd.f32 %v3244_v8, %v3161_v17  ;;  %v2810_v47 = vor.u32 %v2809_v9, %v2808_v3  ;;  %v2814_v23 = vor.u32 %v2813_v60, %v2812_v61 }
 0x3ab   : > { %v3062_v13 = vsel %vm2831_vm8, %v3056_v57, %v3057_v52  ;;  %3256 = vrot.lane.b32.xlu1 %v3249_v54, %s4061_s10  ;;  %v3060_v62 = vsel %vm2831_vm8, %v3055_v59, %v3056_v57  ;;  %3254 = vrot.lane.b32.xlu0 %v3248_v41, %s4061_s10  ;;  %v3071_v30 = vmul.f32 %v3057_v52, %v3048_v22 }
 0x3ac   : > { %v3063_v25 = vsel %vm3058_vm14, %v3062_v13, %v3054_v42  ;;  %v3061_v5 = vsel %vm3058_vm14, %v3060_v62, %v3052_v55  ;;  %v2821_v59 = vpop.permute.xlu1 %2820  ;;  %v2823_v45 = vpop.permute.xlu0 %2822  ;;  %v2816_v62 = vld [vmem:[#allocation3 + $0xc0] ss:$8 sm:$0x1] }
 0x3ad   : > { %v3070_v4 = vmul.f32 %v3063_v25, %v3046_v16  ;;  %v3069_v11 = vmul.f32 %v3061_v5, %v3042_v29  ;;  %v2826_v39 = vrot.slane %v2821_v59, 7  ;;  %v2827_v26 = vrot.slane %v2823_v45, 7 }
 0x3ae   : > { %v3310_v16 = vstv %s6947_s6 }
 0x3af   : > { %3284 = vrot.lane.b32.xlu1 %v3070_v4, %s4063_s16  ;;  %3258 = vrot.lane.b32.xlu0 %v3250_v28, %s4061_s10  ;;  %v2830_v21 = vsel %vm2829_vm15, %v2826_v39, %v2821_v59  ;;  %v2832_v51 = vsel %vm2831_vm8, %v2826_v39, %v2827_v26 }
 0x3b0   : > { %v2825_v7 = vpop.permute.xlu1 %2824  ;;  %v3077_v37 = vpop.permute.xlu0 %3076  ;;  %v2840_v53 = vmul.f32 %v2830_v21, %v2806_v34  ;;  %v2833_v50 = vsel %vm2829_vm15, %v2832_v51, %v2823_v45 }
 0x3b1   : > { %v3084_v44 = vrot.slane %v3077_v37, 1  ;;  %v2828_v36 = vrot.slane %v2825_v7, 7  ;;  %v2841_v17 = vmul.f32 %v2833_v50, %v2810_v47 }
 0x3b3   : > { %3282 = vrot.lane.b32.xlu0 %v3069_v11, %s4063_s16  ;;  %v2834_v38 = vsel %vm2831_vm8, %v2827_v26, %v2828_v36  ;;  %v2843_v48 = vmul.f32 %v2828_v36, %v2816_v62 }
 0x3b4   : > { %v3079_v14 = vpop.permute.xlu1 %3078  ;;  %v3081_v20 = vpop.permute.xlu0 %3080  ;;  %v2835_v8 = vsel %vm2829_vm15, %v2834_v38, %v2825_v7 }
 0x3b5   : > { %v3085_v12 = vrot.slane %v3079_v14, 1  ;;  %v3086_v19 = vrot.slane %v3081_v20, 1  ;;  %v2842_v22 = vmul.f32 %v2835_v8, %v2814_v23 }
 0x3b7   : > { %3286 = vrot.lane.b32.xlu0 %v3071_v30, %s4063_s16  ;;  %v3089_v32 = vsel %vm3088_vm10, %v3084_v44, %v3085_v12  ;;  %v3091_v40 = vsel %vm3088_vm10, %v3085_v12, %v3086_v19 }
 0x3b8   : > { %v6939_v58 = vpop.permute.xlu1 %3082  ;;  %v3197_v35 = vpop.permute.xlu0 %3196  ;;  %v3090_v49 = vsel %vm2921_vm7, %v3077_v37, %v3089_v32  ;;  %v3092_v28 = vsel %vm2921_vm7, %v3079_v14, %v3091_v40 }
 0x3b9   : > { %v3204_v24 = vrot.slane %v3197_v35, 1  ;;  %v3087_v2 = vrot.slane %v6939_v58, 1  ;;  %v3099_v52 = vadd.f32 %v3090_v49, %v2840_v53  ;;  %v3100_v14 = vadd.f32 %v3092_v28, %v2841_v17 }
 0x3ba   : > { %v3102_v39 = vadd.f32 %v6939_v58, %v2843_v48 }
 0x3bb   : > { %v3093_v57 = vsel %vm3088_vm10, %v3086_v19, %v3087_v2 }
 0x3bc   : > { %v6941_v15 = vpop.permute.xlu1 %3198  ;;  %v3201_v33 = vpop.permute.xlu0 %3200  ;;  %v3094_v11 = vsel %vm2921_vm7, %v3081_v20, %v3093_v57 }
 0x3bd   : > { %v3205_v18 = vrot.slane %v6941_v15, 1  ;;  %v3206_v42 = vrot.slane %v3201_v33, 1  ;;  %v3101_v44 = vadd.f32 %v3094_v11, %v2842_v22 }
 0x3bf   : > { %v3208_v46 = vsel %vm3088_vm10, %v3204_v24, %v3205_v18  ;;  %v3211_v25 = vsel %vm3088_vm10, %v3205_v18, %v3206_v42 }
 0x3c0   : > { %v6943_v6 = vpop.permute.xlu1 %3202  ;;  %v3210_v31 = vsel %vm3209_vm0, %v3197_v35, %v3208_v46  ;;  %v3212_v45 = vsel %vm3209_vm0, %v6941_v15, %v3211_v25 }
 0x3c1   : > { %v3207_v55 = vrot.slane %v6943_v6, 1  ;;  %v3219_v13 = vadd.f32 %v3210_v31, %v3099_v52  ;;  %v3220_v32 = vadd.f32 %v3212_v45, %v3100_v14  ;;  %v3222_v36 = vadd.f32 %v6943_v6, %v3102_v39 }
 0x3c2   : > { %v3325_v31 = vlaneseq }
 0x3c3   : > { %v3213_v10 = vsel %vm3088_vm10, %v3206_v42, %v3207_v55 }
 0x3c4   : > { %v6950_v0 = vpop.permute.xlu1 %3280  ;;  %v3214_v12 = vsel %vm3209_vm0, %v3201_v33, %v3213_v10  ;;  %vm6997_vm7 = vcmp.lt.s32.totalorder %v3325_v31, 384 }
 0x3c5   : > { %v3288_v56 = vrot.slane %v6950_v0, 7  ;;  %v3221_v24 = vadd.f32 %v3214_v12, %v3101_v44 }
 0x3c7   : > { %v3292_v30 = vsel %vm3291_vm1, %v3288_v56, %v6950_v0 }
 0x41d   : > { %v3257_v43 = vpop.permute.xlu1 %3256  ;;  %v3255_v54 = vpop.permute.xlu0 %3254 }
 0x41e   : > { %v3260_v41 = vrot.slane %v3255_v54, 7  ;;  %v3261_v27 = vrot.slane %v3257_v43, 7 }
 0x420   : > { %v3263_v4 = vsel %vm2829_vm15, %v3260_v41, %v3255_v54  ;;  %v3264_v59 = vsel %vm2831_vm8, %v3260_v41, %v3261_v27 }
 0x421   : > { %v3272_v5 = vadd.f32 %v3263_v4, %v3219_v13  ;;  %v3259_v29 = vpop.permute.xlu0 %3258  ;;  %v3285_v35 = vpop.permute.xlu1 %3284  ;;  %v3265_v18 = vsel %vm2829_vm15, %v3264_v59, %v3257_v43 }
 0x422   : > { %v3262_v7 = vrot.slane %v3259_v29, 7  ;;  %v3290_v15 = vrot.slane %v3285_v35, 7  ;;  %v3273_v0 = vadd.f32 %v3265_v18, %v3220_v32 }
 0x423   : > { %v3302_v37 = vadd.f32 %v3292_v30, %v3272_v5 }
 0x424   : > { %v3266_v20 = vsel %vm2831_vm8, %v3261_v27, %v3262_v7  ;;  %v3275_v3 = vadd.f32 %v3262_v7, %v3222_v36 }
 0x425   : > { %v3267_v26 = vsel %vm2829_vm15, %v3266_v20, %v3259_v29  ;;  %v3283_v63 = vpop.permute.xlu0 %3282  ;;  %vm3306_vm3 = vcmp.gt.f32.partialorder %v3302_v37, 0.0  ;;  %v3311_v1 = vmul.f32 %v3310_v16, %v3302_v37 }
 0x426   : > { %v3289_v21 = vrot.slane %v3283_v63, 7  ;;  %v3274_v34 = vadd.f32 %v3267_v26, %v3221_v24 }
 0x427   : > { %v3315_v9 = vsel %vm3306_vm3, %v3302_v37, %v3311_v1 }
 0x428   : > { %v3293_v58 = vsel %vm2831_vm8, %v3288_v56, %v3289_v21  ;;  %v3295_v19 = vsel %vm2831_vm8, %v3289_v21, %v3290_v15  ;;  %3320 = vrot.lane.b32.xlu1 %v3315_v9, %s4060_s7 }
 0x429   : > { %v3294_v33 = vsel %vm3291_vm1, %v3293_v58, %v3283_v63  ;;  %v3287_v46 = vpop.permute.xlu0 %3286  ;;  %v3296_v51 = vsel %vm3291_vm1, %v3295_v19, %v3285_v35 }
 0x42a   : > { %v3303_v60 = vadd.f32 %v3294_v33, %v3273_v0  ;;  %v3297_v2 = vsel %vm3291_vm1, %v3290_v15, %v3287_v46  ;;  %v3304_v6 = vadd.f32 %v3296_v51, %v3274_v34 }
 0x42b   : > { %v3305_v49 = vadd.f32 %v3297_v2, %v3275_v3 }
 0x42c   : > { %vm3308_vm4 = vcmp.gt.f32.partialorder %v3304_v6, 0.0  ;;  %v3313_v53 = vmul.f32 %v3310_v16, %v3304_v6  ;;  %vm3307_vm5 = vcmp.gt.f32.partialorder %v3303_v60, 0.0  ;;  %v3312_v47 = vmul.f32 %v3310_v16, %v3303_v60 }
 0x42d   : > { %v3314_v42 = vmul.f32 %v3310_v16, %v3305_v49  ;;  %vm3309_vm6 = vcmp.gt.f32.partialorder %v3305_v49, 0.0 }
 0x42e   : > { %v3317_v61 = vsel %vm3308_vm4, %v3304_v6, %v3313_v53  ;;  %v3316_v38 = vsel %vm3307_vm5, %v3303_v60, %v3312_v47 }
 0x42f   : > { %3368 = vrot.lane.b32.xlu1 %v3317_v61, %s4060_s7  ;;  %3339 = vrot.lane.b32.xlu0 %v3316_v38, %s4060_s7  ;;  %v3318_v55 = vsel %vm3309_vm6, %v3305_v49, %v3314_v42 }
 0x433   : > { %3385 = vrot.lane.b32.xlu0 %v3318_v55, %s4060_s7 }
 0x49a   : > { %v3321_v43 = vpop.permute.xlu1 %3320 }
 0x49b   : > { %v3322_v50 = vrot.slane %v3321_v43, 1  ;;  %v3331_v40 = vrot.slane %v3321_v43, 3  ;;  %v3332_v54 = vrot.slane %v3321_v43, 4  ;;  %v3341_v27 = vrot.slane %v3321_v43, 6 }
 0x49c   : > { %v3343_v17 = vrot.slane %v3321_v43, 7 }
 0x49d   : > { %v3323_v52 = vsel %vm3058_vm14, %v3321_v43, %v3322_v50  ;;  %v3333_v57 = vsel %vm3058_vm14, %v3331_v40, %v3332_v54 }
 0x49e   : > { %3329 = vst.msk [vmem:[%s6995_s21] ss:$8 sm:$0x7] %vm6997_vm7, %v3323_v52  ;;  %4004 = vst.msk [vmem:[%s6995_s21 + $0x1] ss:$8 sm:$0x7] %vm6997_vm7, %v3333_v57 }
 0x4a1   : > { %v3369_v56 = vpop.permute.xlu1 %3368  ;;  %v3340_v41 = vpop.permute.xlu0 %3339 }
 0x4a2   : > { %v3370_v8 = vrot.slane %v3369_v56, 7  ;;  %v3377_v13 = vrot.slane %v3369_v56, 2  ;;  %v3378_v16 = vrot.slane %v3369_v56, 3  ;;  %v3342_v62 = vrot.slane %v3340_v41, 6 }
 0x4a3   : > { %v3344_v25 = vrot.slane %v3340_v41, 7  ;;  %v3353_v10 = vrot.slane %v3340_v41, 1  ;;  %v3354_v28 = vrot.slane %v3340_v41, 2  ;;  %v3360_v48 = vrot.slane %v3340_v41, 4 }
 0x4a4   : > { %v3379_v4 = vsel %vm3058_vm14, %v3377_v13, %v3378_v16  ;;  %v3361_v5 = vrot.slane %v3340_v41, 5  ;;  %v3346_v29 = vsel %vm695_vm2, %v3341_v27, %v3342_v62  ;;  %v3388_v12 = vrot.slane %v3369_v56, 6 }
 0x4a5   : > { %4009 = vst.msk [vmem:[%s6995_s21 + $0x6] ss:$8 sm:$0x7] %vm6997_vm7, %v3379_v4  ;;  %v3347_v11 = vsel %vm2831_vm8, %v3343_v17, %v3344_v25  ;;  %v3371_v22 = vsel %vm2831_vm8, %v3344_v25, %v3370_v8  ;;  %v3386_v30 = vpop.permute.xlu0 %3385  ;;  %v3355_v7 = vsel %vm3058_vm14, %v3353_v10, %v3354_v28  ;;  %v3387_v14 = vrot.slane %v3369_v56, 5 }
 0x4a6   : > { %v3348_v59 = vsel %vm3058_vm14, %v3346_v29, %v3347_v11  ;;  %v3362_v45 = vsel %vm3058_vm14, %v3360_v48, %v3361_v5  ;;  %v3372_v37 = vsel %vm3058_vm14, %v3371_v22, %v3369_v56  ;;  %4006 = vst.msk [vmem:[%s6995_s21 + $0x3] ss:$8 sm:$0x7] %vm6997_vm7, %v3355_v7  ;;  %v3389_v35 = vrot.slane %v3386_v30, 6 }
 0x4a7   : > { %4005 = vst.msk [vmem:[%s6995_s21 + $0x2] ss:$8 sm:$0x7] %vm6997_vm7, %v3348_v59  ;;  %4007 = vst.msk [vmem:[%s6995_s21 + $0x4] ss:$8 sm:$0x7] %vm6997_vm7, %v3362_v45 }
 0x4a8   : > { %4008 = vst.msk [vmem:[%s6995_s21 + $0x5] ss:$8 sm:$0x7] %vm6997_vm7, %v3372_v37  ;;  %v3390_v39 = vsel %vm695_vm2, %v3388_v12, %v3389_v35 }
 0x4a9   : > { %v3391_v44 = vsel %vm3058_vm14, %v3387_v14, %v3390_v39 }
 0x4aa   : > { %4010 = vst.msk [vmem:[%s6995_s21 + $0x7] ss:$8 sm:$0x7] %vm6997_vm7, %v3391_v44 }
 0x4ab PF: > { %s15_s17 = sadd.s32 1, %s4052_s17  }
 0x4ac   : > { %p12_p5 = scmp.ge.s32.totalorder %s15_s17, 4  }
 0x4ae   :  { %14 = sbr.rel (!%p12_p5) target bundleno = 2 (0x2), region = 119 }

</bundles_post_ra>
